<compile_context>
chip_gen: v6e
topology: v6e:2x2x1
jax: 0.10.0
libtpu: 0.0.40
codegen_flags: <defaults>
</compile_context>

<pallas_src>
import functools

import jax
import jax.numpy as jnp
from jax import lax
from jax.experimental import pallas as pl
from jax.experimental.pallas import tpu as pltpu


# --------------------------------------------------------------------------
# exact (erf) GELU, matching torch.nn.GELU() default
# --------------------------------------------------------------------------
def _erf(x):
    # Abramowitz & Stegun 7.1.26 (max abs err ~1.5e-7 ~= float32 resolution).
    a1, a2, a3, a4, a5 = 0.254829592, -0.284496736, 1.421413741, -1.453152027, 1.061405429
    p = 0.3275911
    sgn = jnp.where(x < 0.0, -1.0, 1.0)
    ax = jnp.abs(x)
    t = 1.0 / (1.0 + p * ax)
    poly = ((((a5 * t + a4) * t + a3) * t + a2) * t + a1) * t
    return sgn * (1.0 - poly * jnp.exp(-ax * ax))


def _gelu(x):
    return 0.5 * x * (1.0 + _erf(x * 0.7071067811865476))


# --------------------------------------------------------------------------
# One fused SwinTransformerBlock per grid step (one batch element):
#   LocalModule (BN -> 1x1 -> dw3x3 -> BN -> 1x1) + x
#   -> qkv (one big matmul) -> per-window softmax(k)/k^T v/q@attn
#   -> proj (one big matmul) -> window_reverse -> + local
#   -> MLP residual (fc1 -> GELU -> fc2, + skip)
# BatchNorm is applied in inference mode (running stats folded to scale/bias).
# TODO(synk): torch default train-mode batch statistics are not reproduced.
# --------------------------------------------------------------------------
def swin_block_kernel(x_ref,
                      bn0s_ref, bn0b_ref, w0_ref, dw_ref, bn1s_ref, bn1b_ref,
                      w1_ref, wqkv_ref, bqkv_ref, wproj_ref, bproj_ref,
                      mask_ref, wfc1_ref, bfc1_ref, wfc2_ref, bfc2_ref,
                      o_ref, pad_ref, att_ref, *, ws, scale):
    _, H, W, C = x_ref.shape
    N = ws * ws
    x = x_ref[0]                                            # (H, W, C)

    # ---------------- LocalModule (+ x residual) ----------------------------
    y = x * bn0s_ref[0] + bn0b_ref[0]                       # BN0 (eval, folded)
    y = jnp.dot(y.reshape(H * W, C), w0_ref[...],           # pointwise_conv_0
                preferred_element_type=jnp.float32).reshape(H, W, C)

    # depthwise 3x3 conv (zero padding=1) via a VMEM scratch laid out so that
    # every store is (8,128)-aligned: the image sits at sublane offset 8, so
    # the interior write is an unmasked full-tile store.  Only 6 of 9 tap
    # *loads* are at sublane offset +-1 (cheap relative to masked stores).
    pad_ref[...] = jnp.zeros(pad_ref.shape, jnp.float32)
    pad_ref[1:H + 1, 8:8 + W, :] = y
    acc = jnp.zeros((H, W, C), jnp.float32)
    for dy in range(3):
        for dx in range(3):
            acc = acc + (pad_ref[dy:dy + H, 7 + dx:7 + dx + W, :]
                         * dw_ref[dy * 3 + dx, :])

    z = acc * bn1s_ref[0] + bn1b_ref[0]                     # BN1 (eval, folded)
    z = jnp.dot(z.reshape(H * W, C), w1_ref[...],           # pointwise_conv_1
                preferred_element_type=jnp.float32).reshape(H, W, C)
    local = z + x                                           # local = LM(x) + x

    # ---------------- qkv: one (H*W, C) @ (C, 3C) MXU matmul ----------------
    qkv = jnp.dot(local.reshape(H * W, C), wqkv_ref[...],
                  preferred_element_type=jnp.float32) + bqkv_ref[0]
    qkv = qkv.reshape(H, W, 3 * C)
    q = qkv[:, :, 0:C] * scale
    k = qkv[:, :, C:2 * C]
    v = qkv[:, :, 2 * C:3 * C]

    # ---------------- per-window attention (windows statically unrolled) ----
    # TODO(synk): for large images switch the window loop to a grid axis.
    mask = mask_ref[...]                                    # (C, C) head mask
    for wh in range(H // ws):
        for ww in range(W // ws):
            hs = slice(wh * ws, (wh + 1) * ws)
            wsl = slice(ww * ws, (ww + 1) * ws)
            qw = q[hs, wsl, :].reshape(N, C)
            kw = k[hs, wsl, :].reshape(N, C)
            vw = v[hs, wsl, :].reshape(N, C)
            # torch softmax(dim=-2): over tokens, independently per channel
            kw = kw - jnp.max(kw, axis=0, keepdims=True)
            ek = jnp.exp(kw)
            kw = ek / jnp.sum(ek, axis=0, keepdims=True)
            # per-head k_h^T v_h realised as one (C, C) MXU contraction over
            # tokens, masked to the block-diagonal (within-head) entries.
            attn = lax.dot_general(kw, vw, (((0,), (0,)), ((), ())),
                                   preferred_element_type=jnp.float32) * mask
            ow = jnp.dot(qw, attn, preferred_element_type=jnp.float32)  # (N, C)
            # window_reverse: aligned static-slice store into the image scratch
            att_ref[hs, wsl, :] = ow.reshape(ws, ws, C)

    # proj is per-token, so it commutes with window_reverse -> one big matmul
    att = jnp.dot(att_ref[...].reshape(H * W, C), wproj_ref[...],
                  preferred_element_type=jnp.float32) + bproj_ref[0]
    att = att.reshape(H, W, C) + local                      # attn out + local

    # ---------------- MLP residual (per-token, done in the shifted frame) ---
    t = att.reshape(H * W, C)
    h1 = jnp.dot(t, wfc1_ref[...], preferred_element_type=jnp.float32) + bfc1_ref[0]
    h1 = _gelu(h1)
    t2 = jnp.dot(h1, wfc2_ref[...], preferred_element_type=jnp.float32) + bfc2_ref[0]
    o_ref[0] = (t + t2).reshape(H, W, C)


def swin_block(x_nhwc, p, head_mask, *, window_size, num_heads):
    B, H, W, C = x_nhwc.shape
    scale = float((C // num_heads) ** (-0.5))
    kernel = functools.partial(swin_block_kernel, ws=window_size, scale=scale)

    def full(a):
        return pl.BlockSpec(a.shape, lambda b: (0,) * a.ndim)

    weights = (p['bn0_scale'], p['bn0_bias'], p['w0'], p['dw'],
               p['bn1_scale'], p['bn1_bias'], p['w1'],
               p['wqkv'], p['bqkv'], p['wproj'], p['bproj'], head_mask,
               p['w_fc1'], p['b_fc1'], p['w_fc2'], p['b_fc2'])
    return pl.pallas_call(
        kernel,
        out_shape=jax.ShapeDtypeStruct((B, H, W, C), jnp.float32),
        grid=(B,),
        in_specs=[pl.BlockSpec((1, H, W, C), lambda b: (b, 0, 0, 0))]
                 + [full(a) for a in weights],
        out_specs=pl.BlockSpec((1, H, W, C), lambda b: (b, 0, 0, 0)),
        scratch_shapes=[pltpu.VMEM((H + 2, W + 16, C), jnp.float32),   # dw-conv pad
                        pltpu.VMEM((H, W, C), jnp.float32)],           # attn image
        compiler_params=pltpu.CompilerParams(
            dimension_semantics=("parallel",),
            vmem_limit_bytes=32 * 1024 * 1024),
    )(x_nhwc, *weights)


# --------------------------------------------------------------------------
# BasicLayer forward: reflect-pad -> NHWC -> depth x fused swin block -> NCHW
# (cyclic shift for odd blocks handled by cheap XLA rolls around the kernel)
# --------------------------------------------------------------------------
def basic_layer_forward(x, params, *, window_size, num_heads, depth):
    # x: (B, C, H, W) float32  (NCHW, like the PyTorch module)
    B, C, h, w = x.shape
    ws = window_size
    mh = (ws - h % ws) % ws
    mw = (ws - w % ws) % ws
    if mh or mw:
        x = jnp.pad(x, ((0, 0), (0, 0), (0, mh), (0, mw)), mode='reflect')
    H, W = x.shape[2], x.shape[3]

    d = C // num_heads
    head_mask = (jnp.arange(C)[:, None] // d ==
                 jnp.arange(C)[None, :] // d).astype(jnp.float32)    # (C, C)

    xh = jnp.transpose(x, (0, 2, 3, 1))                      # patch_embed (NHWC)
    for i in range(depth):
        shift = 0 if i % 2 == 0 else ws // 2
        if shift:
            xh = jnp.roll(xh, (-shift, -shift), axis=(1, 2))
        xh = swin_block(xh, params['blocks'][i], head_mask,
                        window_size=ws, num_heads=num_heads)
        if shift:
            xh = jnp.roll(xh, (shift, shift), axis=(1, 2))
    x = jnp.transpose(xh, (0, 3, 1, 2))                      # patch_unembed
    if mh or mw:
        x = x[:, :, :h, :w]
    return x


# --------------------------------------------------------------------------
# Deterministic parameter initialisation (shapes per the torch __init__)
# --------------------------------------------------------------------------
def init_params(key, C, num_heads, depth, mlp_ratio=1.0):
    hidden = int(C * mlp_ratio)
    eps = 1e-5
    blocks = []
    for _ in range(depth):
        key, *ks = jax.random.split(key, 20)

        def nrm(k, shape, s=0.2):
            return s * jax.random.normal(k, shape, dtype=jnp.float32)

        g0 = 1.0 + nrm(ks[0], (C,), 0.1); b0 = nrm(ks[1], (C,), 0.1)
        m0 = nrm(ks[2], (C,), 0.1)
        v0 = 1.0 + 0.1 * jnp.abs(jax.random.normal(ks[3], (C,), dtype=jnp.float32))
        s0 = g0 / jnp.sqrt(v0 + eps)
        g1 = 1.0 + nrm(ks[4], (C,), 0.1); b1 = nrm(ks[5], (C,), 0.1)
        m1 = nrm(ks[6], (C,), 0.1)
        v1 = 1.0 + 0.1 * jnp.abs(jax.random.normal(ks[7], (C,), dtype=jnp.float32))
        s1 = g1 / jnp.sqrt(v1 + eps)

        blocks.append(dict(
            bn0_scale=s0.reshape(1, C), bn0_bias=(b0 - m0 * s0).reshape(1, C),
            w0=nrm(ks[8], (C, C)),              # pointwise_conv_0 weight^T (Cin, Cout)
            dw=nrm(ks[9], (9, C)),              # depthwise 3x3 weights, (ky*3+kx, C)
            bn1_scale=s1.reshape(1, C), bn1_bias=(b1 - m1 * s1).reshape(1, C),
            w1=nrm(ks[10], (C, C)),             # pointwise_conv_1 weight^T
            wqkv=nrm(ks[11], (C, 3 * C)), bqkv=nrm(ks[12], (1, 3 * C), 0.1),
            wproj=nrm(ks[13], (C, C)), bproj=nrm(ks[14], (1, C), 0.1),
            w_fc1=nrm(ks[15], (C, hidden)), b_fc1=nrm(ks[16], (1, hidden), 0.1),
            w_fc2=nrm(ks[17], (hidden, C)), b_fc2=nrm(ks[18], (1, C), 0.1),
        ))
    return {'blocks': blocks}


if __name__ == "__main__":
    dim, num_heads, window_size, depth = 16, 8, 8, 2
    B, H, W = 2, 16, 16

    key = jax.random.PRNGKey(0)
    kx, kp = jax.random.split(key)
    x = jax.random.normal(kx, (B, dim, H, W), dtype=jnp.float32)
    params = init_params(kp, dim, num_heads, depth, mlp_ratio=1.0)

    fwd = jax.jit(functools.partial(basic_layer_forward, window_size=window_size,
                                    num_heads=num_heads, depth=depth))
    out = jax.block_until_ready(fwd(x, params))

    assert out.shape == (B, dim, H, W), out.shape
    assert bool(jnp.all(jnp.isfinite(out)))
    print("KERNEL_OK")
</pallas_src>

<mosaic_0001>
module attributes {stable_mosaic.version = 11 : i64} {
  func.func @swin_block_kernel(%arg0: i32, %arg1: memref<1x16x16x16xf32, #tpu.memory_space<vmem>>, %arg2: memref<1x16xf32, #tpu.memory_space<vmem>>, %arg3: memref<1x16xf32, #tpu.memory_space<vmem>>, %arg4: memref<16x16xf32, #tpu.memory_space<vmem>>, %arg5: memref<9x16xf32, #tpu.memory_space<vmem>>, %arg6: memref<1x16xf32, #tpu.memory_space<vmem>>, %arg7: memref<1x16xf32, #tpu.memory_space<vmem>>, %arg8: memref<16x16xf32, #tpu.memory_space<vmem>>, %arg9: memref<16x48xf32, #tpu.memory_space<vmem>>, %arg10: memref<1x48xf32, #tpu.memory_space<vmem>>, %arg11: memref<16x16xf32, #tpu.memory_space<vmem>>, %arg12: memref<1x16xf32, #tpu.memory_space<vmem>>, %arg13: memref<16x16xf32, #tpu.memory_space<vmem>>, %arg14: memref<16x16xf32, #tpu.memory_space<vmem>>, %arg15: memref<1x16xf32, #tpu.memory_space<vmem>>, %arg16: memref<16x16xf32, #tpu.memory_space<vmem>>, %arg17: memref<1x16xf32, #tpu.memory_space<vmem>>, %arg18: memref<1x16x16x16xf32, #tpu.memory_space<vmem>>, %arg19: memref<18x32x16xf32, #tpu.memory_space<vmem>>, %arg20: memref<16x16x16xf32, #tpu.memory_space<vmem>>) attributes {dimension_semantics = [#tpu.dimension_semantics<parallel>], iteration_bounds = array<i64: 2>, scalar_prefetch = 0 : i64, scratch_operands = 2 : i64, tpu.core_type = #tpu.core_type<tc>, window_params = [{transform_indices = @transform_0, window_bounds = array<i64: 1, 16, 16, 16>}, {pipeline_mode = #tpu.pipeline_mode<synchronous>, transform_indices = @transform_1, window_bounds = array<i64: 1, 16>}, {pipeline_mode = #tpu.pipeline_mode<synchronous>, transform_indices = @transform_2, window_bounds = array<i64: 1, 16>}, {pipeline_mode = #tpu.pipeline_mode<synchronous>, transform_indices = @transform_3, window_bounds = array<i64: 16, 16>}, {pipeline_mode = #tpu.pipeline_mode<synchronous>, transform_indices = @transform_4, window_bounds = array<i64: 9, 16>}, {pipeline_mode = #tpu.pipeline_mode<synchronous>, transform_indices = @transform_5, window_bounds = array<i64: 1, 16>}, {pipeline_mode = #tpu.pipeline_mode<synchronous>, transform_indices = @transform_6, window_bounds = array<i64: 1, 16>}, {pipeline_mode = #tpu.pipeline_mode<synchronous>, transform_indices = @transform_7, window_bounds = array<i64: 16, 16>}, {pipeline_mode = #tpu.pipeline_mode<synchronous>, transform_indices = @transform_8, window_bounds = array<i64: 16, 48>}, {pipeline_mode = #tpu.pipeline_mode<synchronous>, transform_indices = @transform_9, window_bounds = array<i64: 1, 48>}, {pipeline_mode = #tpu.pipeline_mode<synchronous>, transform_indices = @transform_10, window_bounds = array<i64: 16, 16>}, {pipeline_mode = #tpu.pipeline_mode<synchronous>, transform_indices = @transform_11, window_bounds = array<i64: 1, 16>}, {pipeline_mode = #tpu.pipeline_mode<synchronous>, transform_indices = @transform_12, window_bounds = array<i64: 16, 16>}, {pipeline_mode = #tpu.pipeline_mode<synchronous>, transform_indices = @transform_13, window_bounds = array<i64: 16, 16>}, {pipeline_mode = #tpu.pipeline_mode<synchronous>, transform_indices = @transform_14, window_bounds = array<i64: 1, 16>}, {pipeline_mode = #tpu.pipeline_mode<synchronous>, transform_indices = @transform_15, window_bounds = array<i64: 16, 16>}, {pipeline_mode = #tpu.pipeline_mode<synchronous>, transform_indices = @transform_16, window_bounds = array<i64: 1, 16>}, {transform_indices = @transform_17, window_bounds = array<i64: 1, 16, 16, 16>}]} {
    %c0 = arith.constant 0 : index
    %c0_0 = arith.constant 0 : index
    %c0_1 = arith.constant 0 : index
    %c0_2 = arith.constant 0 : index
    %0 = vector.load %arg1[%c0, %c0_0, %c0_1, %c0_2] : memref<1x16x16x16xf32, #tpu.memory_space<vmem>>, vector<1x16x16x16xf32>
    %1 = vector.shape_cast %0 : vector<1x16x16x16xf32> to vector<16x16x16xf32>
    %c0_3 = arith.constant 0 : index
    %c0_4 = arith.constant 0 : index
    %2 = vector.load %arg2[%c0_3, %c0_4] : memref<1x16xf32, #tpu.memory_space<vmem>>, vector<1x16xf32>
    %3 = vector.shape_cast %2 : vector<1x16xf32> to vector<16xf32>
    %4 = vector.shape_cast %3 : vector<16xf32> to vector<1x1x16xf32>
    %5 = vector.broadcast %4 : vector<1x1x16xf32> to vector<16x16x16xf32>
    %6 = arith.mulf %1, %5 : vector<16x16x16xf32>
    %c0_5 = arith.constant 0 : index
    %c0_6 = arith.constant 0 : index
    %7 = vector.load %arg3[%c0_5, %c0_6] : memref<1x16xf32, #tpu.memory_space<vmem>>, vector<1x16xf32>
    %8 = vector.shape_cast %7 : vector<1x16xf32> to vector<16xf32>
    %9 = vector.shape_cast %8 : vector<16xf32> to vector<1x1x16xf32>
    %10 = vector.broadcast %9 : vector<1x1x16xf32> to vector<16x16x16xf32>
    %11 = arith.addf %6, %10 : vector<16x16x16xf32>
    %12 = vector.shape_cast %11 : vector<16x16x16xf32> to vector<256x16xf32>
    %c0_7 = arith.constant 0 : index
    %c0_8 = arith.constant 0 : index
    %13 = vector.load %arg4[%c0_7, %c0_8] : memref<16x16xf32, #tpu.memory_space<vmem>>, vector<16x16xf32>
    %cst = arith.constant dense<0.000000e+00> : vector<256x16xf32>
    %14 = tpu.matmul %12, %13, %cst {dimension_numbers = #tpu.dot_dimension_numbers<[1], [0], [0], [1], [0, 0, 1, 1], [], []>} : vector<256x16xf32>, vector<16x16xf32>, vector<256x16xf32> -> vector<256x16xf32>
    %15 = vector.shape_cast %14 : vector<256x16xf32> to vector<16x16x16xf32>
    %cst_9 = arith.constant 0.000000e+00 : f32
    %16 = vector.broadcast %cst_9 : f32 to vector<18x32x16xf32>
    %c0_10 = arith.constant 0 : index
    %c0_11 = arith.constant 0 : index
    %c0_12 = arith.constant 0 : index
    %17 = vector.load %arg19[%c0_10, %c0_11, %c0_12] : memref<18x32x16xf32, #tpu.memory_space<vmem>>, vector<18x32x16xf32>
    tpu.vector_store %arg19[%c0_10, %c0_11, %c0_12], %16 {strides = array<i32>} : memref<18x32x16xf32, #tpu.memory_space<vmem>>, vector<18x32x16xf32>,
    %c1 = arith.constant 1 : index
    %c8 = arith.constant 8 : index
    %c0_13 = arith.constant 0 : index
    %18 = vector.load %arg19[%c1, %c8, %c0_13] : memref<18x32x16xf32, #tpu.memory_space<vmem>>, vector<16x16x16xf32>
    tpu.vector_store %arg19[%c1, %c8, %c0_13], %15 {strides = array<i32>} : memref<18x32x16xf32, #tpu.memory_space<vmem>>, vector<16x16x16xf32>,
    %cst_14 = arith.constant 0.000000e+00 : f32
    %19 = vector.broadcast %cst_14 : f32 to vector<16x16x16xf32>
    %c0_15 = arith.constant 0 : index
    %c7 = arith.constant 7 : index
    %c0_16 = arith.constant 0 : index
    %20 = vector.load %arg19[%c0_15, %c7, %c0_16] : memref<18x32x16xf32, #tpu.memory_space<vmem>>, vector<16x16x16xf32>
    %c0_17 = arith.constant 0 : index
    %c0_18 = arith.constant 0 : index
    %21 = vector.load %arg5[%c0_17, %c0_18] : memref<9x16xf32, #tpu.memory_space<vmem>>, vector<1x16xf32>
    %22 = vector.shape_cast %21 : vector<1x16xf32> to vector<16xf32>
    %23 = vector.shape_cast %22 : vector<16xf32> to vector<1x1x16xf32>
    %24 = vector.broadcast %23 : vector<1x1x16xf32> to vector<16x16x16xf32>
    %25 = arith.mulf %20, %24 : vector<16x16x16xf32>
    %26 = arith.addf %19, %25 : vector<16x16x16xf32>
    %c0_19 = arith.constant 0 : index
    %c8_20 = arith.constant 8 : index
    %c0_21 = arith.constant 0 : index
    %27 = vector.load %arg19[%c0_19, %c8_20, %c0_21] : memref<18x32x16xf32, #tpu.memory_space<vmem>>, vector<16x16x16xf32>
    %c1_22 = arith.constant 1 : index
    %c0_23 = arith.constant 0 : index
    %28 = vector.load %arg5[%c1_22, %c0_23] : memref<9x16xf32, #tpu.memory_space<vmem>>, vector<1x16xf32>
    %29 = vector.shape_cast %28 : vector<1x16xf32> to vector<16xf32>
    %30 = vector.shape_cast %29 : vector<16xf32> to vector<1x1x16xf32>
    %31 = vector.broadcast %30 : vector<1x1x16xf32> to vector<16x16x16xf32>
    %32 = arith.mulf %27, %31 : vector<16x16x16xf32>
    %33 = arith.addf %26, %32 : vector<16x16x16xf32>
    %c0_24 = arith.constant 0 : index
    %c9 = arith.constant 9 : index
    %c0_25 = arith.constant 0 : index
    %34 = vector.load %arg19[%c0_24, %c9, %c0_25] : memref<18x32x16xf32, #tpu.memory_space<vmem>>, vector<16x16x16xf32>
    %c2 = arith.constant 2 : index
    %c0_26 = arith.constant 0 : index
    %35 = vector.load %arg5[%c2, %c0_26] : memref<9x16xf32, #tpu.memory_space<vmem>>, vector<1x16xf32>
    %36 = vector.shape_cast %35 : vector<1x16xf32> to vector<16xf32>
    %37 = vector.shape_cast %36 : vector<16xf32> to vector<1x1x16xf32>
    %38 = vector.broadcast %37 : vector<1x1x16xf32> to vector<16x16x16xf32>
    %39 = arith.mulf %34, %38 : vector<16x16x16xf32>
    %40 = arith.addf %33, %39 : vector<16x16x16xf32>
    %c1_27 = arith.constant 1 : index
    %c7_28 = arith.constant 7 : index
    %c0_29 = arith.constant 0 : index
    %41 = vector.load %arg19[%c1_27, %c7_28, %c0_29] : memref<18x32x16xf32, #tpu.memory_space<vmem>>, vector<16x16x16xf32>
    %c3 = arith.constant 3 : index
    %c0_30 = arith.constant 0 : index
    %42 = vector.load %arg5[%c3, %c0_30] : memref<9x16xf32, #tpu.memory_space<vmem>>, vector<1x16xf32>
    %43 = vector.shape_cast %42 : vector<1x16xf32> to vector<16xf32>
    %44 = vector.shape_cast %43 : vector<16xf32> to vector<1x1x16xf32>
    %45 = vector.broadcast %44 : vector<1x1x16xf32> to vector<16x16x16xf32>
    %46 = arith.mulf %41, %45 : vector<16x16x16xf32>
    %47 = arith.addf %40, %46 : vector<16x16x16xf32>
    %c1_31 = arith.constant 1 : index
    %c8_32 = arith.constant 8 : index
    %c0_33 = arith.constant 0 : index
    %48 = vector.load %arg19[%c1_31, %c8_32, %c0_33] : memref<18x32x16xf32, #tpu.memory_space<vmem>>, vector<16x16x16xf32>
    %c4 = arith.constant 4 : index
    %c0_34 = arith.constant 0 : index
    %49 = vector.load %arg5[%c4, %c0_34] : memref<9x16xf32, #tpu.memory_space<vmem>>, vector<1x16xf32>
    %50 = vector.shape_cast %49 : vector<1x16xf32> to vector<16xf32>
    %51 = vector.shape_cast %50 : vector<16xf32> to vector<1x1x16xf32>
    %52 = vector.broadcast %51 : vector<1x1x16xf32> to vector<16x16x16xf32>
    %53 = arith.mulf %48, %52 : vector<16x16x16xf32>
    %54 = arith.addf %47, %53 : vector<16x16x16xf32>
    %c1_35 = arith.constant 1 : index
    %c9_36 = arith.constant 9 : index
    %c0_37 = arith.constant 0 : index
    %55 = vector.load %arg19[%c1_35, %c9_36, %c0_37] : memref<18x32x16xf32, #tpu.memory_space<vmem>>, vector<16x16x16xf32>
    %c5 = arith.constant 5 : index
    %c0_38 = arith.constant 0 : index
    %56 = vector.load %arg5[%c5, %c0_38] : memref<9x16xf32, #tpu.memory_space<vmem>>, vector<1x16xf32>
    %57 = vector.shape_cast %56 : vector<1x16xf32> to vector<16xf32>
    %58 = vector.shape_cast %57 : vector<16xf32> to vector<1x1x16xf32>
    %59 = vector.broadcast %58 : vector<1x1x16xf32> to vector<16x16x16xf32>
    %60 = arith.mulf %55, %59 : vector<16x16x16xf32>
    %61 = arith.addf %54, %60 : vector<16x16x16xf32>
    %c2_39 = arith.constant 2 : index
    %c7_40 = arith.constant 7 : index
    %c0_41 = arith.constant 0 : index
    %62 = vector.load %arg19[%c2_39, %c7_40, %c0_41] : memref<18x32x16xf32, #tpu.memory_space<vmem>>, vector<16x16x16xf32>
    %c6 = arith.constant 6 : index
    %c0_42 = arith.constant 0 : index
    %63 = vector.load %arg5[%c6, %c0_42] : memref<9x16xf32, #tpu.memory_space<vmem>>, vector<1x16xf32>
    %64 = vector.shape_cast %63 : vector<1x16xf32> to vector<16xf32>
    %65 = vector.shape_cast %64 : vector<16xf32> to vector<1x1x16xf32>
    %66 = vector.broadcast %65 : vector<1x1x16xf32> to vector<16x16x16xf32>
    %67 = arith.mulf %62, %66 : vector<16x16x16xf32>
    %68 = arith.addf %61, %67 : vector<16x16x16xf32>
    %c2_43 = arith.constant 2 : index
    %c8_44 = arith.constant 8 : index
    %c0_45 = arith.constant 0 : index
    %69 = vector.load %arg19[%c2_43, %c8_44, %c0_45] : memref<18x32x16xf32, #tpu.memory_space<vmem>>, vector<16x16x16xf32>
    %c7_46 = arith.constant 7 : index
    %c0_47 = arith.constant 0 : index
    %70 = vector.load %arg5[%c7_46, %c0_47] : memref<9x16xf32, #tpu.memory_space<vmem>>, vector<1x16xf32>
    %71 = vector.shape_cast %70 : vector<1x16xf32> to vector<16xf32>
    %72 = vector.shape_cast %71 : vector<16xf32> to vector<1x1x16xf32>
    %73 = vector.broadcast %72 : vector<1x1x16xf32> to vector<16x16x16xf32>
    %74 = arith.mulf %69, %73 : vector<16x16x16xf32>
    %75 = arith.addf %68, %74 : vector<16x16x16xf32>
    %c2_48 = arith.constant 2 : index
    %c9_49 = arith.constant 9 : index
    %c0_50 = arith.constant 0 : index
    %76 = vector.load %arg19[%c2_48, %c9_49, %c0_50] : memref<18x32x16xf32, #tpu.memory_space<vmem>>, vector<16x16x16xf32>
    %c8_51 = arith.constant 8 : index
    %c0_52 = arith.constant 0 : index
    %77 = vector.load %arg5[%c8_51, %c0_52] : memref<9x16xf32, #tpu.memory_space<vmem>>, vector<1x16xf32>
    %78 = vector.shape_cast %77 : vector<1x16xf32> to vector<16xf32>
    %79 = vector.shape_cast %78 : vector<16xf32> to vector<1x1x16xf32>
    %80 = vector.broadcast %79 : vector<1x1x16xf32> to vector<16x16x16xf32>
    %81 = arith.mulf %76, %80 : vector<16x16x16xf32>
    %82 = arith.addf %75, %81 : vector<16x16x16xf32>
    %c0_53 = arith.constant 0 : index
    %c0_54 = arith.constant 0 : index
    %83 = vector.load %arg6[%c0_53, %c0_54] : memref<1x16xf32, #tpu.memory_space<vmem>>, vector<1x16xf32>
    %84 = vector.shape_cast %83 : vector<1x16xf32> to vector<16xf32>
    %85 = vector.shape_cast %84 : vector<16xf32> to vector<1x1x16xf32>
    %86 = vector.broadcast %85 : vector<1x1x16xf32> to vector<16x16x16xf32>
    %87 = arith.mulf %82, %86 : vector<16x16x16xf32>
    %c0_55 = arith.constant 0 : index
    %c0_56 = arith.constant 0 : index
    %88 = vector.load %arg7[%c0_55, %c0_56] : memref<1x16xf32, #tpu.memory_space<vmem>>, vector<1x16xf32>
    %89 = vector.shape_cast %88 : vector<1x16xf32> to vector<16xf32>
    %90 = vector.shape_cast %89 : vector<16xf32> to vector<1x1x16xf32>
    %91 = vector.broadcast %90 : vector<1x1x16xf32> to vector<16x16x16xf32>
    %92 = arith.addf %87, %91 : vector<16x16x16xf32>
    %93 = vector.shape_cast %92 : vector<16x16x16xf32> to vector<256x16xf32>
    %c0_57 = arith.constant 0 : index
    %c0_58 = arith.constant 0 : index
    %94 = vector.load %arg8[%c0_57, %c0_58] : memref<16x16xf32, #tpu.memory_space<vmem>>, vector<16x16xf32>
    %cst_59 = arith.constant dense<0.000000e+00> : vector<256x16xf32>
    %95 = tpu.matmul %93, %94, %cst_59 {dimension_numbers = #tpu.dot_dimension_numbers<[1], [0], [0], [1], [0, 0, 1, 1], [], []>} : vector<256x16xf32>, vector<16x16xf32>, vector<256x16xf32> -> vector<256x16xf32>
    %96 = vector.shape_cast %95 : vector<256x16xf32> to vector<16x16x16xf32>
    %97 = arith.addf %96, %1 : vector<16x16x16xf32>
    %98 = vector.shape_cast %97 : vector<16x16x16xf32> to vector<256x16xf32>
    %c0_60 = arith.constant 0 : index
    %c0_61 = arith.constant 0 : index
    %99 = vector.load %arg9[%c0_60, %c0_61] : memref<16x48xf32, #tpu.memory_space<vmem>>, vector<16x48xf32>
    %cst_62 = arith.constant dense<0.000000e+00> : vector<256x48xf32>
    %100 = tpu.matmul %98, %99, %cst_62 {dimension_numbers = #tpu.dot_dimension_numbers<[1], [0], [0], [1], [0, 0, 1, 1], [], []>} : vector<256x16xf32>, vector<16x48xf32>, vector<256x48xf32> -> vector<256x48xf32>
    %c0_63 = arith.constant 0 : index
    %c0_64 = arith.constant 0 : index
    %101 = vector.load %arg10[%c0_63, %c0_64] : memref<1x48xf32, #tpu.memory_space<vmem>>, vector<1x48xf32>
    %102 = vector.shape_cast %101 : vector<1x48xf32> to vector<48xf32>
    %103 = vector.shape_cast %102 : vector<48xf32> to vector<1x48xf32>
    %104 = vector.broadcast %103 : vector<1x48xf32> to vector<256x48xf32>
    %105 = arith.addf %100, %104 : vector<256x48xf32>
    %106 = vector.shape_cast %105 : vector<256x48xf32> to vector<16x16x48xf32>
    %107 = vector.extract_strided_slice %106 {offsets = [0, 0, 0], sizes = [16, 16, 16], strides = [1, 1, 1]} : vector<16x16x48xf32> to vector<16x16x16xf32>
    %cst_65 = arith.constant 0.707106769 : f32
    %108 = vector.broadcast %cst_65 : f32 to vector<16x16x16xf32>
    %109 = arith.mulf %107, %108 : vector<16x16x16xf32>
    %110 = vector.extract_strided_slice %106 {offsets = [0, 0, 16], sizes = [16, 16, 16], strides = [1, 1, 1]} : vector<16x16x48xf32> to vector<16x16x16xf32>
    %111 = vector.extract_strided_slice %106 {offsets = [0, 0, 32], sizes = [16, 16, 16], strides = [1, 1, 1]} : vector<16x16x48xf32> to vector<16x16x16xf32>
    %c0_66 = arith.constant 0 : index
    %c0_67 = arith.constant 0 : index
    %112 = vector.load %arg13[%c0_66, %c0_67] : memref<16x16xf32, #tpu.memory_space<vmem>>, vector<16x16xf32>
    %113 = vector.extract_strided_slice %109 {offsets = [0, 0, 0], sizes = [8, 8, 16], strides = [1, 1, 1]} : vector<16x16x16xf32> to vector<8x8x16xf32>
    %114 = vector.shape_cast %113 : vector<8x8x16xf32> to vector<64x16xf32>
    %115 = vector.extract_strided_slice %110 {offsets = [0, 0, 0], sizes = [8, 8, 16], strides = [1, 1, 1]} : vector<16x16x16xf32> to vector<8x8x16xf32>
    %116 = vector.shape_cast %115 : vector<8x8x16xf32> to vector<64x16xf32>
    %117 = vector.extract_strided_slice %111 {offsets = [0, 0, 0], sizes = [8, 8, 16], strides = [1, 1, 1]} : vector<16x16x16xf32> to vector<8x8x16xf32>
    %118 = vector.shape_cast %117 : vector<8x8x16xf32> to vector<64x16xf32>
    %cst_68 = arith.constant dense<0xFF800000> : vector<16xf32>
    %119 = vector.multi_reduction <maximumf>, %116, %cst_68 [0] : vector<64x16xf32> to vector<16xf32>
    %120 = vector.shape_cast %119 : vector<16xf32> to vector<1x16xf32>
    %121 = vector.broadcast %120 : vector<1x16xf32> to vector<64x16xf32>
    %122 = arith.subf %116, %121 : vector<64x16xf32>
    %123 = math.exp %122 : vector<64x16xf32>
    %cst_69 = arith.constant dense<0.000000e+00> : vector<16xf32>
    %124 = vector.multi_reduction <add>, %123, %cst_69 [0] : vector<64x16xf32> to vector<16xf32>
    %125 = vector.shape_cast %124 : vector<16xf32> to vector<1x16xf32>
    %126 = vector.broadcast %125 : vector<1x16xf32> to vector<64x16xf32>
    %127 = arith.divf %123, %126 : vector<64x16xf32>
    %cst_70 = arith.constant dense<0.000000e+00> : vector<16x16xf32>
    %128 = tpu.matmul %127, %118, %cst_70 {dimension_numbers = #tpu.dot_dimension_numbers<[0], [0], [1], [1], [0, 1, 1, 1], [], []>} : vector<64x16xf32>, vector<64x16xf32>, vector<16x16xf32> -> vector<16x16xf32>
    %129 = arith.mulf %128, %112 : vector<16x16xf32>
    %cst_71 = arith.constant dense<0.000000e+00> : vector<64x16xf32>
    %130 = tpu.matmul %114, %129, %cst_71 {dimension_numbers = #tpu.dot_dimension_numbers<[1], [0], [0], [1], [0, 0, 1, 1], [], []>} : vector<64x16xf32>, vector<16x16xf32>, vector<64x16xf32> -> vector<64x16xf32>
    %131 = vector.shape_cast %130 : vector<64x16xf32> to vector<8x8x16xf32>
    %c0_72 = arith.constant 0 : index
    %c0_73 = arith.constant 0 : index
    %c0_74 = arith.constant 0 : index
    %132 = vector.load %arg20[%c0_72, %c0_73, %c0_74] : memref<16x16x16xf32, #tpu.memory_space<vmem>>, vector<8x8x16xf32>
    tpu.vector_store %arg20[%c0_72, %c0_73, %c0_74], %131 {strides = array<i32>} : memref<16x16x16xf32, #tpu.memory_space<vmem>>, vector<8x8x16xf32>,
    %133 = vector.extract_strided_slice %109 {offsets = [0, 8, 0], sizes = [8, 8, 16], strides = [1, 1, 1]} : vector<16x16x16xf32> to vector<8x8x16xf32>
    %134 = vector.shape_cast %133 : vector<8x8x16xf32> to vector<64x16xf32>
    %135 = vector.extract_strided_slice %110 {offsets = [0, 8, 0], sizes = [8, 8, 16], strides = [1, 1, 1]} : vector<16x16x16xf32> to vector<8x8x16xf32>
    %136 = vector.shape_cast %135 : vector<8x8x16xf32> to vector<64x16xf32>
    %137 = vector.extract_strided_slice %111 {offsets = [0, 8, 0], sizes = [8, 8, 16], strides = [1, 1, 1]} : vector<16x16x16xf32> to vector<8x8x16xf32>
    %138 = vector.shape_cast %137 : vector<8x8x16xf32> to vector<64x16xf32>
    %cst_75 = arith.constant dense<0xFF800000> : vector<16xf32>
    %139 = vector.multi_reduction <maximumf>, %136, %cst_75 [0] : vector<64x16xf32> to vector<16xf32>
    %140 = vector.shape_cast %139 : vector<16xf32> to vector<1x16xf32>
    %141 = vector.broadcast %140 : vector<1x16xf32> to vector<64x16xf32>
    %142 = arith.subf %136, %141 : vector<64x16xf32>
    %143 = math.exp %142 : vector<64x16xf32>
    %cst_76 = arith.constant dense<0.000000e+00> : vector<16xf32>
    %144 = vector.multi_reduction <add>, %143, %cst_76 [0] : vector<64x16xf32> to vector<16xf32>
    %145 = vector.shape_cast %144 : vector<16xf32> to vector<1x16xf32>
    %146 = vector.broadcast %145 : vector<1x16xf32> to vector<64x16xf32>
    %147 = arith.divf %143, %146 : vector<64x16xf32>
    %cst_77 = arith.constant dense<0.000000e+00> : vector<16x16xf32>
    %148 = tpu.matmul %147, %138, %cst_77 {dimension_numbers = #tpu.dot_dimension_numbers<[0], [0], [1], [1], [0, 1, 1, 1], [], []>} : vector<64x16xf32>, vector<64x16xf32>, vector<16x16xf32> -> vector<16x16xf32>
    %149 = arith.mulf %148, %112 : vector<16x16xf32>
    %cst_78 = arith.constant dense<0.000000e+00> : vector<64x16xf32>
    %150 = tpu.matmul %134, %149, %cst_78 {dimension_numbers = #tpu.dot_dimension_numbers<[1], [0], [0], [1], [0, 0, 1, 1], [], []>} : vector<64x16xf32>, vector<16x16xf32>, vector<64x16xf32> -> vector<64x16xf32>
    %151 = vector.shape_cast %150 : vector<64x16xf32> to vector<8x8x16xf32>
    %c0_79 = arith.constant 0 : index
    %c8_80 = arith.constant 8 : index
    %c0_81 = arith.constant 0 : index
    %152 = vector.load %arg20[%c0_79, %c8_80, %c0_81] : memref<16x16x16xf32, #tpu.memory_space<vmem>>, vector<8x8x16xf32>
    tpu.vector_store %arg20[%c0_79, %c8_80, %c0_81], %151 {strides = array<i32>} : memref<16x16x16xf32, #tpu.memory_space<vmem>>, vector<8x8x16xf32>,
    %153 = vector.extract_strided_slice %109 {offsets = [8, 0, 0], sizes = [8, 8, 16], strides = [1, 1, 1]} : vector<16x16x16xf32> to vector<8x8x16xf32>
    %154 = vector.shape_cast %153 : vector<8x8x16xf32> to vector<64x16xf32>
    %155 = vector.extract_strided_slice %110 {offsets = [8, 0, 0], sizes = [8, 8, 16], strides = [1, 1, 1]} : vector<16x16x16xf32> to vector<8x8x16xf32>
    %156 = vector.shape_cast %155 : vector<8x8x16xf32> to vector<64x16xf32>
    %157 = vector.extract_strided_slice %111 {offsets = [8, 0, 0], sizes = [8, 8, 16], strides = [1, 1, 1]} : vector<16x16x16xf32> to vector<8x8x16xf32>
    %158 = vector.shape_cast %157 : vector<8x8x16xf32> to vector<64x16xf32>
    %cst_82 = arith.constant dense<0xFF800000> : vector<16xf32>
    %159 = vector.multi_reduction <maximumf>, %156, %cst_82 [0] : vector<64x16xf32> to vector<16xf32>
    %160 = vector.shape_cast %159 : vector<16xf32> to vector<1x16xf32>
    %161 = vector.broadcast %160 : vector<1x16xf32> to vector<64x16xf32>
    %162 = arith.subf %156, %161 : vector<64x16xf32>
    %163 = math.exp %162 : vector<64x16xf32>
    %cst_83 = arith.constant dense<0.000000e+00> : vector<16xf32>
    %164 = vector.multi_reduction <add>, %163, %cst_83 [0] : vector<64x16xf32> to vector<16xf32>
    %165 = vector.shape_cast %164 : vector<16xf32> to vector<1x16xf32>
    %166 = vector.broadcast %165 : vector<1x16xf32> to vector<64x16xf32>
    %167 = arith.divf %163, %166 : vector<64x16xf32>
    %cst_84 = arith.constant dense<0.000000e+00> : vector<16x16xf32>
    %168 = tpu.matmul %167, %158, %cst_84 {dimension_numbers = #tpu.dot_dimension_numbers<[0], [0], [1], [1], [0, 1, 1, 1], [], []>} : vector<64x16xf32>, vector<64x16xf32>, vector<16x16xf32> -> vector<16x16xf32>
    %169 = arith.mulf %168, %112 : vector<16x16xf32>
    %cst_85 = arith.constant dense<0.000000e+00> : vector<64x16xf32>
    %170 = tpu.matmul %154, %169, %cst_85 {dimension_numbers = #tpu.dot_dimension_numbers<[1], [0], [0], [1], [0, 0, 1, 1], [], []>} : vector<64x16xf32>, vector<16x16xf32>, vector<64x16xf32> -> vector<64x16xf32>
    %171 = vector.shape_cast %170 : vector<64x16xf32> to vector<8x8x16xf32>
    %c8_86 = arith.constant 8 : index
    %c0_87 = arith.constant 0 : index
    %c0_88 = arith.constant 0 : index
    %172 = vector.load %arg20[%c8_86, %c0_87, %c0_88] : memref<16x16x16xf32, #tpu.memory_space<vmem>>, vector<8x8x16xf32>
    tpu.vector_store %arg20[%c8_86, %c0_87, %c0_88], %171 {strides = array<i32>} : memref<16x16x16xf32, #tpu.memory_space<vmem>>, vector<8x8x16xf32>,
    %173 = vector.extract_strided_slice %109 {offsets = [8, 8, 0], sizes = [8, 8, 16], strides = [1, 1, 1]} : vector<16x16x16xf32> to vector<8x8x16xf32>
    %174 = vector.shape_cast %173 : vector<8x8x16xf32> to vector<64x16xf32>
    %175 = vector.extract_strided_slice %110 {offsets = [8, 8, 0], sizes = [8, 8, 16], strides = [1, 1, 1]} : vector<16x16x16xf32> to vector<8x8x16xf32>
    %176 = vector.shape_cast %175 : vector<8x8x16xf32> to vector<64x16xf32>
    %177 = vector.extract_strided_slice %111 {offsets = [8, 8, 0], sizes = [8, 8, 16], strides = [1, 1, 1]} : vector<16x16x16xf32> to vector<8x8x16xf32>
    %178 = vector.shape_cast %177 : vector<8x8x16xf32> to vector<64x16xf32>
    %cst_89 = arith.constant dense<0xFF800000> : vector<16xf32>
    %179 = vector.multi_reduction <maximumf>, %176, %cst_89 [0] : vector<64x16xf32> to vector<16xf32>
    %180 = vector.shape_cast %179 : vector<16xf32> to vector<1x16xf32>
    %181 = vector.broadcast %180 : vector<1x16xf32> to vector<64x16xf32>
    %182 = arith.subf %176, %181 : vector<64x16xf32>
    %183 = math.exp %182 : vector<64x16xf32>
    %cst_90 = arith.constant dense<0.000000e+00> : vector<16xf32>
    %184 = vector.multi_reduction <add>, %183, %cst_90 [0] : vector<64x16xf32> to vector<16xf32>
    %185 = vector.shape_cast %184 : vector<16xf32> to vector<1x16xf32>
    %186 = vector.broadcast %185 : vector<1x16xf32> to vector<64x16xf32>
    %187 = arith.divf %183, %186 : vector<64x16xf32>
    %cst_91 = arith.constant dense<0.000000e+00> : vector<16x16xf32>
    %188 = tpu.matmul %187, %178, %cst_91 {dimension_numbers = #tpu.dot_dimension_numbers<[0], [0], [1], [1], [0, 1, 1, 1], [], []>} : vector<64x16xf32>, vector<64x16xf32>, vector<16x16xf32> -> vector<16x16xf32>
    %189 = arith.mulf %188, %112 : vector<16x16xf32>
    %cst_92 = arith.constant dense<0.000000e+00> : vector<64x16xf32>
    %190 = tpu.matmul %174, %189, %cst_92 {dimension_numbers = #tpu.dot_dimension_numbers<[1], [0], [0], [1], [0, 0, 1, 1], [], []>} : vector<64x16xf32>, vector<16x16xf32>, vector<64x16xf32> -> vector<64x16xf32>
    %191 = vector.shape_cast %190 : vector<64x16xf32> to vector<8x8x16xf32>
    %c8_93 = arith.constant 8 : index
    %c8_94 = arith.constant 8 : index
    %c0_95 = arith.constant 0 : index
    %192 = vector.load %arg20[%c8_93, %c8_94, %c0_95] : memref<16x16x16xf32, #tpu.memory_space<vmem>>, vector<8x8x16xf32>
    tpu.vector_store %arg20[%c8_93, %c8_94, %c0_95], %191 {strides = array<i32>} : memref<16x16x16xf32, #tpu.memory_space<vmem>>, vector<8x8x16xf32>,
    %c0_96 = arith.constant 0 : index
    %c0_97 = arith.constant 0 : index
    %c0_98 = arith.constant 0 : index
    %193 = vector.load %arg20[%c0_96, %c0_97, %c0_98] : memref<16x16x16xf32, #tpu.memory_space<vmem>>, vector<16x16x16xf32>
    %194 = vector.shape_cast %193 : vector<16x16x16xf32> to vector<256x16xf32>
    %c0_99 = arith.constant 0 : index
    %c0_100 = arith.constant 0 : index
    %195 = vector.load %arg11[%c0_99, %c0_100] : memref<16x16xf32, #tpu.memory_space<vmem>>, vector<16x16xf32>
    %cst_101 = arith.constant dense<0.000000e+00> : vector<256x16xf32>
    %196 = tpu.matmul %194, %195, %cst_101 {dimension_numbers = #tpu.dot_dimension_numbers<[1], [0], [0], [1], [0, 0, 1, 1], [], []>} : vector<256x16xf32>, vector<16x16xf32>, vector<256x16xf32> -> vector<256x16xf32>
    %c0_102 = arith.constant 0 : index
    %c0_103 = arith.constant 0 : index
    %197 = vector.load %arg12[%c0_102, %c0_103] : memref<1x16xf32, #tpu.memory_space<vmem>>, vector<1x16xf32>
    %198 = vector.shape_cast %197 : vector<1x16xf32> to vector<16xf32>
    %199 = vector.shape_cast %198 : vector<16xf32> to vector<1x16xf32>
    %200 = vector.broadcast %199 : vector<1x16xf32> to vector<256x16xf32>
    %201 = arith.addf %196, %200 : vector<256x16xf32>
    %202 = vector.shape_cast %201 : vector<256x16xf32> to vector<16x16x16xf32>
    %203 = arith.addf %202, %97 : vector<16x16x16xf32>
    %204 = vector.shape_cast %203 : vector<16x16x16xf32> to vector<256x16xf32>
    %c0_104 = arith.constant 0 : index
    %c0_105 = arith.constant 0 : index
    %205 = vector.load %arg14[%c0_104, %c0_105] : memref<16x16xf32, #tpu.memory_space<vmem>>, vector<16x16xf32>
    %cst_106 = arith.constant dense<0.000000e+00> : vector<256x16xf32>
    %206 = tpu.matmul %204, %205, %cst_106 {dimension_numbers = #tpu.dot_dimension_numbers<[1], [0], [0], [1], [0, 0, 1, 1], [], []>} : vector<256x16xf32>, vector<16x16xf32>, vector<256x16xf32> -> vector<256x16xf32>
    %c0_107 = arith.constant 0 : index
    %c0_108 = arith.constant 0 : index
    %207 = vector.load %arg15[%c0_107, %c0_108] : memref<1x16xf32, #tpu.memory_space<vmem>>, vector<1x16xf32>
    %208 = vector.shape_cast %207 : vector<1x16xf32> to vector<16xf32>
    %209 = vector.shape_cast %208 : vector<16xf32> to vector<1x16xf32>
    %210 = vector.broadcast %209 : vector<1x16xf32> to vector<256x16xf32>
    %211 = arith.addf %206, %210 : vector<256x16xf32>
    %cst_109 = arith.constant 5.000000e-01 : f32
    %212 = vector.broadcast %cst_109 : f32 to vector<256x16xf32>
    %213 = arith.mulf %212, %211 : vector<256x16xf32>
    %cst_110 = arith.constant 0.707106769 : f32
    %214 = vector.broadcast %cst_110 : f32 to vector<256x16xf32>
    %215 = arith.mulf %211, %214 : vector<256x16xf32>
    %cst_111 = arith.constant 0.000000e+00 : f32
    %216 = vector.broadcast %cst_111 : f32 to vector<256x16xf32>
    %217 = arith.cmpf olt, %215, %216 : vector<256x16xf32>
    %cst_112 = arith.constant -1.000000e+00 : f32
    %cst_113 = arith.constant 1.000000e+00 : f32
    %218 = vector.broadcast %cst_112 : f32 to vector<256x16xf32>
    %219 = vector.broadcast %cst_113 : f32 to vector<256x16xf32>
    %220 = arith.select %217, %218, %219 : vector<256x16xi1>, vector<256x16xf32>
    %221 = math.absf %215 : vector<256x16xf32>
    %cst_114 = arith.constant 0.327591091 : f32
    %222 = vector.broadcast %cst_114 : f32 to vector<256x16xf32>
    %223 = arith.mulf %222, %221 : vector<256x16xf32>
    %cst_115 = arith.constant 1.000000e+00 : f32
    %224 = vector.broadcast %cst_115 : f32 to vector<256x16xf32>
    %225 = arith.addf %224, %223 : vector<256x16xf32>
    %cst_116 = arith.constant 1.000000e+00 : f32
    %226 = vector.broadcast %cst_116 : f32 to vector<256x16xf32>
    %227 = arith.divf %226, %225 : vector<256x16xf32>
    %cst_117 = arith.constant 1.06140542 : f32
    %228 = vector.broadcast %cst_117 : f32 to vector<256x16xf32>
    %229 = arith.mulf %228, %227 : vector<256x16xf32>
    %cst_118 = arith.constant -1.45315206 : f32
    %230 = vector.broadcast %cst_118 : f32 to vector<256x16xf32>
    %231 = arith.addf %229, %230 : vector<256x16xf32>
    %232 = arith.mulf %231, %227 : vector<256x16xf32>
    %cst_119 = arith.constant 1.42141378 : f32
    %233 = vector.broadcast %cst_119 : f32 to vector<256x16xf32>
    %234 = arith.addf %232, %233 : vector<256x16xf32>
    %235 = arith.mulf %234, %227 : vector<256x16xf32>
    %cst_120 = arith.constant -0.284496725 : f32
    %236 = vector.broadcast %cst_120 : f32 to vector<256x16xf32>
    %237 = arith.addf %235, %236 : vector<256x16xf32>
    %238 = arith.mulf %237, %227 : vector<256x16xf32>
    %cst_121 = arith.constant 0.254829586 : f32
    %239 = vector.broadcast %cst_121 : f32 to vector<256x16xf32>
    %240 = arith.addf %238, %239 : vector<256x16xf32>
    %241 = arith.mulf %240, %227 : vector<256x16xf32>
    %cst_122 = arith.constant 0.000000e+00 : f32
    %242 = vector.broadcast %cst_122 : f32 to vector<256x16xf32>
    %243 = arith.subf %242, %221 : vector<256x16xf32>
    %244 = arith.mulf %243, %221 : vector<256x16xf32>
    %245 = math.exp %244 : vector<256x16xf32>
    %246 = arith.mulf %241, %245 : vector<256x16xf32>
    %cst_123 = arith.constant 1.000000e+00 : f32
    %247 = vector.broadcast %cst_123 : f32 to vector<256x16xf32>
    %248 = arith.subf %247, %246 : vector<256x16xf32>
    %249 = arith.mulf %220, %248 : vector<256x16xf32>
    %cst_124 = arith.constant 1.000000e+00 : f32
    %250 = vector.broadcast %cst_124 : f32 to vector<256x16xf32>
    %251 = arith.addf %250, %249 : vector<256x16xf32>
    %252 = arith.mulf %213, %251 : vector<256x16xf32>
    %c0_125 = arith.constant 0 : index
    %c0_126 = arith.constant 0 : index
    %253 = vector.load %arg16[%c0_125, %c0_126] : memref<16x16xf32, #tpu.memory_space<vmem>>, vector<16x16xf32>
    %cst_127 = arith.constant dense<0.000000e+00> : vector<256x16xf32>
    %254 = tpu.matmul %252, %253, %cst_127 {dimension_numbers = #tpu.dot_dimension_numbers<[1], [0], [0], [1], [0, 0, 1, 1], [], []>} : vector<256x16xf32>, vector<16x16xf32>, vector<256x16xf32> -> vector<256x16xf32>
    %c0_128 = arith.constant 0 : index
    %c0_129 = arith.constant 0 : index
    %255 = vector.load %arg17[%c0_128, %c0_129] : memref<1x16xf32, #tpu.memory_space<vmem>>, vector<1x16xf32>
    %256 = vector.shape_cast %255 : vector<1x16xf32> to vector<16xf32>
    %257 = vector.shape_cast %256 : vector<16xf32> to vector<1x16xf32>
    %258 = vector.broadcast %257 : vector<1x16xf32> to vector<256x16xf32>
    %259 = arith.addf %254, %258 : vector<256x16xf32>
    %260 = arith.addf %204, %259 : vector<256x16xf32>
    %261 = vector.shape_cast %260 : vector<256x16xf32> to vector<16x16x16xf32>
    %c0_130 = arith.constant 0 : index
    %c0_131 = arith.constant 0 : index
    %c0_132 = arith.constant 0 : index
    %c0_133 = arith.constant 0 : index
    %262 = vector.load %arg18[%c0_130, %c0_131, %c0_132, %c0_133] : memref<1x16x16x16xf32, #tpu.memory_space<vmem>>, vector<1x16x16x16xf32>
    %263 = vector.shape_cast %262 : vector<1x16x16x16xf32> to vector<16x16x16xf32>
    %264 = vector.shape_cast %261 : vector<16x16x16xf32> to vector<1x16x16x16xf32>
    tpu.vector_store %arg18[%c0_130, %c0_131, %c0_132, %c0_133], %264 {strides = array<i32>} : memref<1x16x16x16xf32, #tpu.memory_space<vmem>>, vector<1x16x16x16xf32>,
    return
  }
  func.func @transform_0(%arg0: i32) -> (i32, i32, i32, i32) {
    %c0_i32 = arith.constant 0 : i32
    %c0_i32_0 = arith.constant 0 : i32
    %c0_i32_1 = arith.constant 0 : i32
    %c0_i32_2 = arith.constant 0 : i32
    return %arg0, %c0_i32, %c0_i32_0, %c0_i32_1 : i32, i32, i32, i32
  }
  func.func @transform_1(%arg0: i32) -> (i32, i32) {
    %c0_i32 = arith.constant 0 : i32
    %c0_i32_0 = arith.constant 0 : i32
    %c0_i32_1 = arith.constant 0 : i32
    return %c0_i32, %c0_i32_0 : i32, i32
  }
  func.func @transform_2(%arg0: i32) -> (i32, i32) {
    %c0_i32 = arith.constant 0 : i32
    %c0_i32_0 = arith.constant 0 : i32
    %c0_i32_1 = arith.constant 0 : i32
    return %c0_i32, %c0_i32_0 : i32, i32
  }
  func.func @transform_3(%arg0: i32) -> (i32, i32) {
    %c0_i32 = arith.constant 0 : i32
    %c0_i32_0 = arith.constant 0 : i32
    %c0_i32_1 = arith.constant 0 : i32
    return %c0_i32, %c0_i32_0 : i32, i32
  }
  func.func @transform_4(%arg0: i32) -> (i32, i32) {
    %c0_i32 = arith.constant 0 : i32
    %c0_i32_0 = arith.constant 0 : i32
    %c0_i32_1 = arith.constant 0 : i32
    return %c0_i32, %c0_i32_0 : i32, i32
  }
  func.func @transform_5(%arg0: i32) -> (i32, i32) {
    %c0_i32 = arith.constant 0 : i32
    %c0_i32_0 = arith.constant 0 : i32
    %c0_i32_1 = arith.constant 0 : i32
    return %c0_i32, %c0_i32_0 : i32, i32
  }
  func.func @transform_6(%arg0: i32) -> (i32, i32) {
    %c0_i32 = arith.constant 0 : i32
    %c0_i32_0 = arith.constant 0 : i32
    %c0_i32_1 = arith.constant 0 : i32
    return %c0_i32, %c0_i32_0 : i32, i32
  }
  func.func @transform_7(%arg0: i32) -> (i32, i32) {
    %c0_i32 = arith.constant 0 : i32
    %c0_i32_0 = arith.constant 0 : i32
    %c0_i32_1 = arith.constant 0 : i32
    return %c0_i32, %c0_i32_0 : i32, i32
  }
  func.func @transform_8(%arg0: i32) -> (i32, i32) {
    %c0_i32 = arith.constant 0 : i32
    %c0_i32_0 = arith.constant 0 : i32
    %c0_i32_1 = arith.constant 0 : i32
    return %c0_i32, %c0_i32_0 : i32, i32
  }
  func.func @transform_9(%arg0: i32) -> (i32, i32) {
    %c0_i32 = arith.constant 0 : i32
    %c0_i32_0 = arith.constant 0 : i32
    %c0_i32_1 = arith.constant 0 : i32
    return %c0_i32, %c0_i32_0 : i32, i32
  }
  func.func @transform_10(%arg0: i32) -> (i32, i32) {
    %c0_i32 = arith.constant 0 : i32
    %c0_i32_0 = arith.constant 0 : i32
    %c0_i32_1 = arith.constant 0 : i32
    return %c0_i32, %c0_i32_0 : i32, i32
  }
  func.func @transform_11(%arg0: i32) -> (i32, i32) {
    %c0_i32 = arith.constant 0 : i32
    %c0_i32_0 = arith.constant 0 : i32
    %c0_i32_1 = arith.constant 0 : i32
    return %c0_i32, %c0_i32_0 : i32, i32
  }
  func.func @transform_12(%arg0: i32) -> (i32, i32) {
    %c0_i32 = arith.constant 0 : i32
    %c0_i32_0 = arith.constant 0 : i32
    %c0_i32_1 = arith.constant 0 : i32
    return %c0_i32, %c0_i32_0 : i32, i32
  }
  func.func @transform_13(%arg0: i32) -> (i32, i32) {
    %c0_i32 = arith.constant 0 : i32
    %c0_i32_0 = arith.constant 0 : i32
    %c0_i32_1 = arith.constant 0 : i32
    return %c0_i32, %c0_i32_0 : i32, i32
  }
  func.func @transform_14(%arg0: i32) -> (i32, i32) {
    %c0_i32 = arith.constant 0 : i32
    %c0_i32_0 = arith.constant 0 : i32
    %c0_i32_1 = arith.constant 0 : i32
    return %c0_i32, %c0_i32_0 : i32, i32
  }
  func.func @transform_15(%arg0: i32) -> (i32, i32) {
    %c0_i32 = arith.constant 0 : i32
    %c0_i32_0 = arith.constant 0 : i32
    %c0_i32_1 = arith.constant 0 : i32
    return %c0_i32, %c0_i32_0 : i32, i32
  }
  func.func @transform_16(%arg0: i32) -> (i32, i32) {
    %c0_i32 = arith.constant 0 : i32
    %c0_i32_0 = arith.constant 0 : i32
    %c0_i32_1 = arith.constant 0 : i32
    return %c0_i32, %c0_i32_0 : i32, i32
  }
  func.func @transform_17(%arg0: i32) -> (i32, i32, i32, i32) {
    %c0_i32 = arith.constant 0 : i32
    %c0_i32_0 = arith.constant 0 : i32
    %c0_i32_1 = arith.constant 0 : i32
    %c0_i32_2 = arith.constant 0 : i32
    return %arg0, %c0_i32, %c0_i32_0, %c0_i32_1 : i32, i32, i32, i32
  }
}

</mosaic_0001>

<bundles_post_ra>
// kernel: basic_layer_forward.2
= control target key start
LH: loop header
LB: loop body
LE: loop exit
PB: predicated region body
PF: predicated region fallthrough
CT: control target
= control target key end

     0   :  { %s7761_s24 = smov 0   ;;  %s10646_s0 = inlined_call_operand.vmem [shape: f32[2,16,16,16], index: 0, kind: input, shape index: {}]   ;;  %s10647_s1 = inlined_call_operand.vmem [shape: f32[1,16], index: 1, kind: input, shape index: {}]   ;;  %s10648_s2 = inlined_call_operand.vmem [shape: f32[1,16], index: 2, kind: input, shape index: {}]   ;;  %s10649_s3 = inlined_call_operand.vmem [shape: f32[16,16], index: 3, kind: input, shape index: {}]   ;;  %s10650_s4 = inlined_call_operand.vmem [shape: f32[9,16], index: 4, kind: input, shape index: {}]   ;;  %s10651_s5 = inlined_call_operand.vmem [shape: f32[1,16], index: 5, kind: input, shape index: {}]   ;;  %s10652_s6 = inlined_call_operand.vmem [shape: f32[1,16], index: 6, kind: input, shape index: {}]   ;;  %s10653_s7 = inlined_call_operand.vmem [shape: f32[16,16], index: 7, kind: input, shape index: {}]   ;;  %s10654_s8 = inlined_call_operand.vmem [shape: f32[16,48], index: 8, kind: input, shape index: {}]   ;;  %s10655_s9 = inlined_call_operand.vmem [shape: f32[1,48], index: 9, kind: input, shape index: {}]   ;;  %s10656_s10 = inlined_call_operand.vmem [shape: f32[16,16], index: 10, kind: input, shape index: {}]   ;;  %s10657_s11 = inlined_call_operand.vmem [shape: f32[1,16], index: 11, kind: input, shape index: {}]   ;;  %s10658_s12 = inlined_call_operand.vmem [shape: f32[16,16], index: 12, kind: input, shape index: {}]   ;;  %s10659_s13 = inlined_call_operand.vmem [shape: f32[16,16], index: 13, kind: input, shape index: {}]   ;;  %s10660_s14 = inlined_call_operand.vmem [shape: f32[1,16], index: 14, kind: input, shape index: {}]   ;;  %s10661_s15 = inlined_call_operand.vmem [shape: f32[16,16], index: 15, kind: input, shape index: {}]   ;;  %s10662_s16 = inlined_call_operand.vmem [shape: f32[1,16], index: 16, kind: input, shape index: {}]   ;;  %s10663_s17 = inlined_call_operand.vmem [shape: f32[2,16,16,16], index: 17, kind: output, shape index: {}]  }
   0x1   :  { %10710 = sst [smem:[#allocation37_spill]] %s10646_s0 }
   0x2   :  { %10711 = sst [smem:[#allocation38_spill]] %s10647_s1 }
   0x3 LB: > { %s6399_s25 = sadd.s32 4294967295, %s7665_s24   ;;  %p6403_p0 = scmp.ge.s32.totalorder %s7665_s24, 1  ;;  %s7665_s24 = sphi %s7761_s24, %s27_s24  }
   0x4   : > { %p487_p1 = scmp.lt.s32.totalorder %s7665_s24, 3 }
   0x6   : > { %p488_p2 = pnand %p6403_p0, %p487_p1 }
   0x8   : > { %491 = sbr.rel (%p488_p2) target bundleno = 2802 (0xaf2), region = 88 }
   0xd   : > { %v660_v0 = vld [vmem:[%s10649_s3 + $0x8] sm:$0xff]  ;;  %v659_v1 = vld [vmem:[%s10649_s3] sm:$0xff]  ;;  %p539_p3 = scmp.lt.s32.totalorder %s6399_s25, 1  ;;  %s10712_s19 = sld [smem:[#allocation38_spill]]  ;;  %vm661_vm0 = vcmask 130048   ;;  %vm2795_vm1 = vcmask 261248  }
   0xe   : > { %6945 = vmatprep.subr.mxu0 %v660_v0  ;;  %s10713_s21 = sld [smem:[#allocation37_spill]]  ;;  %v7793_v3 = vld [vmem:[%s10648_s2] ss:$0 sm:$0xff]  ;;  %s7668_s23 = smov 112   ;;  %vm2967_vm2 = vcmask 523264  }
   0xf   : > { %6946 = vmatpush3.msra.mxu0 %v660_v0  ;;  %s10804_s25 = smov (!%p539_p3, %s6399_s25), 1  ;;  %s7669_s26 = smov 96  }
  0x10   : > { %6947 = vmatprep.subr.mxu0 %v659_v1  ;;  %s6659_s0 = sshll.u32 %s10804_s25, 8 }
  0x11   : > { %6948 = vmatpush3.msra.mxu0 %v659_v1  ;;  %s10236_s29 = scalar_lea.vmem %s10663_s17, %s6659_s0 }
  0x13   : > { %v7781_v2 = vld [vmem:[%s10712_s19] ss:$0 sm:$0xff] }
  0x14   : > { %s7788_s22 = scalar_lea.vmem %s10713_s21, %s6659_s0 }
  0x15   : > { %v549_v4 = vld [vmem:[%s7788_s22] sm:$0xff]  ;;  %v550_v5 = vld [vmem:[%s7788_s22 + $0x8] sm:$0xff]  ;;  %v551_v6 = vld [vmem:[%s7788_s22 + $0x10] sm:$0xff] }
  0x16   : > { %v588_v7 = vmul.f32 %v7781_v2, %v549_v4  ;;  %v589_v8 = vmul.f32 %v7781_v2, %v550_v5  ;;  %v590_v9 = vmul.f32 %v7781_v2, %v551_v6  ;;  %v552_v10 = vld [vmem:[%s7788_s22 + $0x18] sm:$0xff]  ;;  %v553_v11 = vld [vmem:[%s7788_s22 + $0x20] sm:$0xff]  ;;  %v554_v17 = vld [vmem:[%s7788_s22 + $0x28] sm:$0xff] }
  0x17   : > { %v591_v12 = vmul.f32 %v7781_v2, %v552_v10  ;;  %v592_v16 = vmul.f32 %v7781_v2, %v553_v11  ;;  %v555_v18 = vld [vmem:[%s7788_s22 + $0x30] sm:$0xff]  ;;  %v593_v20 = vmul.f32 %v7781_v2, %v554_v17  ;;  %v556_v23 = vld [vmem:[%s7788_s22 + $0x38] sm:$0xff]  ;;  %v557_v24 = vld [vmem:[%s7788_s22 + $0x40] sm:$0xff] }
  0x18   : > { %v627_v13 = vadd.f32 %v7793_v3, %v588_v7  ;;  %v628_v14 = vadd.f32 %v7793_v3, %v589_v8  ;;  %v629_v15 = vadd.f32 %v7793_v3, %v590_v9  ;;  %v594_v22 = vmul.f32 %v7781_v2, %v555_v18  ;;  %v558_v29 = vld [vmem:[%s7788_s22 + $0x48] sm:$0xff]  ;;  %v559_v30 = vld [vmem:[%s7788_s22 + $0x50] sm:$0xff]  ;;  %v560_v35 = vld [vmem:[%s7788_s22 + $0x58] sm:$0xff] }
  0x19   : > { %v630_v19 = vadd.f32 %v7793_v3, %v591_v12  ;;  %v631_v21 = vadd.f32 %v7793_v3, %v592_v16  ;;  %v632_v25 = vadd.f32 %v7793_v3, %v593_v20  ;;  %v595_v26 = vmul.f32 %v7781_v2, %v556_v23  ;;  %v561_v36 = vld [vmem:[%s7788_s22 + $0x60] sm:$0xff]  ;;  %v562_v41 = vld [vmem:[%s7788_s22 + $0x68] sm:$0xff]  ;;  %v563_v42 = vld [vmem:[%s7788_s22 + $0x70] sm:$0xff] }
  0x1a   : > { %6949 = vmatprep.mubr.msk.f32.mxu0 %vm661_vm0, %v627_v13  ;;  %v633_v27 = vadd.f32 %v7793_v3, %v594_v22  ;;  %v596_v28 = vmul.f32 %v7781_v2, %v557_v24  ;;  %v597_v32 = vmul.f32 %v7781_v2, %v558_v29  ;;  %v598_v34 = vmul.f32 %v7781_v2, %v559_v30  ;;  %v564_v47 = vld [vmem:[%s7788_s22 + $0x78] sm:$0xff]  ;;  %v565_v48 = vld [vmem:[%s7788_s22 + $0x80] sm:$0xff]  ;;  %v566_v53 = vld [vmem:[%s7788_s22 + $0x88] sm:$0xff] }
  0x1b   : > { %6950 = vmatmul.mubr.msk.f32.vlgmr.msra.gmra.mxu0 %vm661_vm0, %v628_v14  ;;  %v634_v31 = vadd.f32 %v7793_v3, %v595_v26  ;;  %v599_v38 = vmul.f32 %v7781_v2, %v560_v35  ;;  %v600_v40 = vmul.f32 %v7781_v2, %v561_v36  ;;  %v601_v44 = vmul.f32 %v7781_v2, %v562_v41  ;;  %v567_v54 = vld [vmem:[%s7788_s22 + $0x90] sm:$0xff]  ;;  %v568_v59 = vld [vmem:[%s7788_s22 + $0x98] sm:$0xff]  ;;  %v569_v60 = vld [vmem:[%s7788_s22 + $0xa0] sm:$0xff] }
  0x1c   : > { %6952 = vmatprep.mubr.msk.f32.mxu0 %vm661_vm0, %v629_v15  ;;  %v635_v33 = vadd.f32 %v7793_v3, %v596_v28  ;;  %v636_v37 = vadd.f32 %v7793_v3, %v597_v32  ;;  %v637_v39 = vadd.f32 %v7793_v3, %v598_v34  ;;  %v602_v46 = vmul.f32 %v7781_v2, %v563_v42  ;;  %v570_v1 = vld [vmem:[%s7788_s22 + $0xa8] sm:$0xff]  ;;  %v571_v4 = vld [vmem:[%s7788_s22 + $0xb0] sm:$0xff]  ;;  %v572_v9 = vld [vmem:[%s7788_s22 + $0xb8] sm:$0xff] }
  0x1d   : > { %v638_v43 = vadd.f32 %v7793_v3, %v599_v38  ;;  %v639_v45 = vadd.f32 %v7793_v3, %v600_v40  ;;  %v640_v49 = vadd.f32 %v7793_v3, %v601_v44  ;;  %v603_v50 = vmul.f32 %v7781_v2, %v564_v47  ;;  %v573_v10 = vld [vmem:[%s7788_s22 + $0xc0] sm:$0xff]  ;;  %v574_v15 = vld [vmem:[%s7788_s22 + $0xc8] sm:$0xff]  ;;  %v575_v16 = vld [vmem:[%s7788_s22 + $0xd0] sm:$0xff] }
  0x1e   : > { %v641_v51 = vadd.f32 %v7793_v3, %v602_v46  ;;  %v604_v52 = vmul.f32 %v7781_v2, %v565_v48  ;;  %v605_v56 = vmul.f32 %v7781_v2, %v566_v53  ;;  %v606_v58 = vmul.f32 %v7781_v2, %v567_v54  ;;  %v577_v22 = vld [vmem:[%s7788_s22 + $0xe0] sm:$0xff]  ;;  %v579_v28 = vld [vmem:[%s7788_s22 + $0xf0] sm:$0xff] }
  0x1f   : > { %6953 = vmatmul.mubr.msk.f32.gmra.mxu0 %vm661_vm0, %v630_v19  ;;  %v642_v55 = vadd.f32 %v7793_v3, %v603_v50  ;;  %v607_v62 = vmul.f32 %v7781_v2, %v568_v59  ;;  %v608_v0 = vmul.f32 %v7781_v2, %v569_v60  ;;  %v609_v6 = vmul.f32 %v7781_v2, %v570_v1  ;;  %v8076_v40 = vld [vmem:[%s10650_s4] ss:$0 sm:$0xff]  ;;  %v8081_v42 = vld [vmem:[%s10650_s4 + $0x1] ss:$0 sm:$0xff]  ;;  %v8112_v1 = vld [vmem:[%s10650_s4 + $0x5] ss:$0 sm:$0xff] }
  0x20   : > { %6955 = vmatprep.mubr.msk.f32.mxu0 %vm661_vm0, %v631_v21  ;;  %v643_v57 = vadd.f32 %v7793_v3, %v604_v52  ;;  %v644_v61 = vadd.f32 %v7793_v3, %v605_v56  ;;  %v645_v63 = vadd.f32 %v7793_v3, %v606_v58  ;;  %v610_v8 = vmul.f32 %v7781_v2, %v571_v4  ;;  %v576_v21 = vld [vmem:[%s7788_s22 + $0xd8] sm:$0xff]  ;;  %v8091_v52 = vld [vmem:[%s10650_s4 + $0x2] ss:$0 sm:$0xff] }
  0x21   : > { %v646_v5 = vadd.f32 %v7793_v3, %v607_v62  ;;  %v647_v7 = vadd.f32 %v7793_v3, %v608_v0  ;;  %v648_v11 = vadd.f32 %v7793_v3, %v609_v6  ;;  %v611_v12 = vmul.f32 %v7781_v2, %v572_v9  ;;  %v8106_v62 = vld [vmem:[%s10650_s4 + $0x4] ss:$0 sm:$0xff] }
  0x22   : > { %v649_v13 = vadd.f32 %v7793_v3, %v610_v8  ;;  %v612_v14 = vmul.f32 %v7781_v2, %v573_v10  ;;  %v613_v18 = vmul.f32 %v7781_v2, %v574_v15  ;;  %v614_v20 = vmul.f32 %v7781_v2, %v575_v16 }
  0x23   : > { %6956 = vmatmul.mubr.msk.f32.gmra.mxu0 %vm661_vm0, %v632_v25  ;;  %v650_v17 = vadd.f32 %v7793_v3, %v611_v12  ;;  %v615_v24 = vmul.f32 %v7781_v2, %v576_v21  ;;  %v616_v26 = vmul.f32 %v7781_v2, %v577_v22  ;;  %v618_v32 = vmul.f32 %v7781_v2, %v579_v28  ;;  %v8119_v12 = vld [vmem:[%s10650_s4 + $0x7] ss:$0 sm:$0xff] }
  0x24   : > { %6958 = vmatprep.mubr.msk.f32.mxu0 %vm661_vm0, %v633_v27  ;;  %v651_v19 = vadd.f32 %v7793_v3, %v612_v14  ;;  %v652_v23 = vadd.f32 %v7793_v3, %v613_v18  ;;  %v653_v25 = vadd.f32 %v7793_v3, %v614_v20  ;;  %v578_v27 = vld [vmem:[%s7788_s22 + $0xe8] sm:$0xff]  ;;  %v7667_v38 = vmov 0.0  }
  0x25   : > { %v654_v29 = vadd.f32 %v7793_v3, %v615_v24  ;;  %v617_v30 = vmul.f32 %v7781_v2, %v578_v27  ;;  %v657_v36 = vadd.f32 %v7793_v3, %v618_v32  ;;  %989 = vst.msk [vmem:[#allocation2 + $0x30] sm:$0xff] %vm661_vm0, %v7667_v38  ;;  %983 = vst.msk [vmem:[#allocation2] sm:$0xff] %vm661_vm0, %v7667_v38 }
  0x26   : > { %984 = vst.msk [vmem:[#allocation2 + $0x8] sm:$0xff] %vm661_vm0, %v7667_v38  ;;  %985 = vst.msk [vmem:[#allocation2 + $0x10] sm:$0xff] %vm661_vm0, %v7667_v38 }
  0x27   : > { %6959 = vmatmul.mubr.msk.f32.gmra.mxu0 %vm661_vm0, %v634_v31  ;;  %v655_v31 = vadd.f32 %v7793_v3, %v616_v26  ;;  %v656_v34 = vadd.f32 %v7793_v3, %v617_v30  ;;  %986 = vst.msk [vmem:[#allocation2 + $0x18] sm:$0xff] %vm661_vm0, %v7667_v38  ;;  %987 = vst.msk [vmem:[#allocation2 + $0x20] sm:$0xff] %vm661_vm0, %v7667_v38 }
  0x28   : > { %6961 = vmatprep.mubr.msk.f32.mxu0 %vm661_vm0, %v635_v33  ;;  %v580_v33 = vld [vmem:[%s7788_s22 + $0xf8] sm:$0xff]  ;;  %988 = vst.msk [vmem:[#allocation2 + $0x28] sm:$0xff] %vm661_vm0, %v7667_v38  ;;  %990 = vst.msk [vmem:[#allocation2 + $0x38] sm:$0xff] %vm661_vm0, %v7667_v38 }
  0x29   : > { %v619_v35 = vmul.f32 %v7781_v2, %v580_v33  ;;  %991 = vst.msk [vmem:[#allocation2 + $0x40] sm:$0xff] %vm661_vm0, %v7667_v38  ;;  %992 = vst.msk [vmem:[#allocation2 + $0x48] sm:$0xff] %vm661_vm0, %v7667_v38  ;;  %v2077_v2 = vld [vmem:[%s10653_s7 + $0x8] sm:$0xff] }
  0x2a   : > { %993 = vst.msk [vmem:[#allocation2 + $0x50] sm:$0xff] %vm661_vm0, %v7667_v38  ;;  %994 = vst.msk [vmem:[#allocation2 + $0x58] sm:$0xff] %vm661_vm0, %v7667_v38  ;;  %6997 = vmatprep.subr.mxu0 %v2077_v2  ;;  %7397 = vmatprep.subr.mxu1 %v2077_v2 }
  0x2b   : > { %6962 = vmatmul.mubr.msk.f32.gmra.mxu0 %vm661_vm0, %v636_v37  ;;  %v658_v37 = vadd.f32 %v7793_v3, %v619_v35  ;;  %995 = vst.msk [vmem:[#allocation2 + $0x60] sm:$0xff] %vm661_vm0, %v7667_v38  ;;  %996 = vst.msk [vmem:[#allocation2 + $0x68] sm:$0xff] %vm661_vm0, %v7667_v38  ;;  %v2076_v3 = vld [vmem:[%s10653_s7] sm:$0xff]  ;;  %7399 = vmatpush3.msra.mxu1 %v2077_v2 }
  0x2c   : > { %6964 = vmatprep.mubr.msk.f32.mxu0 %vm661_vm0, %v637_v39  ;;  %997 = vst.msk [vmem:[#allocation2 + $0x70] sm:$0xff] %vm661_vm0, %v7667_v38  ;;  %998 = vst.msk [vmem:[#allocation2 + $0x78] sm:$0xff] %vm661_vm0, %v7667_v38  ;;  %6998 = vmatpush3.msra.mxu0 %v2077_v2 }
  0x2d   : > { %999 = vst.msk [vmem:[#allocation2 + $0x80] sm:$0xff] %vm661_vm0, %v7667_v38  ;;  %1000 = vst.msk [vmem:[#allocation2 + $0x88] sm:$0xff] %vm661_vm0, %v7667_v38  ;;  %6999 = vmatprep.subr.mxu0 %v2076_v3  ;;  %7398 = vmatprep.subr.mxu1 %v2076_v3  ;;  %v1088_v39 = vld [vmem:[#allocation2 + $0x7] sm:$0xff]  ;;  %v1190_v44 = vld [vmem:[#allocation2 + $0x10] sm:$0xff] }
  0x2e   : > { %1001 = vst.msk [vmem:[#allocation2 + $0x90] sm:$0xff] %vm661_vm0, %v7667_v38  ;;  %1002 = vst.msk [vmem:[#allocation2 + $0x98] sm:$0xff] %vm661_vm0, %v7667_v38  ;;  %7000 = vmatpush3.msra.mxu0 %v2076_v3  ;;  %7400 = vmatpush3.msra.mxu1 %v2076_v3  ;;  %v1189_v41 = vld [vmem:[#allocation2 + $0x8] sm:$0xff]  ;;  %v1125_v46 = vmul.f32 %v8076_v40, %v1088_v39  ;;  %v1291_v53 = vld [vmem:[#allocation2 + $0x11] sm:$0xff] }
  0x2f   : > { %6965 = vmatmul.mubr.msk.f32.gmra.mxu0 %vm661_vm0, %v638_v43  ;;  %1003 = vst.msk [vmem:[#allocation2 + $0xa0] sm:$0xff] %vm661_vm0, %v7667_v38  ;;  %1004 = vst.msk [vmem:[#allocation2 + $0xa8] sm:$0xff] %vm661_vm0, %v7667_v38  ;;  %v1089_v43 = vld [vmem:[#allocation2 + $0xf] sm:$0xff]  ;;  %v1226_v47 = vmul.f32 %v8081_v42, %v1189_v41  ;;  %v1328_v58 = vmul.f32 %v8091_v52, %v1291_v53 }
  0x30   : > { %6967 = vmatprep.mubr.msk.f32.mxu0 %vm661_vm0, %v639_v45  ;;  %1005 = vst.msk [vmem:[#allocation2 + $0xb0] sm:$0xff] %vm661_vm0, %v7667_v38  ;;  %1006 = vst.msk [vmem:[#allocation2 + $0xb8] sm:$0xff] %vm661_vm0, %v7667_v38  ;;  %v1126_v48 = vmul.f32 %v8076_v40, %v1089_v43 }
  0x31   : > { %1007 = vst.msk [vmem:[#allocation2 + $0xc0] sm:$0xff] %vm661_vm0, %v7667_v38  ;;  %1008 = vst.msk [vmem:[#allocation2 + $0xc8] sm:$0xff] %vm661_vm0, %v7667_v38 }
  0x32   : > { %1009 = vst.msk [vmem:[#allocation2 + $0xd0] sm:$0xff] %vm661_vm0, %v7667_v38  ;;  %1010 = vst.msk [vmem:[#allocation2 + $0xd8] sm:$0xff] %vm661_vm0, %v7667_v38 }
  0x33   : > { %6968 = vmatmul.mubr.msk.f32.gmra.mxu0 %vm661_vm0, %v640_v49  ;;  %1011 = vst.msk [vmem:[#allocation2 + $0xe0] sm:$0xff] %vm661_vm0, %v7667_v38  ;;  %1012 = vst.msk [vmem:[#allocation2 + $0xe8] sm:$0xff] %vm661_vm0, %v7667_v38  ;;  %v1227_v49 = vmul.f32 %v8081_v42, %v1190_v44 }
  0x34   : > { %6970 = vmatprep.mubr.msk.f32.mxu0 %vm661_vm0, %v641_v51  ;;  %1013 = vst.msk [vmem:[#allocation2 + $0xf0] sm:$0xff] %vm661_vm0, %v7667_v38  ;;  %1014 = vst.msk [vmem:[#allocation2 + $0xf8] sm:$0xff] %vm661_vm0, %v7667_v38  ;;  %v1290_v51 = vld [vmem:[#allocation2 + $0x9] sm:$0xff] }
  0x35   : > { %1015 = vst.msk [vmem:[#allocation2 + $0x100] sm:$0xff] %vm661_vm0, %v7667_v38  ;;  %1016 = vst.msk [vmem:[#allocation2 + $0x108] sm:$0xff] %vm661_vm0, %v7667_v38  ;;  %v1327_v56 = vmul.f32 %v8091_v52, %v1290_v51 }
  0x36   : > { %1017 = vst.msk [vmem:[#allocation2 + $0x110] sm:$0xff] %vm661_vm0, %v7667_v38  ;;  %1018 = vst.msk [vmem:[#allocation2 + $0x118] sm:$0xff] %vm661_vm0, %v7667_v38 }
  0x37   : > { %6971 = vmatmul.mubr.msk.f32.gmra.mxu0 %vm661_vm0, %v642_v55  ;;  %1019 = vst.msk [vmem:[#allocation2 + $0x120] sm:$0xff] %vm661_vm0, %v7667_v38  ;;  %1020 = vst.msk [vmem:[#allocation2 + $0x128] sm:$0xff] %vm661_vm0, %v7667_v38  ;;  %v1258_v55 = vadd.f32 %v1226_v47, %v1125_v46 }
  0x38   : > { %6973 = vmatprep.mubr.msk.f32.mxu0 %vm661_vm0, %v643_v57  ;;  %1021 = vst.msk [vmem:[#allocation2 + $0x130] sm:$0xff] %vm661_vm0, %v7667_v38  ;;  %1022 = vst.msk [vmem:[#allocation2 + $0x138] sm:$0xff] %vm661_vm0, %v7667_v38  ;;  %v1259_v57 = vadd.f32 %v1227_v49, %v1126_v48 }
  0x39   : > { %1023 = vst.msk [vmem:[#allocation2 + $0x140] sm:$0xff] %vm661_vm0, %v7667_v38  ;;  %1024 = vst.msk [vmem:[#allocation2 + $0x148] sm:$0xff] %vm661_vm0, %v7667_v38  ;;  %v1359_v0 = vadd.f32 %v1327_v56, %v1258_v55 }
  0x3a   : > { %1025 = vst.msk [vmem:[#allocation2 + $0x150] sm:$0xff] %vm661_vm0, %v7667_v38  ;;  %1026 = vst.msk [vmem:[#allocation2 + $0x158] sm:$0xff] %vm661_vm0, %v7667_v38  ;;  %v1360_v4 = vadd.f32 %v1328_v58, %v1259_v57 }
  0x3b   : > { %6974 = vmatmul.mubr.msk.f32.gmra.mxu0 %vm661_vm0, %v644_v61  ;;  %1027 = vst.msk [vmem:[#allocation2 + $0x160] sm:$0xff] %vm661_vm0, %v7667_v38  ;;  %1028 = vst.msk [vmem:[#allocation2 + $0x168] sm:$0xff] %vm661_vm0, %v7667_v38  ;;  %v8101_v61 = vld [vmem:[%s10650_s4 + $0x3] ss:$0 sm:$0xff] }
  0x3c   : > { %6976 = vmatprep.mubr.msk.f32.mxu0 %vm661_vm0, %v645_v63  ;;  %1029 = vst.msk [vmem:[#allocation2 + $0x170] sm:$0xff] %vm661_vm0, %v7667_v38  ;;  %1030 = vst.msk [vmem:[#allocation2 + $0x178] sm:$0xff] %vm661_vm0, %v7667_v38 }
  0x3d   : > { %1031 = vst.msk [vmem:[#allocation2 + $0x180] sm:$0xff] %vm661_vm0, %v7667_v38  ;;  %1032 = vst.msk [vmem:[#allocation2 + $0x188] sm:$0xff] %vm661_vm0, %v7667_v38 }
  0x3e   : > { %1033 = vst.msk [vmem:[#allocation2 + $0x190] sm:$0xff] %vm661_vm0, %v7667_v38  ;;  %1034 = vst.msk [vmem:[#allocation2 + $0x198] sm:$0xff] %vm661_vm0, %v7667_v38 }
  0x3f   : > { %6977 = vmatmul.mubr.msk.f32.gmra.mxu0 %vm661_vm0, %v646_v5  ;;  %1035 = vst.msk [vmem:[#allocation2 + $0x1a0] sm:$0xff] %vm661_vm0, %v7667_v38  ;;  %1036 = vst.msk [vmem:[#allocation2 + $0x1a8] sm:$0xff] %vm661_vm0, %v7667_v38 }
  0x40   : > { %6979 = vmatprep.mubr.msk.f32.mxu0 %vm661_vm0, %v647_v7  ;;  %1037 = vst.msk [vmem:[#allocation2 + $0x1b0] sm:$0xff] %vm661_vm0, %v7667_v38  ;;  %1038 = vst.msk [vmem:[#allocation2 + $0x1b8] sm:$0xff] %vm661_vm0, %v7667_v38 }
  0x41   : > { %1039 = vst.msk [vmem:[#allocation2 + $0x1c0] sm:$0xff] %vm661_vm0, %v7667_v38  ;;  %1040 = vst.msk [vmem:[#allocation2 + $0x1c8] sm:$0xff] %vm661_vm0, %v7667_v38 }
  0x42   : > { %1041 = vst.msk [vmem:[#allocation2 + $0x1d0] sm:$0xff] %vm661_vm0, %v7667_v38  ;;  %1042 = vst.msk [vmem:[#allocation2 + $0x1d8] sm:$0xff] %vm661_vm0, %v7667_v38 }
  0x43   : > { %6980 = vmatmul.mubr.msk.f32.gmra.mxu0 %vm661_vm0, %v648_v11  ;;  %1043 = vst.msk [vmem:[#allocation2 + $0x1e0] sm:$0xff] %vm661_vm0, %v7667_v38  ;;  %1044 = vst.msk [vmem:[#allocation2 + $0x1e8] sm:$0xff] %vm661_vm0, %v7667_v38 }
  0x44   : > { %6982 = vmatprep.mubr.msk.f32.mxu0 %vm661_vm0, %v649_v13  ;;  %1045 = vst.msk [vmem:[#allocation2 + $0x1f0] sm:$0xff] %vm661_vm0, %v7667_v38  ;;  %1046 = vst.msk [vmem:[#allocation2 + $0x1f8] sm:$0xff] %vm661_vm0, %v7667_v38 }
  0x45   : > { %1047 = vst.msk [vmem:[#allocation2 + $0x200] sm:$0xff] %vm661_vm0, %v7667_v38  ;;  %1048 = vst.msk [vmem:[#allocation2 + $0x208] sm:$0xff] %vm661_vm0, %v7667_v38 }
  0x46   : > { %1049 = vst.msk [vmem:[#allocation2 + $0x210] sm:$0xff] %vm661_vm0, %v7667_v38  ;;  %1050 = vst.msk [vmem:[#allocation2 + $0x218] sm:$0xff] %vm661_vm0, %v7667_v38 }
  0x47   : > { %6983 = vmatmul.mubr.msk.f32.gmra.mxu0 %vm661_vm0, %v650_v17  ;;  %1051 = vst.msk [vmem:[#allocation2 + $0x220] sm:$0xff] %vm661_vm0, %v7667_v38  ;;  %1052 = vst.msk [vmem:[#allocation2 + $0x228] sm:$0xff] %vm661_vm0, %v7667_v38  ;;  %v8127_v17 = vld [vmem:[%s10650_s4 + $0x8] ss:$0 sm:$0xff] }
  0x48   : > { %6985 = vmatprep.mubr.msk.f32.mxu0 %vm661_vm0, %v651_v19  ;;  %1053 = vst.msk [vmem:[#allocation2 + $0x230] sm:$0xff] %vm661_vm0, %v7667_v38  ;;  %1054 = vst.msk [vmem:[#allocation2 + $0x238] sm:$0xff] %vm661_vm0, %v7667_v38 }
  0x4b   : > { %6986 = vmatmul.mubr.msk.f32.gmra.mxu0 %vm661_vm0, %v652_v23 }
  0x4c   : > { %6988 = vmatprep.mubr.msk.f32.mxu0 %vm661_vm0, %v653_v25 }
  0x4f   : > { %6989 = vmatmul.mubr.msk.f32.gmra.mxu0 %vm661_vm0, %v654_v29 }
  0x50   : > { %6991 = vmatprep.mubr.msk.f32.mxu0 %vm661_vm0, %v655_v31  ;;  %v8144_v31 = vld [vmem:[%s10650_s4 + $0x6] ss:$0 sm:$0xff] }
  0x53   : > { %6992 = vmatmul.mubr.msk.f32.gmra.mxu0 %vm661_vm0, %v656_v34 }
  0x54   : > { %6994 = vmatprep.mubr.msk.f32.mxu0 %vm661_vm0, %v657_v36 }
  0x57   : > { %6995 = vmatmul.mubr.msk.f32.gmra.mxu0 %vm661_vm0, %v658_v37 }
  0xdb   : > { %v6951_v45 = vpop.f32.mrf.mxu0 }
  0xdc   : > { %1057 = vst.msk [vmem:[#allocation2 + $0x30] sm:$0xff] %vm661_vm0, %v6951_v45 }
  0xdd   : > { %v824_v50 = vpop.f32.mrf.mxu0 }
  0xde   : > { %1056 = vst.msk [vmem:[#allocation2 + $0x28] sm:$0xff] %vm661_vm0, %v824_v50 }
  0xdf   : > { %v6954_v54 = vpop.f32.mrf.mxu0 }
  0xe0   : > { %1059 = vst.msk [vmem:[#allocation2 + $0x50] sm:$0xff] %vm661_vm0, %v6954_v54 }
  0xe1   : > { %v834_v59 = vpop.f32.mrf.mxu0 }
  0xe2   : > { %1058 = vst.msk [vmem:[#allocation2 + $0x48] sm:$0xff] %vm661_vm0, %v834_v59 }
  0xe3   : > { %v6957_v60 = vpop.f32.mrf.mxu0  ;;  %v1493_v63 = vld [vmem:[#allocation2 + $0x30] sm:$0xff] }
  0xe4   : > { %1061 = vst.msk [vmem:[#allocation2 + $0x70] sm:$0xff] %vm661_vm0, %v6957_v60  ;;  %v1594_v5 = vld [vmem:[#allocation2 + $0x31] sm:$0xff]  ;;  %v1530_v14 = vmul.f32 %v8106_v62, %v1493_v63  ;;  %v1229_v23 = vmul.f32 %v8081_v42, %v1493_v63 }
  0xe5   : > { %v1392_v6 = vld [vmem:[#allocation2 + $0x2f] sm:$0xff]  ;;  %v844_v7 = vpop.f32.mrf.mxu0  ;;  %v1391_v8 = vld [vmem:[#allocation2 + $0x27] sm:$0xff]  ;;  %v1631_v18 = vmul.f32 %v8112_v1, %v1594_v5  ;;  %v1330_v27 = vmul.f32 %v8091_v52, %v1594_v5 }
  0xe6   : > { %v1492_v9 = vld [vmem:[#allocation2 + $0x28] sm:$0xff]  ;;  %1060 = vst.msk [vmem:[#allocation2 + $0x68] sm:$0xff] %vm661_vm0, %v844_v7  ;;  %v1428_v10 = vmul.f32 %v8101_v61, %v1391_v8  ;;  %v1429_v13 = vmul.f32 %v8101_v61, %v1392_v6  ;;  %v1127_v15 = vmul.f32 %v8076_v40, %v1391_v8  ;;  %v1128_v22 = vmul.f32 %v8076_v40, %v1392_v6 }
  0xe7   : > { %v1593_v11 = vld [vmem:[#allocation2 + $0x29] sm:$0xff]  ;;  %v6960_v16 = vpop.f32.mrf.mxu0  ;;  %v8132_v20 = vld [vmem:[#allocation2 + $0x51] sm:$0xff]  ;;  %v1228_v21 = vmul.f32 %v8081_v42, %v1492_v9  ;;  %v1529_v25 = vmul.f32 %v8106_v62, %v1492_v9 }
  0xe8   : > { %v8130_v19 = vld [vmem:[#allocation2 + $0x50] sm:$0xff]  ;;  %1063 = vst.msk [vmem:[#allocation2 + $0x90] sm:$0xff] %vm661_vm0, %v6960_v16  ;;  %v1460_v24 = vadd.f32 %v1428_v10, %v1359_v0  ;;  %v1461_v26 = vadd.f32 %v1429_v13, %v1360_v4  ;;  %v1630_v29 = vmul.f32 %v8112_v1, %v1593_v11  ;;  %v1329_v33 = vmul.f32 %v8091_v52, %v1593_v11 }
  0xe9   : > { %v854_v28 = vpop.f32.mrf.mxu0  ;;  %v1695_v30 = vld [vmem:[#allocation2 + $0x47] sm:$0xff]  ;;  %v1260_v32 = vadd.f32 %v1228_v21, %v1127_v15  ;;  %v1261_v34 = vadd.f32 %v1229_v23, %v1128_v22  ;;  %v8148_v37 = vld [vmem:[#allocation2 + $0x4f] sm:$0xff]  ;;  %v1834_v38 = vmul.f32 %v8119_v12, %v8130_v19  ;;  %v1935_v2 = vmul.f32 %v8127_v17, %v8132_v20 }
  0xea   : > { %1062 = vst.msk [vmem:[#allocation2 + $0x88] sm:$0xff] %vm661_vm0, %v854_v28  ;;  %v1561_v35 = vadd.f32 %v1529_v25, %v1460_v24  ;;  %v1796_v36 = vld [vmem:[#allocation2 + $0x48] sm:$0xff]  ;;  %v1532_v3 = vmul.f32 %v8106_v62, %v8130_v19  ;;  %v1562_v43 = vadd.f32 %v1530_v14, %v1461_v26  ;;  %v1430_v45 = vmul.f32 %v8101_v61, %v1695_v30 }
  0xeb   : > { %v6963_v39 = vpop.f32.mrf.mxu0  ;;  %v1897_v41 = vld [vmem:[#allocation2 + $0x49] sm:$0xff]  ;;  %v1361_v44 = vadd.f32 %v1329_v33, %v1260_v32  ;;  %v1633_v46 = vmul.f32 %v8112_v1, %v8132_v20  ;;  %v1732_v48 = vmul.f32 %v8144_v31, %v1695_v30  ;;  %v1733_v49 = vmul.f32 %v8144_v31, %v8148_v37  ;;  %v8194_v26 = vld [vmem:[#allocation2 + $0x71] sm:$0xff]  ;;  %v8203_v33 = vld [vmem:[%s10652_s6] ss:$0 sm:$0xff] }
  0xec   : > { %1065 = vst.msk [vmem:[#allocation2 + $0xb0] sm:$0xff] %vm661_vm0, %v6963_v39  ;;  %v1662_v47 = vadd.f32 %v1630_v29, %v1561_v35  ;;  %v1362_v50 = vadd.f32 %v1330_v27, %v1261_v34  ;;  %v8163_v51 = vld [vmem:[#allocation2 + $0x70] sm:$0xff]  ;;  %v1663_v54 = vadd.f32 %v1631_v18, %v1562_v43  ;;  %v1531_v56 = vmul.f32 %v8106_v62, %v1796_v36  ;;  %v8188_v18 = vld [vmem:[%s10651_s5] ss:$0 sm:$0xff] }
  0xed   : > { %v864_v53 = vpop.f32.mrf.mxu0  ;;  %v1462_v55 = vadd.f32 %v1430_v45, %v1361_v44  ;;  %v8166_v57 = vld [vmem:[#allocation2 + $0x67] sm:$0xff]  ;;  %v1431_v58 = vmul.f32 %v8101_v61, %v8148_v37  ;;  %v1833_v60 = vmul.f32 %v8119_v12, %v1796_v36  ;;  %v1934_v63 = vmul.f32 %v8127_v17, %v1897_v41  ;;  %v8181_v13 = vld [vmem:[#allocation2 + $0x6f] sm:$0xff] }
  0xee   : > { %1064 = vst.msk [vmem:[#allocation2 + $0xa8] sm:$0xff] %vm661_vm0, %v864_v53  ;;  %v1764_v59 = vadd.f32 %v1732_v48, %v1662_v47  ;;  %v1632_v0 = vmul.f32 %v8112_v1, %v1897_v41  ;;  %v8174_v4 = vld [vmem:[#allocation2 + $0x68] sm:$0xff]  ;;  %v1765_v6 = vadd.f32 %v1733_v49, %v1663_v54  ;;  %v1836_v9 = vmul.f32 %v8119_v12, %v8163_v51 }
  0xef   : > { %v6966_v5 = vpop.f32.mrf.mxu0  ;;  %v1563_v7 = vadd.f32 %v1531_v56, %v1462_v55  ;;  %v1463_v8 = vadd.f32 %v1431_v58, %v1362_v50  ;;  %v1734_v11 = vmul.f32 %v8144_v31, %v8166_v57  ;;  %v1129_v14 = vmul.f32 %v8076_v40, %v1695_v30  ;;  %v8192_v24 = vld [vmem:[#allocation2 + $0x69] sm:$0xff] }
  0xf0   : > { %1067 = vst.msk [vmem:[#allocation2 + $0xd0] sm:$0xff] %vm661_vm0, %v6966_v5  ;;  %v1865_v10 = vadd.f32 %v1833_v60, %v1764_v59  ;;  %v1230_v15 = vmul.f32 %v8081_v42, %v1796_v36  ;;  %v1866_v21 = vadd.f32 %v1834_v38, %v1765_v6  ;;  %v1835_v23 = vmul.f32 %v8119_v12, %v8174_v4 }
  0xf1   : > { %v874_v16 = vpop.f32.mrf.mxu0  ;;  %v1664_v22 = vadd.f32 %v1632_v0, %v1563_v7  ;;  %v1564_v25 = vadd.f32 %v1532_v3, %v1463_v8  ;;  %v1331_v29 = vmul.f32 %v8091_v52, %v1897_v41  ;;  %v1432_v30 = vmul.f32 %v8101_v61, %v8166_v57  ;;  %v8218_v50 = vld [vmem:[#allocation2 + $0x87] sm:$0xff] }
  0xf2   : > { %1066 = vst.msk [vmem:[#allocation2 + $0xc8] sm:$0xff] %vm661_vm0, %v874_v16  ;;  %v1966_v27 = vadd.f32 %v1934_v63, %v1865_v10  ;;  %v1262_v28 = vadd.f32 %v1230_v15, %v1129_v14  ;;  %v1967_v34 = vadd.f32 %v1935_v2, %v1866_v21  ;;  %v1735_v38 = vmul.f32 %v8144_v31, %v8181_v13  ;;  %v8227_v63 = vld [vmem:[#allocation2 + $0x88] sm:$0xff] }
  0xf3   : > { %v6969_v32 = vpop.f32.mrf.mxu0  ;;  %v1766_v35 = vadd.f32 %v1734_v11, %v1664_v22  ;;  %v1665_v36 = vadd.f32 %v1633_v46, %v1564_v25  ;;  %v1936_v39 = vmul.f32 %v8127_v17, %v8192_v24  ;;  %v1937_v41 = vmul.f32 %v8127_v17, %v8194_v26  ;;  %v8229_v0 = vld [vmem:[#allocation2 + $0x89] sm:$0xff] }
  0xf4   : > { %1069 = vst.msk [vmem:[#allocation2 + $0xf0] sm:$0xff] %vm661_vm0, %v6969_v32  ;;  %v2005_v3 = vmul.f32 %v8188_v18, %v1966_v27  ;;  %v1363_v43 = vadd.f32 %v1331_v29, %v1262_v28  ;;  %v2006_v45 = vmul.f32 %v8188_v18, %v1967_v34  ;;  %v1533_v46 = vmul.f32 %v8106_v62, %v8174_v4  ;;  %v8250_v25 = vld [vmem:[#allocation2 + $0x90] sm:$0xff] }
  0xf5   : > { %v884_v44 = vpop.f32.mrf.mxu0  ;;  %v1867_v2 = vadd.f32 %v1835_v23, %v1766_v35  ;;  %v1767_v47 = vadd.f32 %v1735_v38, %v1665_v36  ;;  %v1130_v53 = vmul.f32 %v8076_v40, %v8148_v37  ;;  %v1231_v54 = vmul.f32 %v8081_v42, %v8130_v19  ;;  %v8248_v23 = vld [vmem:[#allocation2 + $0x8f] sm:$0xff] }
  0xf6   : > { %1068 = vst.msk [vmem:[#allocation2 + $0xe8] sm:$0xff] %vm661_vm0, %v884_v44  ;;  %v2044_v48 = vadd.f32 %v8203_v33, %v2005_v3  ;;  %v1464_v49 = vadd.f32 %v1432_v30, %v1363_v43  ;;  %v2045_v56 = vadd.f32 %v8203_v33, %v2006_v45  ;;  %v1634_v60 = vmul.f32 %v8112_v1, %v8192_v24  ;;  %v8261_v35 = vld [vmem:[#allocation2 + $0x91] sm:$0xff] }
  0xf7   : > { %v6972_v55 = vpop.f32.mrf.mxu0  ;;  %v1968_v58 = vadd.f32 %v1936_v39, %v1867_v2  ;;  %v1868_v59 = vadd.f32 %v1836_v9, %v1767_v47  ;;  %v1263_v5 = vadd.f32 %v1231_v54, %v1130_v53  ;;  %v1332_v19 = vmul.f32 %v8091_v52, %v8132_v20  ;;  %v8277_v47 = vld [vmem:[#allocation2 + $0xa7] sm:$0xff] }
  0xf8   : > { %1071 = vst.msk [vmem:[#allocation2 + $0x110] sm:$0xff] %vm661_vm0, %v6972_v55  ;;  %7001 = vmatprep.mubr.msk.f32.mxu0 %vm661_vm0, %v2044_v48  ;;  %v1565_v37 = vadd.f32 %v1533_v46, %v1464_v49  ;;  %v1433_v6 = vmul.f32 %v8101_v61, %v8181_v13  ;;  %v1736_v10 = vmul.f32 %v8144_v31, %v8218_v50  ;;  %v8279_v46 = vld [vmem:[#allocation2 + $0xa8] sm:$0xff] }
  0xf9   : > { %v894_v7 = vpop.f32.mrf.mxu0  ;;  %7002 = vmatmul.mubr.msk.f32.vlgmr.msra.gmra.mxu0 %vm661_vm0, %v2045_v56  ;;  %v2007_v8 = vmul.f32 %v8188_v18, %v1968_v58  ;;  %v1969_v9 = vadd.f32 %v1937_v41, %v1868_v59  ;;  %v1837_v14 = vmul.f32 %v8119_v12, %v8227_v63  ;;  %v1938_v20 = vmul.f32 %v8127_v17, %v8229_v0  ;;  %v8290_v58 = vld [vmem:[#allocation2 + $0xa9] sm:$0xff] }
  0xfa   : > { %1070 = vst.msk [vmem:[#allocation2 + $0x108] sm:$0xff] %vm661_vm0, %v894_v7  ;;  %v1666_v11 = vadd.f32 %v1634_v60, %v1565_v37  ;;  %v1364_v15 = vadd.f32 %v1332_v19, %v1263_v5  ;;  %v1131_v27 = vmul.f32 %v8076_v40, %v8166_v57  ;;  %v1232_v28 = vmul.f32 %v8081_v42, %v8174_v4 }
  0xfb   : > { %v6975_v16 = vpop.f32.mrf.mxu0  ;;  %v2046_v21 = vadd.f32 %v8203_v33, %v2007_v8  ;;  %v2008_v22 = vmul.f32 %v8188_v18, %v1969_v9  ;;  %v1534_v32 = vmul.f32 %v8106_v62, %v8163_v51  ;;  %v1635_v34 = vmul.f32 %v8112_v1, %v8194_v26  ;;  %v8302_v8 = vld [vmem:[#allocation2 + $0xaf] sm:$0xff] }
  0xfc   : > { %1073 = vst.msk [vmem:[#allocation2 + $0x130] sm:$0xff] %vm661_vm0, %v6975_v16  ;;  %v1768_v29 = vadd.f32 %v1736_v10, %v1666_v11  ;;  %v1465_v30 = vadd.f32 %v1433_v6, %v1364_v15  ;;  %v1264_v38 = vadd.f32 %v1232_v28, %v1131_v27  ;;  %v1333_v4 = vmul.f32 %v8091_v52, %v8192_v24 }
  0xfd   : > { %7004 = vmatprep.mubr.msk.f32.mxu0 %vm661_vm0, %v2046_v21  ;;  %v904_v36 = vpop.f32.mrf.mxu0  ;;  %v2047_v57 = vadd.f32 %v8203_v33, %v2008_v22  ;;  %v1434_v3 = vmul.f32 %v8101_v61, %v8218_v50  ;;  %v1737_v43 = vmul.f32 %v8144_v31, %v8248_v23  ;;  %v1838_v44 = vmul.f32 %v8119_v12, %v8250_v25  ;;  %v8312_v21 = vld [vmem:[#allocation2 + $0xb0] sm:$0xff] }
  0xfe   : > { %1072 = vst.msk [vmem:[#allocation2 + $0x128] sm:$0xff] %vm661_vm0, %v904_v36  ;;  %v1869_v39 = vadd.f32 %v1837_v14, %v1768_v29  ;;  %v1566_v41 = vadd.f32 %v1534_v32, %v1465_v30  ;;  %v1939_v2 = vmul.f32 %v8127_v17, %v8261_v35  ;;  %v1365_v24 = vadd.f32 %v1333_v4, %v1264_v38  ;;  %v8314_v22 = vld [vmem:[#allocation2 + $0xb1] sm:$0xff] }
  0xff   : > { %7005 = vmatmul.mubr.msk.f32.gmra.mxu0 %vm661_vm0, %v2047_v57  ;;  %v6978_v45 = vpop.f32.mrf.mxu0  ;;  %v1132_v48 = vmul.f32 %v8076_v40, %v8181_v13  ;;  %v1233_v49 = vmul.f32 %v8081_v42, %v8163_v51  ;;  %v1535_v55 = vmul.f32 %v8106_v62, %v8227_v63  ;;  %v1636_v56 = vmul.f32 %v8112_v1, %v8229_v0 }
 0x100   : > { %1075 = vst.msk [vmem:[#allocation2 + $0x150] sm:$0xff] %vm661_vm0, %v6978_v45  ;;  %v1970_v53 = vadd.f32 %v1938_v20, %v1869_v39  ;;  %v1667_v54 = vadd.f32 %v1635_v34, %v1566_v41  ;;  %v1466_v60 = vadd.f32 %v1434_v3, %v1365_v24  ;;  %v1334_v13 = vmul.f32 %v8091_v52, %v8194_v26  ;;  %v8334_v45 = vld [vmem:[#allocation2 + $0xc7] sm:$0xff] }
 0x101   : > { %v914_v59 = vpop.f32.mrf.mxu0  ;;  %v1265_v37 = vadd.f32 %v1233_v49, %v1132_v48  ;;  %v1435_v51 = vmul.f32 %v8101_v61, %v8248_v23  ;;  %v1738_v6 = vmul.f32 %v8144_v31, %v8277_v47  ;;  %v1839_v7 = vmul.f32 %v8119_v12, %v8279_v46 }
 0x102   : > { %v2009_v5 = vmul.f32 %v8188_v18, %v1970_v53  ;;  %1074 = vst.msk [vmem:[#allocation2 + $0x148] sm:$0xff] %vm661_vm0, %v914_v59  ;;  %v1769_v19 = vadd.f32 %v1737_v43, %v1667_v54  ;;  %v1567_v10 = vadd.f32 %v1535_v55, %v1466_v60  ;;  %v1940_v26 = vmul.f32 %v8127_v17, %v8290_v58  ;;  %v8342_v53 = vld [vmem:[#allocation2 + $0xc8] sm:$0xff] }
 0x103   : > { %v6981_v9 = vpop.f32.mrf.mxu0  ;;  %v1366_v11 = vadd.f32 %v1334_v13, %v1265_v37  ;;  %v1133_v14 = vmul.f32 %v8076_v40, %v8218_v50  ;;  %v1536_v16 = vmul.f32 %v8106_v62, %v8250_v25  ;;  %v1234_v27 = vmul.f32 %v8081_v42, %v8227_v63  ;;  %v8344_v54 = vld [vmem:[#allocation2 + $0xc9] sm:$0xff] }
 0x104   : > { %v2048_v20 = vadd.f32 %v8203_v33, %v2009_v5  ;;  %v1870_v15 = vadd.f32 %v1838_v44, %v1769_v19  ;;  %1077 = vst.msk [vmem:[#allocation2 + $0x170] sm:$0xff] %vm661_vm0, %v6981_v9  ;;  %v1668_v28 = vadd.f32 %v1636_v56, %v1567_v10  ;;  %v1637_v50 = vmul.f32 %v8112_v1, %v8261_v35 }
 0x105   : > { %v924_v29 = vpop.f32.mrf.mxu0  ;;  %v1467_v30 = vadd.f32 %v1435_v51, %v1366_v11  ;;  %v1739_v32 = vmul.f32 %v8144_v31, %v8302_v8  ;;  %v1266_v36 = vadd.f32 %v1234_v27, %v1133_v14  ;;  %v1335_v57 = vmul.f32 %v8091_v52, %v8229_v0  ;;  %v8363_v11 = vld [vmem:[#allocation2 + $0xcf] sm:$0xff] }
 0x106   : > { %7007 = vmatprep.mubr.msk.f32.mxu0 %vm661_vm0, %v2048_v20  ;;  %v1971_v34 = vadd.f32 %v1939_v2, %v1870_v15  ;;  %1076 = vst.msk [vmem:[#allocation2 + $0x168] sm:$0xff] %vm661_vm0, %v924_v29  ;;  %v1436_v63 = vmul.f32 %v8101_v61, %v8277_v47  ;;  %v1770_v38 = vadd.f32 %v1738_v6, %v1668_v28  ;;  %v8371_v29 = vld [vmem:[#allocation2 + $0xd0] sm:$0xff] }
 0x107   : > { %v1568_v4 = vadd.f32 %v1536_v16, %v1467_v30  ;;  %v1840_v3 = vmul.f32 %v8119_v12, %v8312_v21  ;;  %v1941_v39 = vmul.f32 %v8127_v17, %v8314_v22  ;;  %v6984_v41 = vpop.f32.mrf.mxu0  ;;  %v1367_v44 = vadd.f32 %v1335_v57, %v1266_v36  ;;  %v8373_v30 = vld [vmem:[#allocation2 + $0xd1] sm:$0xff] }
 0x108   : > { %v2010_v43 = vmul.f32 %v8188_v18, %v1971_v34  ;;  %1079 = vst.msk [vmem:[#allocation2 + $0x190] sm:$0xff] %vm661_vm0, %v6984_v41  ;;  %v1134_v0 = vmul.f32 %v8076_v40, %v8248_v23  ;;  %v1235_v2 = vmul.f32 %v8081_v42, %v8250_v25  ;;  %v1871_v24 = vadd.f32 %v1839_v7, %v1770_v38 }
 0x109   : > { %v1669_v48 = vadd.f32 %v1637_v50, %v1568_v4  ;;  %v1537_v49 = vmul.f32 %v8106_v62, %v8279_v46  ;;  %v934_v55 = vpop.f32.mrf.mxu0  ;;  %v1336_v56 = vmul.f32 %v8091_v52, %v8261_v35  ;;  %v1468_v60 = vadd.f32 %v1436_v63, %v1367_v44 }
 0x10a   : > { %v2049_v59 = vadd.f32 %v8203_v33, %v2010_v43  ;;  %1078 = vst.msk [vmem:[#allocation2 + $0x188] sm:$0xff] %vm661_vm0, %v934_v55  ;;  %v1267_v23 = vadd.f32 %v1235_v2, %v1134_v0  ;;  %v1437_v25 = vmul.f32 %v8101_v61, %v8302_v8  ;;  %v1972_v37 = vadd.f32 %v1940_v26, %v1871_v24  ;;  %v8392_v2 = vld [vmem:[#allocation2 + $0xe7] sm:$0xff] }
 0x10b   : > { %v1771_v13 = vadd.f32 %v1739_v32, %v1669_v48  ;;  %v1638_v51 = vmul.f32 %v8112_v1, %v8290_v58  ;;  %v1740_v5 = vmul.f32 %v8144_v31, %v8334_v45  ;;  %v6987_v19 = vpop.f32.mrf.mxu0  ;;  %v1569_v35 = vadd.f32 %v1537_v49, %v1468_v60  ;;  %v8394_v24 = vld [vmem:[#allocation2 + $0xe8] sm:$0xff] }
 0x10c   : > { %7008 = vmatmul.mubr.msk.f32.gmra.mxu0 %vm661_vm0, %v2049_v59  ;;  %v1841_v6 = vmul.f32 %v8119_v12, %v8342_v53  ;;  %v1942_v7 = vmul.f32 %v8127_v17, %v8344_v54  ;;  %v1368_v9 = vadd.f32 %v1336_v56, %v1267_v23  ;;  %1081 = vst.msk [vmem:[#allocation2 + $0x1b0] sm:$0xff] %vm661_vm0, %v6987_v19  ;;  %v8404_v60 = vld [vmem:[#allocation2 + $0xe9] sm:$0xff] }
 0x10d   : > { %v2011_v10 = vmul.f32 %v8188_v18, %v1972_v37  ;;  %v1872_v26 = vadd.f32 %v1840_v3, %v1771_v13  ;;  %v1135_v14 = vmul.f32 %v8076_v40, %v8277_v47  ;;  %v1236_v20 = vmul.f32 %v8081_v42, %v8279_v46  ;;  %v944_v15 = vpop.f32.mrf.mxu0 }
 0x10e   : > { %v1670_v16 = vadd.f32 %v1638_v51, %v1569_v35  ;;  %v1469_v27 = vadd.f32 %v1437_v25, %v1368_v9  ;;  %v1538_v28 = vmul.f32 %v8106_v62, %v8312_v21  ;;  %v1337_v50 = vmul.f32 %v8091_v52, %v8290_v58  ;;  %1080 = vst.msk [vmem:[#allocation2 + $0x1a8] sm:$0xff] %vm661_vm0, %v944_v15  ;;  %v8426_v15 = vld [vmem:[#allocation2 + $0xf0] sm:$0xff] }
 0x10f   : > { %v2050_v47 = vadd.f32 %v8203_v33, %v2011_v10  ;;  %v1973_v32 = vadd.f32 %v1941_v39, %v1872_v26  ;;  %v1268_v34 = vadd.f32 %v1236_v20, %v1135_v14  ;;  %v1438_v46 = vmul.f32 %v8101_v61, %v8334_v45  ;;  %v6990_v36 = vpop.f32.mrf.mxu0  ;;  %v8424_v20 = vld [vmem:[#allocation2 + $0xef] sm:$0xff] }
 0x110   : > { %v1772_v57 = vadd.f32 %v1740_v5, %v1670_v16  ;;  %v1570_v63 = vadd.f32 %v1538_v28, %v1469_v27  ;;  %v1639_v38 = vmul.f32 %v8112_v1, %v8314_v22  ;;  %v1741_v4 = vmul.f32 %v8144_v31, %v8363_v11  ;;  %1083 = vst.msk [vmem:[#allocation2 + $0x1d0] sm:$0xff] %vm661_vm0, %v6990_v36 }
 0x111   : > { %7010 = vmatprep.mubr.msk.f32.mxu0 %vm661_vm0, %v2050_v47  ;;  %v2012_v58 = vmul.f32 %v8188_v18, %v1973_v32  ;;  %v1842_v3 = vmul.f32 %v8119_v12, %v8371_v29  ;;  %v1943_v39 = vmul.f32 %v8127_v17, %v8373_v30  ;;  %v1369_v41 = vadd.f32 %v1337_v50, %v1268_v34  ;;  %v954_v43 = vpop.f32.mrf.mxu0 }
 0x112   : > { %v1873_v44 = vadd.f32 %v1841_v6, %v1772_v57  ;;  %v1671_v0 = vadd.f32 %v1639_v38, %v1570_v63  ;;  %v1136_v48 = vmul.f32 %v8076_v40, %v8302_v8  ;;  %v1237_v49 = vmul.f32 %v8081_v42, %v8312_v21  ;;  %1082 = vst.msk [vmem:[#allocation2 + $0x1c8] sm:$0xff] %vm661_vm0, %v954_v43 }
 0x113   : > { %v2051_v55 = vadd.f32 %v8203_v33, %v2012_v58  ;;  %v1470_v56 = vadd.f32 %v1438_v46, %v1369_v41  ;;  %v1539_v59 = vmul.f32 %v8106_v62, %v8342_v53  ;;  %v1338_v23 = vmul.f32 %v8091_v52, %v8314_v22  ;;  %v6993_v25 = vpop.f32.mrf.mxu0  ;;  %v8435_v46 = vld [vmem:[#allocation2 + $0xf1] sm:$0xff] }
 0x114   : > { %v1974_v37 = vadd.f32 %v1942_v7, %v1873_v44  ;;  %v1773_v13 = vadd.f32 %v1741_v4, %v1671_v0  ;;  %v1269_v8 = vadd.f32 %v1237_v49, %v1136_v48  ;;  %v1439_v21 = vmul.f32 %v8101_v61, %v8363_v11  ;;  %1085 = vst.msk [vmem:[#allocation2 + $0x1f0] sm:$0xff] %vm661_vm0, %v6993_v25 }
 0x115   : > { %7011 = vmatmul.mubr.msk.f32.gmra.mxu0 %vm661_vm0, %v2051_v55  ;;  %v1571_v51 = vadd.f32 %v1539_v59, %v1470_v56  ;;  %v1640_v5 = vmul.f32 %v8112_v1, %v8344_v54  ;;  %v1742_v19 = vmul.f32 %v8144_v31, %v8392_v2  ;;  %v1843_v22 = vmul.f32 %v8119_v12, %v8394_v24  ;;  %v964_v35 = vpop.f32.mrf.mxu0  ;;  %v8458_v55 = vld [vmem:[#allocation2 + $0x108] sm:$0xff] }
 0x116   : > { %v2013_v6 = vmul.f32 %v8188_v18, %v1974_v37  ;;  %v1874_v7 = vadd.f32 %v1842_v3, %v1773_v13  ;;  %v1944_v9 = vmul.f32 %v8127_v17, %v8404_v60  ;;  %v1370_v10 = vadd.f32 %v1338_v23, %v1269_v8  ;;  %1084 = vst.msk [vmem:[#allocation2 + $0x1e8] sm:$0xff] %vm661_vm0, %v964_v35  ;;  %v8460_v56 = vld [vmem:[#allocation2 + $0x109] sm:$0xff] }
 0x117   : > { %v1672_v26 = vadd.f32 %v1640_v5, %v1571_v51  ;;  %v1540_v14 = vmul.f32 %v8106_v62, %v8371_v29  ;;  %v1137_v16 = vmul.f32 %v8076_v40, %v8334_v45  ;;  %v1238_v27 = vmul.f32 %v8081_v42, %v8342_v53  ;;  %v6996_v28 = vpop.f32.mrf.mxu0 }
 0x118   : > { %v2052_v50 = vadd.f32 %v8203_v33, %v2013_v6  ;;  %v1975_v47 = vadd.f32 %v1943_v39, %v1874_v7  ;;  %v1471_v32 = vadd.f32 %v1439_v21, %v1370_v10  ;;  %v1641_v34 = vmul.f32 %v8112_v1, %v8373_v30  ;;  %1087 = vst.msk [vmem:[#allocation2 + $0x210] sm:$0xff] %vm661_vm0, %v6996_v28  ;;  %v8448_v39 = vld [vmem:[#allocation2 + $0x107] sm:$0xff]  ;;  %v8478_v7 = vld [vmem:[#allocation2 + $0x10f] sm:$0xff] }
 0x119   : > { %v1774_v36 = vadd.f32 %v1742_v19, %v1672_v26  ;;  %v1270_v57 = vadd.f32 %v1238_v27, %v1137_v16  ;;  %v1339_v45 = vmul.f32 %v8091_v52, %v8344_v54  ;;  %v1440_v53 = vmul.f32 %v8101_v61, %v8392_v2  ;;  %v974_v63 = vpop.f32.mrf.mxu0  ;;  %v8489_v27 = vld [vmem:[#allocation2 + $0x111] sm:$0xff] }
 0x11a   : > { %7013 = vmatprep.mubr.msk.f32.mxu0 %vm661_vm0, %v2052_v50  ;;  %v2014_v38 = vmul.f32 %v8188_v18, %v1975_v47  ;;  %v1572_v4 = vadd.f32 %v1540_v14, %v1471_v32  ;;  %v1743_v58 = vmul.f32 %v8144_v31, %v8424_v20  ;;  %v1844_v3 = vmul.f32 %v8119_v12, %v8426_v15 }
 0x11b   : > { %1086 = vst.msk [vmem:[#allocation2 + $0x208] sm:$0xff] %vm661_vm0, %v974_v63  ;;  %v1875_v54 = vadd.f32 %v1843_v22, %v1774_v36  ;;  %v1945_v41 = vmul.f32 %v8127_v17, %v8435_v46  ;;  %v1371_v43 = vadd.f32 %v1339_v45, %v1270_v57  ;;  %v1138_v44 = vmul.f32 %v8076_v40, %v8363_v11 }
 0x11c   : > { %v2053_v0 = vadd.f32 %v8203_v33, %v2014_v38  ;;  %v1673_v48 = vadd.f32 %v1641_v34, %v1572_v4  ;;  %v1541_v49 = vmul.f32 %v8106_v62, %v8394_v24  ;;  %v1239_v59 = vmul.f32 %v8081_v42, %v8371_v29 }
 0x11d   : > { %v1976_v23 = vadd.f32 %v1944_v9, %v1875_v54  ;;  %v1472_v25 = vadd.f32 %v1440_v53, %v1371_v43  ;;  %v1642_v37 = vmul.f32 %v8112_v1, %v8404_v60  ;;  %v1744_v11 = vmul.f32 %v8144_v31, %v8448_v39  ;;  %v8480_v9 = vld [vmem:[#allocation2 + $0x110] sm:$0xff] }
 0x11e   : > { %7014 = vmatmul.mubr.msk.f32.gmra.mxu0 %vm661_vm0, %v2053_v0  ;;  %v1775_v13 = vadd.f32 %v1743_v58, %v1673_v48  ;;  %v1271_v8 = vadd.f32 %v1239_v59, %v1138_v44  ;;  %v1340_v21 = vmul.f32 %v8091_v52, %v8373_v30  ;;  %v1441_v51 = vmul.f32 %v8101_v61, %v8424_v20  ;;  %v8507_v58 = vld [vmem:[#allocation2 + $0x127] sm:$0xff] }
 0x11f   : > { %v2015_v29 = vmul.f32 %v8188_v18, %v1976_v23  ;;  %v1573_v5 = vadd.f32 %v1541_v49, %v1472_v25  ;;  %v1845_v19 = vmul.f32 %v8119_v12, %v8458_v55  ;;  %v1946_v22 = vmul.f32 %v8127_v17, %v8460_v56  ;;  %v8518_v49 = vld [vmem:[#allocation2 + $0x129] sm:$0xff] }
 0x120   : > { %v1876_v35 = vadd.f32 %v1844_v3, %v1775_v13  ;;  %v1372_v6 = vadd.f32 %v1340_v21, %v1271_v8  ;;  %v1139_v30 = vmul.f32 %v8076_v40, %v8392_v2  ;;  %v1240_v10 = vmul.f32 %v8081_v42, %v8394_v24  ;;  %v8509_v3 = vld [vmem:[#allocation2 + $0x128] sm:$0xff] }
 0x121   : > { %v2054_v26 = vadd.f32 %v8203_v33, %v2015_v29  ;;  %v1674_v14 = vadd.f32 %v1642_v37, %v1573_v5  ;;  %v1542_v16 = vmul.f32 %v8106_v62, %v8426_v15  ;;  %v1341_v28 = vmul.f32 %v8091_v52, %v8404_v60 }
 0x122   : > { %v1977_v50 = vadd.f32 %v1945_v41, %v1876_v35  ;;  %v1473_v47 = vadd.f32 %v1441_v51, %v1372_v6  ;;  %v1272_v32 = vadd.f32 %v1240_v10, %v1139_v30  ;;  %v1442_v2 = vmul.f32 %v8101_v61, %v8448_v39  ;;  %v8538_v35 = vld [vmem:[#allocation2 + $0x130] sm:$0xff] }
 0x123   : > { %7016 = vmatprep.mubr.msk.f32.mxu0 %vm661_vm0, %v2054_v26  ;;  %v1776_v24 = vadd.f32 %v1744_v11, %v1674_v14  ;;  %v1643_v34 = vmul.f32 %v8112_v1, %v8435_v46  ;;  %v1745_v36 = vmul.f32 %v8144_v31, %v8478_v7  ;;  %v1846_v57 = vmul.f32 %v8119_v12, %v8480_v9  ;;  %v8540_v6 = vld [vmem:[#allocation2 + $0x131] sm:$0xff] }
 0x124   : > { %v2016_v60 = vmul.f32 %v8188_v18, %v1977_v50  ;;  %v1574_v45 = vadd.f32 %v1542_v16, %v1473_v47  ;;  %v1947_v53 = vmul.f32 %v8127_v17, %v8489_v27  ;;  %v1373_v63 = vadd.f32 %v1341_v28, %v1272_v32 }
 0x125   : > { %v1877_v38 = vadd.f32 %v1845_v19, %v1776_v24  ;;  %v1543_v4 = vmul.f32 %v8106_v62, %v8458_v55  ;;  %v1140_v54 = vmul.f32 %v8076_v40, %v8424_v20  ;;  %v1241_v41 = vmul.f32 %v8081_v42, %v8426_v15 }
 0x126   : > { %v2055_v43 = vadd.f32 %v8203_v33, %v2016_v60  ;;  %v1675_v44 = vadd.f32 %v1643_v34, %v1574_v45  ;;  %v1474_v0 = vadd.f32 %v1442_v2, %v1373_v63  ;;  %v1644_v48 = vmul.f32 %v8112_v1, %v8460_v56  ;;  %v8565_v63 = vld [vmem:[#allocation2 + $0x147] sm:$0xff] }
 0x127   : > { %v1978_v59 = vadd.f32 %v1946_v22, %v1877_v38  ;;  %v1273_v23 = vadd.f32 %v1241_v41, %v1140_v54  ;;  %v1342_v25 = vmul.f32 %v8091_v52, %v8435_v46  ;;  %v1443_v20 = vmul.f32 %v8101_v61, %v8478_v7  ;;  %v8536_v22 = vld [vmem:[#allocation2 + $0x12f] sm:$0xff] }
 0x128   : > { %7017 = vmatmul.mubr.msk.f32.gmra.mxu0 %vm661_vm0, %v2055_v43  ;;  %v1777_v15 = vadd.f32 %v1745_v36, %v1675_v44  ;;  %v1575_v37 = vadd.f32 %v1543_v4, %v1474_v0  ;;  %v1746_v11 = vmul.f32 %v8144_v31, %v8507_v58  ;;  %v1847_v13 = vmul.f32 %v8119_v12, %v8509_v3  ;;  %v8572_v44 = vld [vmem:[#allocation2 + $0x148] sm:$0xff] }
 0x129   : > { %v2017_v8 = vmul.f32 %v8188_v18, %v1978_v59  ;;  %v1948_v21 = vmul.f32 %v8127_v17, %v8518_v49  ;;  %v1374_v51 = vadd.f32 %v1342_v25, %v1273_v23  ;;  %v1141_v46 = vmul.f32 %v8076_v40, %v8448_v39  ;;  %v8574_v0 = vld [vmem:[#allocation2 + $0x149] sm:$0xff] }
 0x12a   : > { %v1878_v29 = vadd.f32 %v1846_v57, %v1777_v15  ;;  %v1676_v5 = vadd.f32 %v1644_v48, %v1575_v37  ;;  %v1544_v19 = vmul.f32 %v8106_v62, %v8480_v9  ;;  %v1242_v30 = vmul.f32 %v8081_v42, %v8458_v55 }
 0x12b   : > { %v2056_v10 = vadd.f32 %v8203_v33, %v2017_v8  ;;  %v1475_v26 = vadd.f32 %v1443_v20, %v1374_v51  ;;  %v1645_v39 = vmul.f32 %v8112_v1, %v8489_v27  ;;  %v1343_v14 = vmul.f32 %v8091_v52, %v8460_v56 }
 0x12c   : > { %v1979_v16 = vadd.f32 %v1947_v53, %v1878_v29  ;;  %v1778_v28 = vadd.f32 %v1746_v11, %v1676_v5  ;;  %v1274_v50 = vadd.f32 %v1242_v30, %v1141_v46  ;;  %v1444_v47 = vmul.f32 %v8101_v61, %v8507_v58  ;;  %v8597_v30 = vld [vmem:[#allocation2 + $0x150] sm:$0xff] }
 0x12d   : > { %7019 = vmatprep.mubr.msk.f32.mxu1 %vm661_vm0, %v2056_v10  ;;  %v1576_v32 = vadd.f32 %v1544_v19, %v1475_v26  ;;  %v1747_v55 = vmul.f32 %v8144_v31, %v8536_v22  ;;  %v1848_v2 = vmul.f32 %v8119_v12, %v8538_v35  ;;  %v1949_v24 = vmul.f32 %v8127_v17, %v8540_v6  ;;  %v8595_v19 = vld [vmem:[#allocation2 + $0x14f] sm:$0xff] }
 0x12e   : > { %v2018_v56 = vmul.f32 %v8188_v18, %v1979_v16  ;;  %v1879_v34 = vadd.f32 %v1847_v13, %v1778_v28  ;;  %v1375_v36 = vadd.f32 %v1343_v14, %v1274_v50  ;;  %v1142_v57 = vmul.f32 %v8076_v40, %v8478_v7  ;;  %v1914_v28 = vld [vmem:[#allocation2 + $0x151] sm:$0xff] }
 0x12f   : > { %v1677_v60 = vadd.f32 %v1645_v39, %v1576_v32  ;;  %v1545_v45 = vmul.f32 %v8106_v62, %v8509_v3  ;;  %v1646_v53 = vmul.f32 %v8112_v1, %v8518_v49  ;;  %v1243_v38 = vmul.f32 %v8081_v42, %v8480_v9 }
 0x130   : > { %v2057_v4 = vadd.f32 %v8203_v33, %v2018_v56  ;;  %v1980_v54 = vadd.f32 %v1948_v21, %v1879_v34  ;;  %v1476_v41 = vadd.f32 %v1444_v47, %v1375_v36  ;;  %v1748_v43 = vmul.f32 %v8144_v31, %v8565_v63 }
 0x131   : > { %v1779_v7 = vadd.f32 %v1747_v55, %v1677_v60  ;;  %v1275_v48 = vadd.f32 %v1243_v38, %v1142_v57  ;;  %v1344_v59 = vmul.f32 %v8091_v52, %v8489_v27  ;;  %v1445_v23 = vmul.f32 %v8101_v61, %v8536_v22 }
 0x132   : > { %7020 = vmatmul.mubr.msk.f32.vlgmr.msra.gmra.mxu1 %vm661_vm0, %v2057_v4  ;;  %v2019_v9 = vmul.f32 %v8188_v18, %v1980_v54  ;;  %v1577_v25 = vadd.f32 %v1545_v45, %v1476_v41  ;;  %v1849_v20 = vmul.f32 %v8119_v12, %v8572_v44  ;;  %v1950_v15 = vmul.f32 %v8127_v17, %v8574_v0  ;;  %v8619_v45 = vld [vmem:[#allocation2 + $0x167] sm:$0xff] }
 0x133   : > { %v1880_v37 = vadd.f32 %v1848_v2, %v1779_v7  ;;  %v1376_v11 = vadd.f32 %v1344_v59, %v1275_v48  ;;  %v1143_v13 = vmul.f32 %v8076_v40, %v8507_v58  ;;  %v1244_v27 = vmul.f32 %v8081_v42, %v8509_v3  ;;  %v2432_v59 = vld [vmem:[%s10654_s8 + $0x8] sm:$0xff] }
 0x134   : > { %v2058_v8 = vadd.f32 %v8203_v33, %v2019_v9  ;;  %v1678_v21 = vadd.f32 %v1646_v53, %v1577_v25  ;;  %v1546_v51 = vmul.f32 %v8106_v62, %v8538_v35  ;;  %v1345_v46 = vmul.f32 %v8091_v52, %v8518_v49  ;;  %v8621_v53 = vld [vmem:[#allocation2 + $0x168] sm:$0xff]  ;;  %7049 = vmatprep.subr.mxu0 %v2432_v59 }
 0x135   : > { %v1981_v29 = vadd.f32 %v1949_v24, %v1880_v37  ;;  %v1477_v5 = vadd.f32 %v1445_v23, %v1376_v11  ;;  %v1276_v10 = vadd.f32 %v1244_v27, %v1143_v13  ;;  %v1446_v58 = vmul.f32 %v8101_v61, %v8565_v63  ;;  %v1915_v25 = vld [vmem:[#allocation2 + $0x169] sm:$0xff]  ;;  %7050 = vmatpush3.msra.mxu0 %v2432_v59 }
 0x136   : > { %7022 = vmatprep.mubr.msk.f32.mxu1 %vm661_vm0, %v2058_v8  ;;  %v1780_v3 = vadd.f32 %v1748_v43, %v1678_v21  ;;  %v1647_v26 = vmul.f32 %v8112_v1, %v8540_v6  ;;  %v1749_v39 = vmul.f32 %v8144_v31, %v8595_v19  ;;  %v1850_v49 = vmul.f32 %v8119_v12, %v8597_v30  ;;  %v1917_v59 = vld [vmem:[#allocation2 + $0x189] sm:$0xff] }
 0x137   : > { %v2020_v14 = vmul.f32 %v8188_v18, %v1981_v29  ;;  %v1578_v16 = vadd.f32 %v1546_v51, %v1477_v5  ;;  %v1377_v50 = vadd.f32 %v1345_v46, %v1276_v10  ;;  %v1547_v47 = vmul.f32 %v8106_v62, %v8572_v44  ;;  %v8659_v46 = vld [vmem:[#allocation2 + $0x170] sm:$0xff]  ;;  %v2431_v10 = vld [vmem:[%s10654_s8] sm:$0xff] }
 0x138   : > { %v1881_v32 = vadd.f32 %v1849_v20, %v1780_v3  ;;  %v1951_v55 = vmul.f32 %v8127_v17, %v1914_v28  ;;  %v1144_v2 = vmul.f32 %v8076_v40, %v8536_v22  ;;  %v1245_v24 = vmul.f32 %v8081_v42, %v8538_v35  ;;  %v8645_v20 = vld [vmem:[#allocation2 + $0x16f] sm:$0xff]  ;;  %7051 = vmatprep.subr.mxu0 %v2431_v10 }
 0x139   : > { %v2059_v56 = vadd.f32 %v8203_v33, %v2020_v14  ;;  %v1679_v34 = vadd.f32 %v1647_v26, %v1578_v16  ;;  %v1478_v36 = vadd.f32 %v1446_v58, %v1377_v50  ;;  %v1648_v57 = vmul.f32 %v8112_v1, %v8574_v0  ;;  %7052 = vmatpush3.msra.mxu0 %v2431_v10 }
 0x13a   : > { %v1982_v60 = vadd.f32 %v1950_v15, %v1881_v32  ;;  %v1277_v38 = vadd.f32 %v1245_v24, %v1144_v2  ;;  %v1346_v4 = vmul.f32 %v8091_v52, %v8540_v6  ;;  %v1447_v40 = vmul.f32 %v8101_v61, %v8595_v19  ;;  %v8638_v6 = vld [vmem:[%s10650_s4] ss:$0 sm:$0xff]  ;;  %v8650_v15 = vld [vmem:[%s10650_s4 + $0x1] ss:$0 sm:$0xff]  ;;  %v8696_v24 = vld [vmem:[#allocation2 + $0x188] sm:$0xff] }
 0x13b   : > { %7023 = vmatmul.mubr.msk.f32.gmra.mxu1 %vm661_vm0, %v2059_v56  ;;  %v1781_v42 = vadd.f32 %v1749_v39, %v1679_v34  ;;  %v1579_v22 = vadd.f32 %v1547_v47, %v1478_v36  ;;  %v1750_v35 = vmul.f32 %v8144_v31, %v8619_v45  ;;  %v1851_v54 = vmul.f32 %v8119_v12, %v8621_v53  ;;  %v8701_v56 = vld [vmem:[%s10650_s4 + $0x3] ss:$0 sm:$0xff] }
 0x13c   : > { %v2021_v41 = vmul.f32 %v8188_v18, %v1982_v60  ;;  %v1378_v43 = vadd.f32 %v1346_v4, %v1277_v38  ;;  %v1548_v7 = vmul.f32 %v8106_v62, %v8597_v30  ;;  %v1145_v48 = vmul.f32 %v8638_v6, %v8565_v63  ;;  %v8717_v38 = vld [vmem:[%s10650_s4 + $0x4] ss:$0 sm:$0xff] }
 0x13d   : > { %v1882_v23 = vadd.f32 %v1850_v49, %v1781_v42  ;;  %v1680_v9 = vadd.f32 %v1648_v57, %v1579_v22  ;;  %v1246_v37 = vmul.f32 %v8650_v15, %v8572_v44  ;;  %v1347_v63 = vmul.f32 %v8091_v52, %v8574_v0 }
 0x13e   : > { %v2060_v11 = vadd.f32 %v8203_v33, %v2021_v41  ;;  %v1952_v13 = vmul.f32 %v8127_v17, %v1915_v25  ;;  %v1479_v27 = vadd.f32 %v1447_v40, %v1378_v43  ;;  %v1649_v8 = vmul.f32 %v8112_v1, %v1914_v28 }
 0x13f   : > { %v1983_v21 = vadd.f32 %v1951_v55, %v1882_v23  ;;  %v1782_v51 = vadd.f32 %v1750_v35, %v1680_v9  ;;  %v1278_v29 = vadd.f32 %v1246_v37, %v1145_v48  ;;  %v1448_v44 = vmul.f32 %v8101_v61, %v8619_v45  ;;  %v1916_v61 = vld [vmem:[#allocation2 + $0x171] sm:$0xff] }
 0x140   : > { %7025 = vmatprep.mubr.msk.f32.mxu1 %vm661_vm0, %v2060_v11  ;;  %v1580_v52 = vadd.f32 %v1548_v7, %v1479_v27  ;;  %v1751_v0 = vmul.f32 %v8144_v31, %v8645_v20  ;;  %v1852_v5 = vmul.f32 %v8119_v12, %v8659_v46  ;;  %v1549_v1 = vmul.f32 %v8106_v62, %v8621_v53  ;;  %v8682_v62 = vld [vmem:[%s10650_s4 + $0x2] ss:$0 sm:$0xff]  ;;  %v8728_v9 = vld [vmem:[#allocation2 + $0x18f] sm:$0xff]  ;;  %v8738_v11 = vld [vmem:[%s10650_s4 + $0x8] ss:$0 sm:$0xff] }
 0x141   : > { %v2022_v58 = vmul.f32 %v8188_v18, %v1983_v21  ;;  %v1883_v3 = vadd.f32 %v1851_v54, %v1782_v51  ;;  %v1379_v26 = vadd.f32 %v1347_v63, %v1278_v29  ;;  %v1146_v39 = vmul.f32 %v8638_v6, %v8595_v19  ;;  %v8689_v19 = vld [vmem:[%s10650_s4 + $0x5] ss:$0 sm:$0xff]  ;;  %v8730_v37 = vld [vmem:[#allocation2 + $0x190] sm:$0xff] }
 0x142   : > { %v1681_v49 = vadd.f32 %v1649_v8, %v1580_v52  ;;  %v1953_v14 = vmul.f32 %v8127_v17, %v1916_v61  ;;  %v1247_v12 = vmul.f32 %v8650_v15, %v8597_v30  ;;  %v1348_v16 = vmul.f32 %v8682_v62, %v1914_v28  ;;  %v8692_v30 = vld [vmem:[#allocation2 + $0x187] sm:$0xff] }
 0x143   : > { %v2061_v50 = vadd.f32 %v8203_v33, %v2022_v58  ;;  %v1984_v47 = vadd.f32 %v1952_v13, %v1883_v3  ;;  %v1480_v32 = vadd.f32 %v1448_v44, %v1379_v26  ;;  %v1650_v17 = vmul.f32 %v8689_v19, %v1915_v25  ;;  %v8744_v13 = vld [vmem:[%s10650_s4 + $0x6] ss:$0 sm:$0xff]  ;;  %v1918_v3 = vld [vmem:[#allocation2 + $0x191] sm:$0xff] }
 0x144   : > { %v1783_v55 = vadd.f32 %v1751_v0, %v1681_v49  ;;  %v1752_v2 = vmul.f32 %v8144_v31, %v8692_v30  ;;  %v1279_v28 = vadd.f32 %v1247_v12, %v1146_v39  ;;  %v1449_v34 = vmul.f32 %v8701_v56, %v8645_v20  ;;  %v8710_v31 = vld [vmem:[%s10650_s4 + $0x7] ss:$0 sm:$0xff] }
 0x145   : > { %7026 = vmatmul.mubr.msk.f32.gmra.mxu1 %vm661_vm0, %v2061_v50  ;;  %v2023_v36 = vmul.f32 %v8188_v18, %v1984_v47  ;;  %v1581_v57 = vadd.f32 %v1549_v1, %v1480_v32  ;;  %v1853_v60 = vmul.f32 %v8710_v31, %v8696_v24  ;;  %v1550_v4 = vmul.f32 %v8717_v38, %v8659_v46  ;;  %v1717_v12 = vld [vmem:[#allocation2 + $0x1a7] sm:$0xff] }
 0x146   : > { %v1884_v40 = vadd.f32 %v1852_v5, %v1783_v55  ;;  %v1380_v42 = vadd.f32 %v1348_v16, %v1279_v28  ;;  %v1147_v22 = vmul.f32 %v8638_v6, %v8619_v45  ;;  %v1248_v35 = vmul.f32 %v8650_v15, %v8621_v53  ;;  %v1818_v16 = vld [vmem:[#allocation2 + $0x1a8] sm:$0xff] }
 0x147   : > { %v2062_v54 = vadd.f32 %v8203_v33, %v2023_v36  ;;  %v1682_v41 = vadd.f32 %v1650_v17, %v1581_v57  ;;  %v1651_v43 = vmul.f32 %v8689_v19, %v1916_v61  ;;  %v1349_v7 = vmul.f32 %v8682_v62, %v1915_v25  ;;  %v1919_v57 = vld [vmem:[#allocation2 + $0x1a9] sm:$0xff] }
 0x148   : > { %v1985_v48 = vadd.f32 %v1953_v14, %v1884_v40  ;;  %v1481_v23 = vadd.f32 %v1449_v34, %v1380_v42  ;;  %v1280_v63 = vadd.f32 %v1248_v35, %v1147_v22  ;;  %v1450_v45 = vmul.f32 %v8701_v56, %v8692_v30 }
 0x149   : > { %7028 = vmatprep.mubr.msk.f32.mxu1 %vm661_vm0, %v2062_v54  ;;  %v1784_v53 = vadd.f32 %v1752_v2, %v1682_v41  ;;  %v1954_v25 = vmul.f32 %v8738_v11, %v1917_v59  ;;  %v1753_v27 = vmul.f32 %v8744_v13, %v8728_v9  ;;  %v1854_v8 = vmul.f32 %v8710_v31, %v8730_v37  ;;  %v1718_v41 = vld [vmem:[#allocation2 + $0x1af] sm:$0xff] }
 0x14a   : > { %v2024_v21 = vmul.f32 %v8188_v18, %v1985_v48  ;;  %v1582_v51 = vadd.f32 %v1550_v4, %v1481_v23  ;;  %v1381_v29 = vadd.f32 %v1349_v7, %v1280_v63  ;;  %v1551_v44 = vmul.f32 %v8717_v38, %v8696_v24  ;;  %v8785_v23 = vld [vmem:[%s10651_s5] ss:$0 sm:$0xff] }
 0x14b   : > { %v1885_v52 = vadd.f32 %v1853_v60, %v1784_v53  ;;  %v1148_v0 = vmul.f32 %v8638_v6, %v8645_v20  ;;  %v1249_v5 = vmul.f32 %v8650_v15, %v8659_v46  ;;  %v1350_v1 = vmul.f32 %v8682_v62, %v1916_v61  ;;  %v1920_v53 = vld [vmem:[#allocation2 + $0x1b1] sm:$0xff] }
 0x14c   : > { %v2063_v10 = vadd.f32 %v8203_v33, %v2024_v21  ;;  %v1683_v58 = vadd.f32 %v1651_v43, %v1582_v51  ;;  %v1482_v26 = vadd.f32 %v1450_v45, %v1381_v29  ;;  %v1652_v39 = vmul.f32 %v8689_v19, %v1917_v59  ;;  %v1819_v43 = vld [vmem:[#allocation2 + $0x1b0] sm:$0xff] }
 0x14d   : > { %v1986_v49 = vadd.f32 %v1954_v25, %v1885_v52  ;;  %v1955_v14 = vmul.f32 %v8738_v11, %v1918_v3  ;;  %v1281_v50 = vadd.f32 %v1249_v5, %v1148_v0  ;;  %v1451_v20 = vmul.f32 %v8701_v56, %v8728_v9 }
 0x14e   : > { %7029 = vmatmul.mubr.msk.f32.gmra.mxu1 %vm661_vm0, %v2063_v10  ;;  %v1785_v46 = vadd.f32 %v1753_v27, %v1683_v58  ;;  %v1583_v61 = vadd.f32 %v1551_v44, %v1482_v26  ;;  %v1754_v47 = vmul.f32 %v8744_v13, %v1717_v12  ;;  %v1855_v32 = vmul.f32 %v8710_v31, %v1818_v16  ;;  %v8797_v44 = vld [vmem:[%s10652_s6] ss:$0 sm:$0xff]  ;;  %v1820_v26 = vld [vmem:[#allocation2 + $0x1c8] sm:$0xff] }
 0x14f   : > { %v2025_v17 = vmul.f32 %v8188_v18, %v1986_v49  ;;  %v1382_v55 = vadd.f32 %v1350_v1, %v1281_v50  ;;  %v1552_v2 = vmul.f32 %v8717_v38, %v8730_v37  ;;  %v1149_v28 = vmul.f32 %v8638_v6, %v8692_v30 }
 0x150   : > { %v1886_v34 = vadd.f32 %v1854_v8, %v1785_v46  ;;  %v1684_v36 = vadd.f32 %v1652_v39, %v1583_v61  ;;  %v1250_v60 = vmul.f32 %v8650_v15, %v8696_v24  ;;  %v1351_v4 = vmul.f32 %v8682_v62, %v1917_v59 }
 0x151   : > { %v2064_v40 = vadd.f32 %v8203_v33, %v2025_v17  ;;  %v1956_v42 = vmul.f32 %v8738_v11, %v1919_v57  ;;  %v1483_v18 = vadd.f32 %v1451_v20, %v1382_v55  ;;  %v1653_v22 = vmul.f32 %v8689_v19, %v1918_v3 }
 0x152   : > { %v1987_v35 = vadd.f32 %v1955_v14, %v1886_v34  ;;  %v1786_v54 = vadd.f32 %v1754_v47, %v1684_v36  ;;  %v1282_v30 = vadd.f32 %v1250_v60, %v1149_v28  ;;  %v1452_v7 = vmul.f32 %v8701_v56, %v1717_v12  ;;  %v1921_v34 = vld [vmem:[#allocation2 + $0x1c9] sm:$0xff] }
 0x153   : > { %7031 = vmatprep.mubr.msk.f32.mxu1 %vm661_vm0, %v2064_v40  ;;  %v1584_v48 = vadd.f32 %v1552_v2, %v1483_v18  ;;  %v1755_v24 = vmul.f32 %v8744_v13, %v1718_v41  ;;  %v1856_v59 = vmul.f32 %v8710_v31, %v1819_v43  ;;  %v1553_v33 = vmul.f32 %v8717_v38, %v1818_v16  ;;  %v1720_v60 = vld [vmem:[#allocation2 + $0x1cf] sm:$0xff] }
 0x154   : > { %v2026_v63 = vmul.f32 %v8785_v23, %v1987_v35  ;;  %v1887_v45 = vadd.f32 %v1855_v32, %v1786_v54  ;;  %v1383_v25 = vadd.f32 %v1351_v4, %v1282_v30  ;;  %v1150_v27 = vmul.f32 %v8638_v6, %v8728_v9  ;;  %v1719_v9 = vld [vmem:[#allocation2 + $0x1c7] sm:$0xff]  ;;  %v8812_v4 = vld [vmem:[#allocation2 + $0x1d0] sm:$0xff] }
 0x155   : > { %v1685_v8 = vadd.f32 %v1653_v22, %v1584_v48  ;;  %v1957_v21 = vmul.f32 %v8738_v11, %v1920_v53  ;;  %v1251_v51 = vmul.f32 %v8650_v15, %v8730_v37  ;;  %v1352_v29 = vmul.f32 %v8682_v62, %v1918_v3 }
 0x156   : > { %v2065_v52 = vadd.f32 %v8797_v44, %v2026_v63  ;;  %v1988_v0 = vadd.f32 %v1956_v42, %v1887_v45  ;;  %v1484_v5 = vadd.f32 %v1452_v7, %v1383_v25  ;;  %v1654_v1 = vmul.f32 %v8689_v19, %v1919_v57  ;;  %v1922_v45 = vld [vmem:[#allocation2 + $0x1d1] sm:$0xff] }
 0x157   : > { %v1787_v10 = vadd.f32 %v1755_v24, %v1685_v8  ;;  %v1756_v58 = vmul.f32 %v8744_v13, %v1719_v9  ;;  %v1283_v39 = vadd.f32 %v1251_v51, %v1150_v27  ;;  %v1453_v37 = vmul.f32 %v8701_v56, %v1718_v41  ;;  %v1721_v51 = vld [vmem:[#allocation2 + $0x1e7] sm:$0xff] }
 0x158   : > { %7032 = vmatmul.mubr.msk.f32.gmra.mxu1 %vm661_vm0, %v2065_v52  ;;  %v2027_v3 = vmul.f32 %v8785_v23, %v1988_v0  ;;  %v1585_v49 = vadd.f32 %v1553_v33, %v1484_v5  ;;  %v1857_v14 = vmul.f32 %v8710_v31, %v1820_v26  ;;  %v1554_v50 = vmul.f32 %v8717_v38, %v1819_v43 }
 0x159   : > { %v1888_v20 = vadd.f32 %v1856_v59, %v1787_v10  ;;  %v1384_v46 = vadd.f32 %v1352_v29, %v1283_v39  ;;  %v1151_v61 = vmul.f32 %v8638_v6, %v1717_v12  ;;  %v1252_v47 = vmul.f32 %v8650_v15, %v1818_v16  ;;  %v1822_v29 = vld [vmem:[#allocation2 + $0x1e8] sm:$0xff] }
 0x15a   : > { %v2066_v32 = vadd.f32 %v8797_v44, %v2027_v3  ;;  %v1686_v17 = vadd.f32 %v1654_v1, %v1585_v49  ;;  %v1655_v55 = vmul.f32 %v8689_v19, %v1920_v53  ;;  %v1353_v2 = vmul.f32 %v8682_v62, %v1919_v57  ;;  %v1923_v49 = vld [vmem:[#allocation2 + $0x1e9] sm:$0xff] }
 0x15b   : > { %v1989_v28 = vadd.f32 %v1957_v21, %v1888_v20  ;;  %v1485_v36 = vadd.f32 %v1453_v37, %v1384_v46  ;;  %v1284_v40 = vadd.f32 %v1252_v47, %v1151_v61  ;;  %v1454_v42 = vmul.f32 %v8701_v56, %v1719_v9 }
 0x15c   : > { %7034 = vmatprep.mubr.msk.f32.mxu1 %vm661_vm0, %v2066_v32  ;;  %v1788_v12 = vadd.f32 %v1756_v58, %v1686_v17  ;;  %v1958_v16 = vmul.f32 %v8738_v11, %v1921_v34  ;;  %v1757_v18 = vmul.f32 %v8744_v13, %v1720_v60  ;;  %v1858_v22 = vmul.f32 %v8710_v31, %v8812_v4 }
 0x15d   : > { %v2028_v57 = vmul.f32 %v8785_v23, %v1989_v28  ;;  %v1586_v35 = vadd.f32 %v1554_v50, %v1485_v36  ;;  %v1385_v54 = vadd.f32 %v1353_v2, %v1284_v40  ;;  %v1555_v30 = vmul.f32 %v8717_v38, %v1820_v26  ;;  %v1823_v2 = vld [vmem:[#allocation2 + $0x1f0] sm:$0xff] }
 0x15e   : > { %v1889_v7 = vadd.f32 %v1857_v14, %v1788_v12  ;;  %v1152_v48 = vmul.f32 %v8638_v6, %v1718_v41  ;;  %v1253_v24 = vmul.f32 %v8650_v15, %v1819_v43  ;;  %v1354_v59 = vmul.f32 %v8682_v62, %v1920_v53 }
 0x15f   : > { %v2067_v33 = vadd.f32 %v8797_v44, %v2028_v57  ;;  %v1687_v63 = vadd.f32 %v1655_v55, %v1586_v35  ;;  %v1486_v25 = vadd.f32 %v1454_v42, %v1385_v54  ;;  %v1656_v27 = vmul.f32 %v8689_v19, %v1921_v34  ;;  %v1722_v55 = vld [vmem:[#allocation2 + $0x1ef] sm:$0xff] }
 0x160   : > { %v1990_v8 = vadd.f32 %v1958_v16, %v1889_v7  ;;  %v1959_v21 = vmul.f32 %v8738_v11, %v1922_v45  ;;  %v1285_v52 = vadd.f32 %v1253_v24, %v1152_v48  ;;  %v1455_v0 = vmul.f32 %v8701_v56, %v1720_v60  ;;  %v1924_v16 = vld [vmem:[#allocation2 + $0x1f1] sm:$0xff] }
 0x161   : > { %7035 = vmatmul.mubr.msk.f32.gmra.mxu1 %vm661_vm0, %v2067_v33  ;;  %v1789_v41 = vadd.f32 %v1757_v18, %v1687_v63  ;;  %v1587_v43 = vadd.f32 %v1555_v30, %v1486_v25  ;;  %v1758_v53 = vmul.f32 %v8744_v13, %v1721_v51  ;;  %v1859_v5 = vmul.f32 %v8710_v31, %v1822_v29  ;;  %v1723_v33 = vld [vmem:[#allocation2 + $0x207] sm:$0xff] }
 0x162   : > { %v2029_v1 = vmul.f32 %v8785_v23, %v1990_v8  ;;  %v1386_v10 = vadd.f32 %v1354_v59, %v1285_v52  ;;  %v1556_v58 = vmul.f32 %v8717_v38, %v8812_v4  ;;  %v1153_v39 = vmul.f32 %v8638_v6, %v1719_v9 }
 0x163   : > { %v1890_v37 = vadd.f32 %v1858_v22, %v1789_v41  ;;  %v1688_v3 = vadd.f32 %v1656_v27, %v1587_v43  ;;  %v1254_v14 = vmul.f32 %v8650_v15, %v1820_v26  ;;  %v1355_v50 = vmul.f32 %v8682_v62, %v1921_v34  ;;  %v1824_v27 = vld [vmem:[#allocation2 + $0x208] sm:$0xff] }
 0x164   : > { %v2068_v20 = vadd.f32 %v8797_v44, %v2029_v1  ;;  %v1960_v46 = vmul.f32 %v8738_v11, %v1923_v49  ;;  %v1487_v61 = vadd.f32 %v1455_v0, %v1386_v10  ;;  %v1657_v47 = vmul.f32 %v8689_v19, %v1922_v45 }
 0x165   : > { %v1991_v32 = vadd.f32 %v1959_v21, %v1890_v37  ;;  %v1790_v17 = vadd.f32 %v1758_v53, %v1688_v3  ;;  %v1286_v28 = vadd.f32 %v1254_v14, %v1153_v39  ;;  %v1456_v9 = vmul.f32 %v8701_v56, %v1721_v51  ;;  %v1925_v37 = vld [vmem:[#allocation2 + $0x209] sm:$0xff] }
 0x166   : > { %7037 = vmatprep.mubr.msk.f32.mxu1 %vm661_vm0, %v2068_v20  ;;  %v1588_v36 = vadd.f32 %v1556_v58, %v1487_v61  ;;  %v1759_v26 = vmul.f32 %v8744_v13, %v1722_v55  ;;  %v1860_v34 = vmul.f32 %v8710_v31, %v1823_v2  ;;  %v1557_v40 = vmul.f32 %v8717_v38, %v1822_v29  ;;  %v1724_v14 = vld [vmem:[#allocation2 + $0x20f] sm:$0xff] }
 0x167   : > { %v2030_v42 = vmul.f32 %v8785_v23, %v1991_v32  ;;  %v1891_v12 = vadd.f32 %v1859_v5, %v1790_v17  ;;  %v1387_v18 = vadd.f32 %v1355_v50, %v1286_v28  ;;  %v1154_v22 = vmul.f32 %v8638_v6, %v1720_v60  ;;  %v1825_v50 = vld [vmem:[#allocation2 + $0x210] sm:$0xff] }
 0x168   : > { %v1689_v57 = vadd.f32 %v1657_v47, %v1588_v36  ;;  %v1961_v35 = vmul.f32 %v8738_v11, %v1924_v16  ;;  %v1255_v54 = vmul.f32 %v8650_v15, %v8812_v4  ;;  %v1356_v30 = vmul.f32 %v8682_v62, %v1922_v45  ;;  %v1725_v36 = vld [vmem:[#allocation2 + $0x227] sm:$0xff] }
 0x169   : > { %v2069_v7 = vadd.f32 %v8797_v44, %v2030_v42  ;;  %v1992_v48 = vadd.f32 %v1960_v46, %v1891_v12  ;;  %v1488_v24 = vadd.f32 %v1456_v9, %v1387_v18  ;;  %v1658_v59 = vmul.f32 %v8689_v19, %v1923_v49 }
 0x16a   : > { %v1791_v63 = vadd.f32 %v1759_v26, %v1689_v57  ;;  %v1760_v25 = vmul.f32 %v8744_v13, %v1723_v33  ;;  %v1287_v60 = vadd.f32 %v1255_v54, %v1154_v22  ;;  %v1457_v8 = vmul.f32 %v8701_v56, %v1722_v55  ;;  %v1826_v54 = vld [vmem:[#allocation2 + $0x228] sm:$0xff] }
 0x16b   : > { %7038 = vmatmul.mubr.msk.f32.gmra.mxu1 %vm661_vm0, %v2069_v7  ;;  %v2031_v4 = vmul.f32 %v8785_v23, %v1992_v48  ;;  %v1589_v21 = vadd.f32 %v1557_v40, %v1488_v24  ;;  %v1861_v45 = vmul.f32 %v8710_v31, %v1824_v27  ;;  %v1558_v52 = vmul.f32 %v8717_v38, %v1823_v2 }
 0x16c   : > { %v1892_v0 = vadd.f32 %v1860_v34, %v1791_v63  ;;  %v1388_v41 = vadd.f32 %v1356_v30, %v1287_v60  ;;  %v1155_v43 = vmul.f32 %v8638_v6, %v1721_v51  ;;  %v1256_v53 = vmul.f32 %v8650_v15, %v1822_v29 }
 0x16d   : > { %v2070_v5 = vadd.f32 %v8797_v44, %v2031_v4  ;;  %v1690_v1 = vadd.f32 %v1658_v59, %v1589_v21  ;;  %v1659_v10 = vmul.f32 %v8689_v19, %v1924_v16  ;;  %v1357_v58 = vmul.f32 %v8682_v62, %v1923_v49 }
 0x16e   : > { %v1993_v39 = vadd.f32 %v1961_v35, %v1892_v0  ;;  %v1489_v3 = vadd.f32 %v1457_v8, %v1388_v41  ;;  %v1288_v20 = vadd.f32 %v1256_v53, %v1155_v43  ;;  %v1458_v46 = vmul.f32 %v8701_v56, %v1723_v33  ;;  %v1926_v35 = vld [vmem:[#allocation2 + $0x211] sm:$0xff] }
 0x16f   : > { %7040 = vmatprep.mubr.msk.f32.mxu1 %vm661_vm0, %v2070_v5  ;;  %v1792_v51 = vadd.f32 %v1760_v25, %v1690_v1  ;;  %v1962_v29 = vmul.f32 %v8738_v11, %v1925_v37  ;;  %v1761_v61 = vmul.f32 %v8744_v13, %v1724_v14  ;;  %v1862_v47 = vmul.f32 %v8710_v31, %v1825_v50  ;;  %v1726_v25 = vld [vmem:[#allocation2 + $0x22f] sm:$0xff] }
 0x170   : > { %v2032_v32 = vmul.f32 %v8785_v23, %v1993_v39  ;;  %v1590_v49 = vadd.f32 %v1558_v52, %v1489_v3  ;;  %v1389_v17 = vadd.f32 %v1357_v58, %v1288_v20  ;;  %v1559_v28 = vmul.f32 %v8717_v38, %v1824_v27  ;;  %v1928_v43 = vld [vmem:[#allocation2 + $0x231] sm:$0xff]  ;;  %v7624_v20 = vld [vmem:[%s7788_s22] sm:$0xff] }
 0x171   : > { %v1893_v9 = vadd.f32 %v1861_v45, %v1792_v51  ;;  %v1156_v26 = vmul.f32 %v8638_v6, %v1722_v55  ;;  %v1257_v34 = vmul.f32 %v8650_v15, %v1823_v2  ;;  %v1358_v40 = vmul.f32 %v8682_v62, %v1924_v16  ;;  %v1927_v2 = vld [vmem:[#allocation2 + $0x229] sm:$0xff] }
 0x172   : > { %v2071_v42 = vadd.f32 %v8797_v44, %v2032_v32  ;;  %v1691_v12 = vadd.f32 %v1659_v10, %v1590_v49  ;;  %v1490_v18 = vadd.f32 %v1458_v46, %v1389_v17  ;;  %v1660_v22 = vmul.f32 %v8689_v19, %v1925_v37  ;;  %v1827_v45 = vld [vmem:[#allocation2 + $0x230] sm:$0xff]  ;;  %v7625_v51 = vld [vmem:[%s7788_s22 + $0x8] sm:$0xff]  ;;  %v7627_v32 = vld [vmem:[%s7788_s22 + $0x18] sm:$0xff] }
 0x173   : > { %v1994_v57 = vadd.f32 %v1962_v29, %v1893_v9  ;;  %v1289_v30 = vadd.f32 %v1257_v34, %v1156_v26  ;;  %v1459_v7 = vmul.f32 %v8701_v56, %v1724_v14  ;;  %v1963_v6 = vmul.f32 %v8738_v11, %v1926_v35  ;;  %v7628_v9 = vld [vmem:[%s7788_s22 + $0x20] sm:$0xff]  ;;  %v7629_v26 = vld [vmem:[%s7788_s22 + $0x28] sm:$0xff] }
 0x174   : > { %7041 = vmatmul.mubr.msk.f32.gmra.mxu1 %vm661_vm0, %v2071_v42  ;;  %v1793_v48 = vadd.f32 %v1761_v61, %v1691_v12  ;;  %v1591_v15 = vadd.f32 %v1559_v28, %v1490_v18  ;;  %v1762_v62 = vmul.f32 %v8744_v13, %v1725_v36  ;;  %v1560_v24 = vmul.f32 %v8717_v38, %v1825_v50  ;;  %v7630_v12 = vld [vmem:[%s7788_s22 + $0x30] sm:$0xff] }
 0x175   : > { %v2033_v55 = vmul.f32 %v8785_v23, %v1994_v57  ;;  %v1390_v16 = vadd.f32 %v1358_v40, %v1289_v30  ;;  %v1863_v63 = vmul.f32 %v8710_v31, %v1826_v54  ;;  %v1661_v60 = vmul.f32 %v8689_v19, %v1926_v35  ;;  %v7632_v30 = vld [vmem:[%s7788_s22 + $0x40] sm:$0xff] }
 0x176   : > { %v1894_v59 = vadd.f32 %v1862_v47, %v1793_v48  ;;  %v1692_v33 = vadd.f32 %v1660_v22, %v1591_v15  ;;  %v1964_v21 = vmul.f32 %v8738_v11, %v1927_v2  ;;  %v1763_v38 = vmul.f32 %v8744_v13, %v1726_v25  ;;  %v7631_v22 = vld [vmem:[%s7788_s22 + $0x38] sm:$0xff]  ;;  %v7633_v48 = vld [vmem:[%s7788_s22 + $0x48] sm:$0xff] }
 0x177   : > { %v2072_v56 = vadd.f32 %v8797_v44, %v2033_v55  ;;  %v1491_v27 = vadd.f32 %v1459_v7, %v1390_v16  ;;  %v1864_v5 = vmul.f32 %v8710_v31, %v1827_v45  ;;  %v1965_v58 = vmul.f32 %v8738_v11, %v1928_v43  ;;  %v7634_v55 = vld [vmem:[%s7788_s22 + $0x50] sm:$0xff]  ;;  %v7635_v16 = vld [vmem:[%s7788_s22 + $0x58] sm:$0xff] }
 0x178   : > { %v1995_v8 = vadd.f32 %v1963_v6, %v1894_v59  ;;  %v1794_v4 = vadd.f32 %v1762_v62, %v1692_v33  ;;  %v7639_v45 = vld [vmem:[%s7788_s22 + $0x78] sm:$0xff] }
 0x179   : > { %7043 = vmatprep.mubr.msk.f32.mxu1 %vm661_vm0, %v2072_v56  ;;  %v1592_v52 = vadd.f32 %v1560_v24, %v1491_v27  ;;  %v7637_v56 = vld [vmem:[%s7788_s22 + $0x68] sm:$0xff] }
 0x17a   : > { %v2034_v0 = vmul.f32 %v8785_v23, %v1995_v8  ;;  %v1895_v41 = vadd.f32 %v1863_v63, %v1794_v4  ;;  %v7636_v63 = vld [vmem:[%s7788_s22 + $0x60] sm:$0xff]  ;;  %v7638_v4 = vld [vmem:[%s7788_s22 + $0x70] sm:$0xff] }
 0x17b   : > { %v1693_v53 = vadd.f32 %v1661_v60, %v1592_v52 }
 0x17c   : > { %v2073_v19 = vadd.f32 %v8797_v44, %v2034_v0  ;;  %v1996_v1 = vadd.f32 %v1964_v21, %v1895_v41  ;;  %v7640_v41 = vld [vmem:[%s7788_s22 + $0x80] sm:$0xff] }
 0x17d   : > { %v1795_v10 = vadd.f32 %v1763_v38, %v1693_v53  ;;  %v7641_v53 = vld [vmem:[%s7788_s22 + $0x88] sm:$0xff] }
 0x17e   : > { %7044 = vmatmul.mubr.msk.f32.gmra.mxu1 %vm661_vm0, %v2073_v19  ;;  %v2035_v39 = vmul.f32 %v8785_v23, %v1996_v1 }
 0x17f   : > { %v1896_v13 = vadd.f32 %v1864_v5, %v1795_v10  ;;  %v7642_v10 = vld [vmem:[%s7788_s22 + $0x90] sm:$0xff] }
 0x180   : > { %v2074_v37 = vadd.f32 %v8797_v44, %v2035_v39  ;;  %v7643_v39 = vld [vmem:[%s7788_s22 + $0x98] sm:$0xff] }
 0x181   : > { %v1997_v3 = vadd.f32 %v1965_v58, %v1896_v13 }
 0x182   : > { %7046 = vmatprep.mubr.msk.f32.mxu1 %vm661_vm0, %v2074_v37 }
 0x183   : > { %v2036_v31 = vmul.f32 %v8785_v23, %v1997_v3  ;;  %v7644_v3 = vld [vmem:[%s7788_s22 + $0xa8] sm:$0xff] }
 0x185   : > { %v2075_v14 = vadd.f32 %v8797_v44, %v2036_v31  ;;  %v7626_v44 = vld [vmem:[%s7788_s22 + $0x10] sm:$0xff] }
 0x187   : > { %7047 = vmatmul.mubr.msk.f32.gmra.mxu1 %vm661_vm0, %v2075_v14 }
 0x1b9   : > { %v7003_v50 = vpop.f32.mrf.mxu0 }
 0x1ba   : > { %v8904_v29 = vadd.f32 %v7625_v51, %v7003_v50  ;;  %v7645_v50 = vld [vmem:[%s7788_s22 + $0xa0] sm:$0xff]  ;;  %v7646_v51 = vld [vmem:[%s7788_s22 + $0xb8] sm:$0xff] }
 0x1bb   : > { %v2240_v11 = vpop.f32.mrf.mxu0 }
 0x1bc   : > { %v8901_v46 = vadd.f32 %v7624_v20, %v2240_v11  ;;  %10715 = vst [vmem:[#allocation5_spill] sm:$0xff] %v8904_v29 }
 0x1be   : > { %10714 = vst [vmem:[#allocation4_spill] sm:$0xff] %v8901_v46  ;;  %7053 = vmatprep.mubr.msk.f32.mxu0 %vm661_vm0, %v8901_v46 }
 0x1bf   : > { %v7006_v61 = vpop.f32.mrf.mxu0  ;;  %7054 = vmatmul.mubr.msk.f32.vlgmr.msra.gmra.mxu0 %vm661_vm0, %v8904_v29 }
 0x1c0   : > { %v8914_v49 = vadd.f32 %v7627_v32, %v7006_v61 }
 0x1c1   : > { %v2250_v23 = vpop.f32.mrf.mxu0 }
 0x1c2   : > { %v8911_v47 = vadd.f32 %v7626_v44, %v2250_v23  ;;  %10717 = vst [vmem:[#allocation7_spill] sm:$0xff] %v8914_v49  ;;  %v7647_v44 = vld [vmem:[%s7788_s22 + $0xb0] sm:$0xff] }
 0x1c4   : > { %10716 = vst [vmem:[#allocation6_spill] sm:$0xff] %v8911_v47  ;;  %7056 = vmatprep.mubr.msk.f32.mxu0 %vm661_vm0, %v8911_v47 }
 0x1c5   : > { %7057 = vmatmul.mubr.msk.f32.gmra.mxu0 %vm661_vm0, %v8914_v49 }
 0x1cc   : > { %v7009_v17 = vpop.f32.mrf.mxu0 }
 0x1cd   : > { %v8924_v34 = vadd.f32 %v7629_v26, %v7009_v17 }
 0x1ce   : > { %v2260_v28 = vpop.f32.mrf.mxu0 }
 0x1cf   : > { %v8921_v36 = vadd.f32 %v7628_v9, %v2260_v28  ;;  %10719 = vst [vmem:[#allocation9_spill] sm:$0xff] %v8924_v34  ;;  %v7648_v28 = vld [vmem:[%s7788_s22 + $0xc8] sm:$0xff] }
 0x1d1   : > { %10718 = vst [vmem:[#allocation8_spill] sm:$0xff] %v8921_v36  ;;  %7059 = vmatprep.mubr.msk.f32.mxu0 %vm661_vm0, %v8921_v36 }
 0x1d2   : > { %7060 = vmatmul.mubr.msk.f32.gmra.mxu0 %vm661_vm0, %v8924_v34 }
 0x1d5   : > { %v7012_v40 = vpop.f32.mrf.mxu0 }
 0x1d6   : > { %v8934_v57 = vadd.f32 %v7631_v22, %v7012_v40  ;;  %v7649_v40 = vld [vmem:[%s7788_s22 + $0xc0] sm:$0xff]  ;;  %v7650_v22 = vld [vmem:[%s7788_s22 + $0xd8] sm:$0xff] }
 0x1d7   : > { %v2270_v42 = vpop.f32.mrf.mxu0 }
 0x1d8   : > { %v8931_v18 = vadd.f32 %v7630_v12, %v2270_v42  ;;  %10721 = vst [vmem:[#allocation11_spill] sm:$0xff] %v8934_v57 }
 0x1da   : > { %10720 = vst [vmem:[#allocation10_spill] sm:$0xff] %v8931_v18  ;;  %7062 = vmatprep.mubr.msk.f32.mxu0 %vm661_vm0, %v8931_v18 }
 0x1db   : > { %7063 = vmatmul.mubr.msk.f32.gmra.mxu0 %vm661_vm0, %v8934_v57 }
 0x1de   : > { %v7015_v35 = vpop.f32.mrf.mxu0 }
 0x1df   : > { %v8944_v6 = vadd.f32 %v7633_v48, %v7015_v35 }
 0x1e0   : > { %v2280_v54 = vpop.f32.mrf.mxu0 }
 0x1e1   : > { %v8941_v7 = vadd.f32 %v7632_v30, %v2280_v54  ;;  %10723 = vst [vmem:[#allocation13_spill] sm:$0xff] %v8944_v6  ;;  %v7651_v30 = vld [vmem:[%s7788_s22 + $0xd0] sm:$0xff] }
 0x1e3   : > { %10722 = vst [vmem:[#allocation12_spill] sm:$0xff] %v8941_v7  ;;  %7065 = vmatprep.mubr.msk.f32.mxu0 %vm661_vm0, %v8941_v7 }
 0x1e4   : > { %7066 = vmatmul.mubr.msk.f32.gmra.mxu0 %vm661_vm0, %v8944_v6 }
 0x1e8   : > { %v7018_v15 = vpop.f32.mrf.mxu0 }
 0x1e9   : > { %v8954_v24 = vadd.f32 %v7635_v16, %v7018_v15 }
 0x1ea   : > { %v2290_v62 = vpop.f32.mrf.mxu0 }
 0x1eb   : > { %v8951_v2 = vadd.f32 %v7634_v55, %v2290_v62  ;;  %10725 = vst [vmem:[#allocation15_spill] sm:$0xff] %v8954_v24  ;;  %v7652_v62 = vld [vmem:[%s7788_s22 + $0xe8] sm:$0xff] }
 0x1ed   : > { %10724 = vst [vmem:[#allocation14_spill] sm:$0xff] %v8951_v2  ;;  %7068 = vmatprep.mubr.msk.f32.mxu0 %vm661_vm0, %v8951_v2 }
 0x1ee   : > { %7069 = vmatmul.mubr.msk.f32.gmra.mxu0 %vm661_vm0, %v8954_v24 }
 0x1f2   : > { %v7021_v59 = vpop.f32.mrf.mxu1 }
 0x1f3   : > { %v8964_v27 = vadd.f32 %v7637_v56, %v7021_v59  ;;  %v7653_v59 = vld [vmem:[%s7788_s22 + $0xe0] sm:$0xff]  ;;  %v7654_v56 = vld [vmem:[%s7788_s22 + $0xf8] sm:$0xff] }
 0x1f4   : > { %v2300_v33 = vpop.f32.mrf.mxu1 }
 0x1f5   : > { %v8961_v25 = vadd.f32 %v7636_v63, %v2300_v33  ;;  %10727 = vst [vmem:[#allocation17_spill] sm:$0xff] %v8964_v27 }
 0x1f7   : > { %10726 = vst [vmem:[#allocation16_spill] sm:$0xff] %v8961_v25  ;;  %7071 = vmatprep.mubr.msk.f32.mxu0 %vm661_vm0, %v8961_v25 }
 0x1f8   : > { %7072 = vmatmul.mubr.msk.f32.gmra.mxu0 %vm661_vm0, %v8964_v27 }
 0x1fb   : > { %v7024_v60 = vpop.f32.mrf.mxu1 }
 0x1fc   : > { %v8974_v52 = vadd.f32 %v7639_v45, %v7024_v60 }
 0x1fd   : > { %v2310_v8 = vpop.f32.mrf.mxu1 }
 0x1fe   : > { %v8971_v21 = vadd.f32 %v7638_v4, %v2310_v8  ;;  %10729 = vst [vmem:[#allocation19_spill] sm:$0xff] %v8974_v52  ;;  %v7655_v4 = vld [vmem:[%s7788_s22 + $0xf0] sm:$0xff] }
 0x200   : > { %10728 = vst [vmem:[#allocation18_spill] sm:$0xff] %v8971_v21  ;;  %7074 = vmatprep.mubr.msk.f32.mxu0 %vm661_vm0, %v8971_v21 }
 0x201   : > { %7075 = vmatmul.mubr.msk.f32.gmra.mxu0 %vm661_vm0, %v8974_v52 }
 0x205   : > { %v7027_v38 = vpop.f32.mrf.mxu1 }
 0x206   : > { %v8984_v5 = vadd.f32 %v7641_v53, %v7027_v38 }
 0x207   : > { %v2320_v0 = vpop.f32.mrf.mxu1 }
 0x208   : > { %v8981_v43 = vadd.f32 %v7640_v41, %v2320_v0  ;;  %10731 = vst [vmem:[#allocation21_spill] sm:$0xff] %v8984_v5 }
 0x20a   : > { %10730 = vst [vmem:[#allocation20_spill] sm:$0xff] %v8981_v43  ;;  %7077 = vmatprep.mubr.msk.f32.mxu0 %vm661_vm0, %v8981_v43 }
 0x20b   : > { %7078 = vmatmul.mubr.msk.f32.gmra.mxu0 %vm661_vm0, %v8984_v5 }
 0x20e   : > { %v7030_v19 = vpop.f32.mrf.mxu1 }
 0x20f   : > { %v8994_v13 = vadd.f32 %v7643_v39, %v7030_v19 }
 0x210   : > { %v2330_v1 = vpop.f32.mrf.mxu1 }
 0x211   : > { %v8991_v58 = vadd.f32 %v7642_v10, %v2330_v1  ;;  %10733 = vst [vmem:[#allocation23_spill] sm:$0xff] %v8994_v13 }
 0x213   : > { %10732 = vst [vmem:[#allocation22_spill] sm:$0xff] %v8991_v58  ;;  %7080 = vmatprep.mubr.msk.f32.mxu0 %vm661_vm0, %v8991_v58 }
 0x214   : > { %7081 = vmatmul.mubr.msk.f32.gmra.mxu0 %vm661_vm0, %v8994_v13 }
 0x218   : > { %v7033_v37 = vpop.f32.mrf.mxu1 }
 0x219   : > { %v9001_v31 = vadd.f32 %v7644_v3, %v7033_v37 }
 0x21a   : > { %v2340_v14 = vpop.f32.mrf.mxu1 }
 0x21b   : > { %10734 = vst [vmem:[#allocation24_spill] sm:$0xff] %v9001_v31  ;;  %v9004_v11 = vadd.f32 %v7645_v50, %v2340_v14 }
 0x21d   : > { %10735 = vst [vmem:[#allocation25_spill] sm:$0xff] %v9004_v11  ;;  %7083 = vmatprep.mubr.msk.f32.mxu0 %vm661_vm0, %v9004_v11 }
 0x21e   : > { %7084 = vmatmul.mubr.msk.f32.gmra.mxu0 %vm661_vm0, %v9001_v31 }
 0x221   : > { %v7036_v20 = vpop.f32.mrf.mxu1 }
 0x222   : > { %v9011_v61 = vadd.f32 %v7646_v51, %v7036_v20  ;;  %v9063_v20 = vld [vmem:[%s10655_s9] ss:$0 sm:$0xff] }
 0x223   : > { %v2350_v23 = vpop.f32.mrf.mxu1 }
 0x224   : > { %10736 = vst [vmem:[#allocation26_spill] sm:$0xff] %v9011_v61  ;;  %v9014_v32 = vadd.f32 %v7647_v44, %v2350_v23 }
 0x226   : > { %10737 = vst [vmem:[#allocation27_spill] sm:$0xff] %v9014_v32  ;;  %7086 = vmatprep.mubr.msk.f32.mxu0 %vm661_vm0, %v9014_v32 }
 0x227   : > { %7087 = vmatmul.mubr.msk.f32.gmra.mxu0 %vm661_vm0, %v9011_v61 }
 0x22b   : > { %v7039_v17 = vpop.f32.mrf.mxu1 }
 0x22c   : > { %v9021_v9 = vadd.f32 %v7648_v28, %v7039_v17 }
 0x22d   : > { %v2360_v26 = vpop.f32.mrf.mxu1 }
 0x22e   : > { %10738 = vst [vmem:[#allocation28_spill] sm:$0xff] %v9021_v9  ;;  %v9024_v42 = vadd.f32 %v7649_v40, %v2360_v26 }
 0x230   : > { %10739 = vst [vmem:[#allocation29_spill] sm:$0xff] %v9024_v42  ;;  %7089 = vmatprep.mubr.msk.f32.mxu0 %vm661_vm0, %v9024_v42 }
 0x231   : > { %7090 = vmatmul.mubr.msk.f32.gmra.mxu0 %vm661_vm0, %v9021_v9 }
 0x234   : > { %v7042_v12 = vpop.f32.mrf.mxu1 }
 0x235   : > { %v9031_v35 = vadd.f32 %v7650_v22, %v7042_v12 }
 0x236   : > { %v2370_v54 = vpop.f32.mrf.mxu1 }
 0x237   : > { %10740 = vst [vmem:[#allocation30_spill] sm:$0xff] %v9031_v35  ;;  %v9034_v48 = vadd.f32 %v7651_v30, %v2370_v54 }
 0x239   : > { %10741 = vst [vmem:[#allocation31_spill] sm:$0xff] %v9034_v48  ;;  %7092 = vmatprep.mubr.msk.f32.mxu0 %vm661_vm0, %v9034_v48 }
 0x23a   : > { %7093 = vmatmul.mubr.msk.f32.gmra.mxu0 %vm661_vm0, %v9031_v35 }
 0x23e   : > { %v7045_v15 = vpop.f32.mrf.mxu1 }
 0x23f   : > { %v9041_v55 = vadd.f32 %v7652_v62, %v7045_v15 }
 0x240   : > { %v2380_v16 = vpop.f32.mrf.mxu1 }
 0x241   : > { %10742 = vst [vmem:[#allocation32_spill] sm:$0xff] %v9041_v55  ;;  %v9044_v33 = vadd.f32 %v7653_v59, %v2380_v16 }
 0x243   : > { %10743 = vst [vmem:[#allocation33_spill] sm:$0xff] %v9044_v33  ;;  %7095 = vmatprep.mubr.msk.f32.mxu0 %vm661_vm0, %v9044_v33 }
 0x244   : > { %7096 = vmatmul.mubr.msk.f32.gmra.mxu0 %vm661_vm0, %v9041_v55 }
 0x247   : > { %v7048_v63 = vpop.f32.mrf.mxu1 }
 0x248   : > { %v9051_v60 = vadd.f32 %v7654_v56, %v7048_v63 }
 0x249   : > { %v2390_v8 = vpop.f32.mrf.mxu1 }
 0x24a   : > { %10744 = vst [vmem:[#allocation34_spill] sm:$0xff] %v9051_v60  ;;  %v9054_v45 = vadd.f32 %v7655_v4, %v2390_v8 }
 0x24c   : > { %10745 = vst [vmem:[#allocation35_spill] sm:$0xff] %v9054_v45  ;;  %7098 = vmatprep.mubr.msk.f32.mxu0 %vm661_vm0, %v9054_v45 }
 0x24d   : > { %7099 = vmatmul.mubr.msk.f32.gmra.mxu0 %vm661_vm0, %v9051_v60 }
 0x27f   : > { %v7055_v38 = vpop.f32.mrf.mxu0 }
 0x280   : > { %v9066_v23 = vadd.f32 %v7055_v38, %v9063_v20 }
 0x281   : > { %v2602_v0 = vpop.f32.mrf.mxu0 }
 0x282   : > { %v9072_v17 = vadd.f32 %v9063_v20, %v2602_v0  ;;  %v3188_v62 = vsel %vm2795_vm1, %v9066_v23, -inf }
 0x284   : > { %v2796_v56 = vsel %vm2795_vm1, %v9072_v17, -inf }
 0x285   : > { %v7058_v41 = vpop.f32.mrf.mxu0 }
 0x286   : > { %v9075_v28 = vadd.f32 %v7058_v41, %v9063_v20 }
 0x287   : > { %v2612_v53 = vpop.f32.mrf.mxu0 }
 0x288   : > { %v9087_v54 = vadd.f32 %v9063_v20, %v2612_v53  ;;  %v3189_v8 = vsel %vm2795_vm1, %v9075_v28, -inf }
 0x292   : > { %v7061_v19 = vpop.f32.mrf.mxu0 }
 0x293   : > { %v9090_v30 = vadd.f32 %v7061_v19, %v9063_v20 }
 0x294   : > { %v2622_v1 = vpop.f32.mrf.mxu0 }
 0x295   : > { %v9110_v4 = vadd.f32 %v9063_v20, %v2622_v1  ;;  %v2797_v1 = vsel %vm2795_vm1, %v9087_v54, -inf }
 0x29b   : > { %v7064_v10 = vpop.f32.mrf.mxu0 }
 0x29c   : > { %v9098_v16 = vadd.f32 %v7064_v10, %v9063_v20 }
 0x29d   : > { %v2632_v39 = vpop.f32.mrf.mxu0 }
 0x29e   : > { %v9113_v38 = vadd.f32 %v9063_v20, %v2632_v39  ;;  %v3190_v39 = vsel %vm2795_vm1, %v9090_v30, -inf }
 0x2a4   : > { %v7067_v37 = vpop.f32.mrf.mxu0 }
 0x2a5   : > { %v9078_v40 = vadd.f32 %v7067_v37, %v9063_v20 }
 0x2a6   : > { %v2642_v3 = vpop.f32.mrf.mxu0 }
 0x2a7   : > { %v9093_v15 = vadd.f32 %v9063_v20, %v2642_v3  ;;  %v3192_v41 = vsel %vm2795_vm1, %v9078_v40, -inf }
 0x2a8   : > { %v3193_v60 = vmax.f32 %v3188_v62, %v3192_v41 }
 0x2a9   : > { %v2800_v37 = vsel %vm2795_vm1, %v9093_v15, -inf }
 0x2aa   : > { %v2801_v35 = vmax.f32 %v2796_v56, %v2800_v37 }
 0x2ae   : > { %v7070_v14 = vpop.f32.mrf.mxu0 }
 0x2af   : > { %v9069_v44 = vadd.f32 %v7070_v14, %v9063_v20 }
 0x2b0   : > { %v2652_v50 = vpop.f32.mrf.mxu0 }
 0x2b1   : > { %v9081_v12 = vadd.f32 %v9063_v20, %v2652_v50  ;;  %v3194_v59 = vsel %vm2795_vm1, %v9069_v44, -inf  ;;  %v3191_v50 = vsel %vm2795_vm1, %v9098_v16, -inf }
 0x2b2   : > { %v3195_v3 = vmax.f32 %v3189_v8, %v3194_v59  ;;  %v2798_v59 = vsel %vm2795_vm1, %v9110_v4, -inf  ;;  %v2799_v8 = vsel %vm2795_vm1, %v9113_v38, -inf }
 0x2b3   : > { %v2802_v53 = vsel %vm2795_vm1, %v9081_v12, -inf }
 0x2b4   : > { %v2803_v45 = vmax.f32 %v2797_v1, %v2802_v53  ;;  %v3200_v9 = vmax.f32 %v3193_v60, %v3195_v3 }
 0x2b8   : > { %v7073_v51 = vpop.f32.mrf.mxu0 }
 0x2b9   : > { %v9084_v22 = vadd.f32 %v7073_v51, %v9063_v20 }
 0x2ba   : > { %v2662_v26 = vpop.f32.mrf.mxu0 }
 0x2bb   : > { %v9103_v63 = vadd.f32 %v9063_v20, %v2662_v26  ;;  %v3196_v19 = vsel %vm2795_vm1, %v9084_v22, -inf }
 0x2bc   : > { %v3197_v55 = vmax.f32 %v3190_v39, %v3196_v19 }
 0x2bd   : > { %v2804_v51 = vsel %vm2795_vm1, %v9103_v63, -inf }
 0x2be   : > { %v2805_v42 = vmax.f32 %v2798_v59, %v2804_v51 }
 0x2c1   : > { %v7076_v0 = vpop.f32.mrf.mxu0 }
 0x2c2   : > { %v9122_v10 = vadd.f32 %v7076_v0, %v9063_v20 }
 0x2c3   : > { %v2672_v14 = vpop.f32.mrf.mxu0 }
 0x2c4   : > { %10746 = vst [vmem:[#allocation36_spill] sm:$0xff] %v9122_v10  ;;  %v3198_v26 = vsel %vm2795_vm1, %v9122_v10, -inf  ;;  %v9137_v0 = vadd.f32 %v9063_v20, %v2672_v14  ;;  %v2808_v14 = vmax.f32 %v2801_v35, %v2803_v45 }
 0x2c5   : > { %v3199_v33 = vmax.f32 %v3191_v50, %v3198_v26 }
 0x2c6   : > { %v2806_v48 = vsel %vm2795_vm1, %v9137_v0, -inf }
 0x2c7   : > { %v3201_v61 = vmax.f32 %v3197_v55, %v3199_v33  ;;  %v2807_v32 = vmax.f32 %v2799_v8, %v2806_v48 }
 0x2c9   : > { %v3202_v31 = vmax.f32 %v3200_v9, %v3201_v61  ;;  %v2809_v62 = vmax.f32 %v2805_v42, %v2807_v32 }
 0x2cb   : > { %v3203_v41 = vrot.slane %v3202_v31, 4  ;;  %v2810_v53 = vmax.f32 %v2808_v14, %v2809_v62  ;;  %v7079_v19 = vpop.f32.mrf.mxu0 }
 0x2cc   : > { %v9146_v1 = vadd.f32 %v7079_v19, %v9063_v20 }
 0x2cd   : > { %v3204_v39 = vmax.f32 %v3202_v31, %v3203_v41  ;;  %v2811_v50 = vrot.slane %v2810_v53, 4 }
 0x2ce   : > { %v2778_v56 = vmul.f32 0.70710677, %v9146_v1 }
 0x2cf   : > { %v2812_v37 = vmax.f32 %v2810_v53, %v2811_v50  ;;  %v3205_v26 = vrot.slane %v3204_v39, 2 }
 0x2d0   : > { %7229 = vmatprep.mubr.msk.f32.mxu0 %vm661_vm0, %v2778_v56 }
 0x2d1   : > { %v2813_v60 = vrot.slane %v2812_v37, 2  ;;  %v3206_v48 = vmax.f32 %v3204_v39, %v3205_v26 }
 0x2d3   : > { %v2814_v55 = vmax.f32 %v2812_v37, %v2813_v60  ;;  %v3207_v61 = vrot.slane %v3206_v48, 1 }
 0x2d5   : > { %v2815_v35 = vrot.slane %v2814_v55, 1  ;;  %v9150_v9 = vmax.f32 %v3206_v48, %v3207_v61 }
 0x2d7   : > { %v2816_v32 = vmax.f32 %v2814_v55, %v2815_v35  ;;  %v3209_v41 = vsub.f32 %v9066_v23, %v9150_v9  ;;  %v3210_v19 = vsub.f32 %v9075_v28, %v9150_v9  ;;  %v3211_v56 = vsub.f32 %v9090_v30, %v9150_v9 }
 0x2d8   : > { %v3212_v60 = vsub.f32 %v9098_v16, %v9150_v9 }
 0x2d9   : > { %v2817_v42 = vsub.f32 %v9072_v17, %v2816_v32  ;;  %v2818_v33 = vsub.f32 %v9087_v54, %v2816_v32  ;;  %v2819_v31 = vsub.f32 %v9110_v4, %v2816_v32  ;;  %v2820_v45 = vsub.f32 %v9113_v38, %v2816_v32 }
 0x2da   : > { %v2822_v3 = vsub.f32 %v9081_v12, %v2816_v32  ;;  %v2821_v51 = vsub.f32 %v9093_v15, %v2816_v32  ;;  %v2823_v39 = vsub.f32 %v9103_v63, %v2816_v32  ;;  %v2824_v37 = vsub.f32 %v9137_v0, %v2816_v32 }
 0x2db   : > { %v2825_v59 = vmul.f32 1.442695, %v2817_v42  ;;  %v2827_v8 = vmul.f32 1.442695, %v2818_v33  ;;  %v2829_v14 = vmul.f32 1.442695, %v2819_v31  ;;  %v3213_v42 = vsub.f32 %v9078_v40, %v9150_v9 }
 0x2dc   : > { %v2831_v62 = vmul.f32 1.442695, %v2820_v45  ;;  %v2833_v53 = vmul.f32 1.442695, %v2821_v51  ;;  %v2835_v50 = vmul.f32 1.442695, %v2822_v3  ;;  %v3214_v32 = vsub.f32 %v9069_v44, %v9150_v9 }
 0x2dd   : > { %7413 = vpow2.f32 %v2825_v59  ;;  %v3217_v26 = vmul.f32 1.442695, %v3209_v41  ;;  %v3219_v55 = vmul.f32 1.442695, %v3210_v19  ;;  %v3221_v48 = vmul.f32 1.442695, %v3211_v56 }
 0x2de   : > { %7415 = vpow2.f32 %v2827_v8  ;;  %v2837_v35 = vmul.f32 1.442695, %v2823_v39  ;;  %v2839_v61 = vmul.f32 1.442695, %v2824_v37  ;;  %v3223_v33 = vmul.f32 1.442695, %v3212_v60 }
 0x2df   : > { %7417 = vpow2.f32 %v2829_v14  ;;  %v3225_v31 = vmul.f32 1.442695, %v3213_v42  ;;  %v3215_v8 = vsub.f32 %v9084_v22, %v9150_v9  ;;  %v3227_v14 = vmul.f32 1.442695, %v3214_v32 }
 0x2e0   : > { %7419 = vpow2.f32 %v2831_v62 }
 0x2e1   : > { %7421 = vpow2.f32 %v2833_v53  ;;  %v3229_v60 = vmul.f32 1.442695, %v3215_v8 }
 0x2e2   : > { %7423 = vpow2.f32 %v2835_v50 }
 0x2e3   : > { %7425 = vpow2.f32 %v3217_v26  ;;  %v3216_v26 = vsub.f32 %v9122_v10, %v9150_v9 }
 0x2e4   : > { %7427 = vpow2.f32 %v3219_v55 }
 0x2e5   : > { %7429 = vpow2.f32 %v3221_v48 }
 0x2e6   : > { %7431 = vpow2.f32 %v2837_v35 }
 0x2e7   : > { %7433 = vpow2.f32 %v2839_v61 }
 0x2e8   : > { %7435 = vpow2.f32 %v3223_v33 }
 0x2e9   : > { %7437 = vpow2.f32 %v3225_v31 }
 0x2ea   : > { %v9172_v45 = vpop.eup %7413  ;;  %7439 = vpow2.f32 %v3227_v14  ;;  %v3231_v14 = vmul.f32 1.442695, %v3216_v26 }
 0x2eb   : > { %v9174_v3 = vpop.eup %7415  ;;  %v2841_v51 = vsel %vm2795_vm1, %v9172_v45, 0.0  ;;  %7441 = vpow2.f32 %v3229_v60 }
 0x2ec   : > { %v9178_v59 = vpop.eup %7417  ;;  %v2842_v62 = vsel %vm2795_vm1, %v9174_v3, 0.0  ;;  %7443 = vpow2.f32 %v3231_v14 }
 0x2ed   : > { %v9184_v41 = vpop.eup %7419  ;;  %v2843_v53 = vadd.f32 %v2842_v62, %v2841_v51  ;;  %v2844_v39 = vsel %vm2795_vm1, %v9178_v59, 0.0 }
 0x2ee   : > { %v9186_v19 = vpop.eup %7421  ;;  %v2846_v55 = vsel %vm2795_vm1, %v9184_v41, 0.0 }
 0x2ef   : > { %v9190_v50 = vpop.eup %7423  ;;  %v2845_v56 = vadd.f32 %v2844_v39, %v2843_v53  ;;  %v2848_v33 = vsel %vm2795_vm1, %v9186_v19, 0.0 }
 0x2f0   : > { %v9192_v37 = vpop.eup %7425  ;;  %v2850_v62 = vsel %vm2795_vm1, %v9190_v50, 0.0 }
 0x2f1   : > { %v9198_v48 = vpop.eup %7427  ;;  %v2847_v35 = vadd.f32 %v2846_v55, %v2845_v56  ;;  %v3233_v61 = vsel %vm2795_vm1, %v9192_v37, 0.0 }
 0x2f2   : > { %v9202_v42 = vpop.eup %7429  ;;  %v3234_v32 = vsel %vm2795_vm1, %v9198_v48, 0.0 }
 0x2f3   : > { %v9208_v9 = vpop.eup %7431  ;;  %v2849_v31 = vadd.f32 %v2848_v33, %v2847_v35  ;;  %v3235_v51 = vadd.f32 %v3234_v32, %v3233_v61  ;;  %v3236_v53 = vsel %vm2795_vm1, %v9202_v42, 0.0 }
 0x2f4   : > { %v7434_v8 = vpop.eup %7433  ;;  %v2852_v11 = vsel %vm2795_vm1, %v9208_v9, 0.0 }
 0x2f5   : > { %v9214_v39 = vpop.eup %7435  ;;  %v2851_v56 = vadd.f32 %v2850_v62, %v2849_v31  ;;  %v3237_v55 = vadd.f32 %v3236_v53, %v3235_v51  ;;  %v2854_v35 = vsel %vm2795_vm1, %v7434_v8, 0.0 }
 0x2f6   : > { %v3238_v26 = vsel %vm2795_vm1, %v9214_v39, 0.0  ;;  %v9221_v60 = vpop.eup %7437 }
 0x2f7   : > { %v2853_v13 = vadd.f32 %v2852_v11, %v2851_v56  ;;  %v3239_v33 = vadd.f32 %v3238_v26, %v3237_v55  ;;  %v3240_v58 = vsel %vm2795_vm1, %v9221_v60, 0.0  ;;  %v9225_v31 = vpop.eup %7439 }
 0x2f8   : > { %v3242_v11 = vsel %vm2795_vm1, %v9225_v31, 0.0  ;;  %v9229_v14 = vpop.eup %7441 }
 0x2f9   : > { %v2855_v61 = vadd.f32 %v2854_v35, %v2853_v13  ;;  %v3241_v62 = vadd.f32 %v3240_v58, %v3239_v33  ;;  %v3244_v13 = vsel %vm2795_vm1, %v9229_v14, 0.0  ;;  %v9233_v55 = vpop.eup %7443  ;;  %v9237_v33 = vpop.f32.mrf.mxu0 }
 0x2fa   : > { %v3246_v58 = vsel %vm2795_vm1, %v9233_v55, 0.0 }
 0x2fb   : > { %v2856_v32 = vrot.slane %v2855_v61, 4  ;;  %v3243_v5 = vadd.f32 %v3242_v11, %v3241_v62  ;;  %v9239_v52 = vpop.f32.mrf.mxu0 }
 0x2fd   : > { %v2857_v51 = vadd.f32 %v2856_v32, %v2855_v61  ;;  %v3245_v26 = vadd.f32 %v3244_v13, %v3243_v5  ;;  %v2692_v62 = vpop.f32.mrf.mxu0 }
 0x2ff   : > { %v2858_v53 = vrot.slane %v2857_v51, 2  ;;  %v3247_v61 = vadd.f32 %v3246_v58, %v3245_v26 }
 0x301   : > { %v2859_v56 = vadd.f32 %v2858_v53, %v2857_v51  ;;  %v3248_v32 = vrot.slane %v3247_v61, 4 }
 0x303   : > { %v2860_v43 = vrot.slane %v2859_v56, 1  ;;  %v3249_v51 = vadd.f32 %v3248_v32, %v3247_v61 }
 0x305   : > { %v2861_v35 = vadd.f32 %v2860_v43, %v2859_v56  ;;  %v3250_v27 = vrot.slane %v3249_v51, 2  ;;  %v9243_v43 = vpop.f32.mrf.mxu0 }
 0x307   : > { %7445 = vrcp.f32 %v2861_v35  ;;  %v3251_v13 = vadd.f32 %v3250_v27, %v3249_v51  ;;  %v2702_v35 = vpop.f32.mrf.mxu0 }
 0x309   : > { %v9253_v58 = vpop.f32.mrf.mxu0 }
 0x314   : > { %v7446_v53 = vpop.eup %7445 }
 0x315   : > { %v2865_v11 = vmul.f32 %v7446_v53, %v9178_v59  ;;  %v2863_v21 = vmul.f32 %v7446_v53, %v9172_v45  ;;  %v2866_v5 = vmul.f32 %v7446_v53, %v9184_v41  ;;  %v2864_v56 = vmul.f32 %v7446_v53, %v9174_v3  ;;  %v2712_v3 = vpop.f32.mrf.mxu0 }
 0x316   : > { %v2868_v45 = vmul.f32 %v7446_v53, %v9190_v50  ;;  %v3252_v59 = vrot.slane %v3251_v13, 1  ;;  %v2867_v26 = vmul.f32 %v7446_v53, %v9186_v19  ;;  %v2869_v27 = vmul.f32 %v7446_v53, %v9208_v9 }
 0x317   : > { %2883 = vrot.lane.b32.xlu1 %v2865_v11, %s7668_s23  ;;  %2879 = vrot.lane.b32.xlu0 %v2863_v21, %s7668_s23  ;;  %v2870_v21 = vmul.f32 %v7446_v53, %v7434_v8  ;;  %v9260_v50 = vpop.f32.mrf.mxu0 }
 0x318   : > { %v3253_v41 = vadd.f32 %v3252_v59, %v3251_v13 }
 0x319   : > { %v2722_v19 = vpop.f32.mrf.mxu0 }
 0x31a   : > { %7447 = vrcp.f32 %v3253_v41 }
 0x31b   : > { %2885 = vrot.lane.b32.xlu1 %v2866_v5, %s7668_s23  ;;  %2881 = vrot.lane.b32.xlu0 %v2864_v56, %s7668_s23  ;;  %v7094_v9 = vpop.f32.mrf.mxu0 }
 0x31d   : > { %v2732_v61 = vpop.f32.mrf.mxu0 }
 0x31f   : > { %2889 = vrot.lane.b32.xlu1 %v2868_v45, %s7668_s23  ;;  %2887 = vrot.lane.b32.xlu0 %v2867_v26, %s7668_s23  ;;  %v7097_v51 = vpop.f32.mrf.mxu0 }
 0x321   : > { %v2742_v11 = vpop.f32.mrf.mxu0 }
 0x322   : > { %v9294_v26 = vadd.f32 %v9063_v20, %v2742_v11 }
 0x323   : > { %2893 = vrot.lane.b32.xlu1 %v2870_v21, %s7668_s23  ;;  %2891 = vrot.lane.b32.xlu0 %v2869_v27, %s7668_s23  ;;  %v7100_v56 = vpop.f32.mrf.mxu0  ;;  %v9304_v21 = vadd.f32 %v9063_v20, %v2692_v62  ;;  %v9312_v27 = vadd.f32 %v9063_v20, %v2722_v19  ;;  %v9321_v62 = vadd.f32 %v9063_v20, %v9237_v33 }
 0x325   : > { %v2752_v45 = vpop.f32.mrf.mxu0  ;;  %v3580_v11 = vsel %vm2795_vm1, %v9304_v21, -inf  ;;  %v3579_v33 = vsel %vm2795_vm1, %v9321_v62, -inf }
 0x327   : > { %2955 = vrot.lane.b32.xlu1 %v9103_v63, %s7669_s26  ;;  %2957 = vrot.lane.b32.xlu0 %v9137_v0, %s7669_s26  ;;  %v7448_v8 = vpop.eup %7447 }
 0x328   : > { %v3255_v32 = vmul.f32 %v7448_v8, %v9192_v37  ;;  %v3256_v53 = vmul.f32 %v7448_v8, %v9198_v48  ;;  %v3257_v5 = vmul.f32 %v7448_v8, %v9202_v42  ;;  %v3258_v13 = vmul.f32 %v7448_v8, %v9214_v39 }
 0x329   : > { %v9287_v37 = vadd.f32 %v9063_v20, %v2702_v35  ;;  %v3259_v59 = vmul.f32 %v7448_v8, %v9221_v60  ;;  %v9291_v48 = vadd.f32 %v9063_v20, %v2712_v3  ;;  %v9297_v42 = vadd.f32 %v9063_v20, %v2752_v45 }
 0x32a   : > { %v9301_v39 = vadd.f32 %v9063_v20, %v2732_v61  ;;  %v3260_v35 = vmul.f32 %v7448_v8, %v9225_v31  ;;  %v3587_v3 = vsel %vm2795_vm1, %v9294_v26, -inf  ;;  %v3261_v19 = vmul.f32 %v7448_v8, %v9229_v14 }
 0x32b   : > { %2951 = vrot.lane.b32.xlu1 %v9093_v15, %s7669_s26  ;;  %2953 = vrot.lane.b32.xlu0 %v9081_v12, %s7669_s26  ;;  %v3581_v60 = vsel %vm2795_vm1, %v9287_v37, -inf  ;;  %v3582_v41 = vsel %vm2795_vm1, %v9291_v48, -inf  ;;  %v3589_v61 = vsel %vm2795_vm1, %v9297_v42, -inf }
 0x32c   : > { %v3585_v31 = vsel %vm2795_vm1, %v9301_v39, -inf }
 0x32f   : > { %2947 = vrot.lane.b32.xlu1 %v9110_v4, %s7669_s26  ;;  %2949 = vrot.lane.b32.xlu0 %v9113_v38, %s7669_s26 }
 0x333   : > { %2943 = vrot.lane.b32.xlu1 %v9072_v17, %s7669_s26  ;;  %2945 = vrot.lane.b32.xlu0 %v9087_v54, %s7669_s26 }
 0x337   : > { %3271 = vrot.lane.b32.xlu1 %v3255_v32, %s7668_s23  ;;  %v3588_v32 = vmax.f32 %v3581_v60, %v3587_v3  ;;  %v9339_v3 = vadd.f32 %v9243_v43, %v9063_v20  ;;  %v9358_v43 = vadd.f32 %v9239_v52, %v9063_v20 }
 0x33b   : > { %3273 = vrot.lane.b32.xlu1 %v3256_v53, %s7668_s23  ;;  %v3590_v53 = vmax.f32 %v3582_v41, %v3589_v61  ;;  %v9343_v61 = vadd.f32 %v9253_v58, %v9063_v20  ;;  %v3973_v58 = vsel %vm2795_vm1, %v9339_v3, -inf }
 0x33f   : > { %3275 = vrot.lane.b32.xlu1 %v3257_v5, %s7668_s23  ;;  %v3583_v5 = vsel %vm2795_vm1, %v9312_v27, -inf }
 0x340   : > { %v3584_v45 = vmax.f32 %v3579_v33, %v3583_v5  ;;  %v3971_v33 = vsel %vm2795_vm1, %v9146_v1, -inf }
 0x343   : > { %3277 = vrot.lane.b32.xlu1 %v3258_v13, %s7668_s23  ;;  %v3586_v13 = vmax.f32 %v3580_v11, %v3585_v31  ;;  %v9346_v31 = vadd.f32 %v7097_v51, %v9063_v20  ;;  %v3974_v51 = vsel %vm2795_vm1, %v9343_v61, -inf }
 0x345   : > { %v3591_v60 = vmax.f32 %v3584_v45, %v3586_v13  ;;  %v3972_v13 = vsel %vm2795_vm1, %v9358_v43, -inf }
 0x347   : > { %3279 = vrot.lane.b32.xlu1 %v3259_v59, %s7668_s23  ;;  %v3592_v59 = vmax.f32 %v3588_v32, %v3590_v53  ;;  %v3979_v53 = vsel %vm2795_vm1, %v9346_v31, -inf }
 0x348   : > { %v3980_v11 = vmax.f32 %v3973_v58, %v3979_v53 }
 0x349   : > { %v3593_v14 = vmax.f32 %v3591_v60, %v3592_v59 }
 0x34b   : > { %3281 = vrot.lane.b32.xlu1 %v3260_v35, %s7668_s23  ;;  %v3262_v35 = vmul.f32 %v7448_v8, %v9233_v55  ;;  %v3594_v41 = vrot.slane %v3593_v14, 4  ;;  %v9349_v55 = vadd.f32 %v7100_v56, %v9063_v20  ;;  %v9354_v8 = vadd.f32 %v7094_v9, %v9063_v20 }
 0x34c   : > { %v9366_v56 = vadd.f32 %v9260_v50, %v9063_v20 }
 0x34d   : > { %v3595_v32 = vmax.f32 %v3593_v14, %v3594_v41  ;;  %v3981_v9 = vsel %vm2795_vm1, %v9349_v55, -inf  ;;  %v3977_v52 = vsel %vm2795_vm1, %v9354_v8, -inf }
 0x34e   : > { %v3982_v5 = vmax.f32 %v3974_v51, %v3981_v9  ;;  %v3975_v20 = vsel %vm2795_vm1, %v9366_v56, -inf  ;;  %v3978_v50 = vmax.f32 %v3972_v13, %v3977_v52 }
 0x34f   : > { %3283 = vrot.lane.b32.xlu1 %v3261_v19, %s7668_s23  ;;  %v3596_v19 = vrot.slane %v3595_v32, 2  ;;  %v3976_v59 = vmax.f32 %v3971_v33, %v3975_v20 }
 0x351   : > { %v3597_v45 = vmax.f32 %v3595_v32, %v3596_v19  ;;  %v3983_v60 = vmax.f32 %v3976_v59, %v3978_v50 }
 0x353   : > { %3285 = vrot.lane.b32.xlu1 %v3262_v35, %s7668_s23  ;;  %v3984_v35 = vmax.f32 %v3980_v11, %v3982_v5  ;;  %v3598_v14 = vrot.slane %v3597_v45, 1 }
 0x355   : > { %v3985_v41 = vmax.f32 %v3983_v60, %v3984_v35  ;;  %v3599_v58 = vmax.f32 %v3597_v45, %v3598_v14 }
 0x357   : > { %3349 = vrot.lane.b32.xlu1 %v9122_v10, %s7669_s26  ;;  %v3986_v51 = vrot.slane %v3985_v41, 4  ;;  %v3600_v53 = vsub.f32 %v9321_v62, %v3599_v58  ;;  %v3601_v32 = vsub.f32 %v9304_v21, %v3599_v58  ;;  %v3602_v5 = vsub.f32 %v9287_v37, %v3599_v58 }
 0x358   : > { %v3603_v20 = vsub.f32 %v9291_v48, %v3599_v58  ;;  %v3604_v45 = vsub.f32 %v9312_v27, %v3599_v58  ;;  %v3605_v60 = vsub.f32 %v9301_v39, %v3599_v58 }
 0x359   : > { %v3987_v9 = vmax.f32 %v3985_v41, %v3986_v51  ;;  %v3608_v52 = vmul.f32 1.442695, %v3600_v53  ;;  %v3610_v11 = vmul.f32 1.442695, %v3601_v32  ;;  %v3612_v50 = vmul.f32 1.442695, %v3602_v5 }
 0x35a   : > { %v3614_v59 = vmul.f32 1.442695, %v3603_v20  ;;  %v3616_v14 = vmul.f32 1.442695, %v3604_v45  ;;  %v3606_v32 = vsub.f32 %v9294_v26, %v3599_v58 }
 0x35b   : > { %3347 = vrot.lane.b32.xlu1 %v9084_v22, %s7669_s26  ;;  %v3988_v19 = vrot.slane %v3987_v9, 2  ;;  %7449 = vpow2.f32 %v3608_v52  ;;  %v3618_v52 = vmul.f32 1.442695, %v3605_v60 }
 0x35c   : > { %7451 = vpow2.f32 %v3610_v11  ;;  %v3620_v45 = vmul.f32 1.442695, %v3606_v32 }
 0x35d   : > { %v3989_v13 = vmax.f32 %v3987_v9, %v3988_v19  ;;  %7453 = vpow2.f32 %v3612_v50 }
 0x35e   : > { %7455 = vpow2.f32 %v3614_v59 }
 0x35f   : > { %3345 = vrot.lane.b32.xlu1 %v9069_v44, %s7669_s26  ;;  %v3990_v33 = vrot.slane %v3989_v13, 1  ;;  %7457 = vpow2.f32 %v3616_v14 }
 0x360   : > { %7459 = vpow2.f32 %v3618_v52 }
 0x361   : > { %v9395_v35 = vmax.f32 %v3989_v13, %v3990_v33  ;;  %v3607_v33 = vsub.f32 %v9297_v42, %v3599_v58 }
 0x363   : > { %3343 = vrot.lane.b32.xlu1 %v9078_v40, %s7669_s26  ;;  %v3992_v51 = vsub.f32 %v9146_v1, %v9395_v35  ;;  %v3993_v9 = vsub.f32 %v9358_v43, %v9395_v35  ;;  %v3622_v24 = vmul.f32 1.442695, %v3607_v33  ;;  %v3995_v58 = vsub.f32 %v9343_v61, %v9395_v35 }
 0x365   : > { %v4000_v20 = vmul.f32 1.442695, %v3992_v51  ;;  %v4002_v50 = vmul.f32 1.442695, %v3993_v9  ;;  %v4006_v33 = vmul.f32 1.442695, %v3995_v58 }
 0x367   : > { %3341 = vrot.lane.b32.xlu1 %v9098_v16, %s7669_s26  ;;  %7461 = vpow2.f32 %v4000_v20 }
 0x368   : > { %v9398_v41 = vpop.eup %7449  ;;  %7463 = vpow2.f32 %v4002_v50  ;;  %v3996_v50 = vsub.f32 %v9366_v56, %v9395_v35 }
 0x369   : > { %v9402_v53 = vpop.eup %7451  ;;  %v3624_v5 = vsel %vm2795_vm1, %v9398_v41, 0.0  ;;  %7465 = vpow2.f32 %v3620_v45 }
 0x36a   : > { %v3625_v13 = vsel %vm2795_vm1, %v9402_v53, 0.0  ;;  %v9412_v59 = vpop.eup %7453  ;;  %7467 = vpow2.f32 %v3622_v24  ;;  %v3997_v24 = vsub.f32 %v9354_v8, %v9395_v35 }
 0x36b   : > { %3339 = vrot.lane.b32.xlu1 %v9090_v30, %s7669_s26  ;;  %v3626_v60 = vadd.f32 %v3625_v13, %v3624_v5  ;;  %v3627_v51 = vsel %vm2795_vm1, %v9412_v59, 0.0  ;;  %v9418_v9 = vpop.eup %7455 }
 0x36c   : > { %v3629_v13 = vsel %vm2795_vm1, %v9418_v9, 0.0  ;;  %v9424_v20 = vpop.eup %7457 }
 0x36d   : > { %v3628_v52 = vadd.f32 %v3627_v51, %v3626_v60  ;;  %v3631_v60 = vsel %vm2795_vm1, %v9424_v20, 0.0 }
 0x36f   : > { %3337 = vrot.lane.b32.xlu1 %v9075_v28, %s7669_s26 }
 0x389   : > { %v2884_v19 = vpop.permute.xlu1 %2883  ;;  %v2880_v11 = vpop.permute.xlu0 %2879 }
 0x38a   : > { %2903 = vxpose.xlu0.b32.start [1/8] (short) (narrow) %v2880_v11, 16  ;;  %v3994_v11 = vsub.f32 %v9339_v3, %v9395_v35 }
 0x38c   : > { %v4004_v2 = vmul.f32 1.442695, %v3994_v11  ;;  %v9430_v11 = vpop.eup %7459 }
 0x38d   : > { %v2886_v25 = vpop.permute.xlu1 %2885  ;;  %v2882_v14 = vpop.permute.xlu0 %2881 }
 0x38e   : > { %2904 = vxpose.xlu0.b32.cont [2/8] (short) (narrow) %v2882_v14, 16  ;;  %v3630_v14 = vadd.f32 %v3629_v13, %v3628_v52  ;;  %7469 = vpow2.f32 %v4004_v2  ;;  %v9434_v58 = vpop.eup %7461  ;;  %v3998_v13 = vsub.f32 %v9346_v31, %v9395_v35 }
 0x38f   : > { %7471 = vpow2.f32 %v4006_v33  ;;  %v9436_v2 = vpop.eup %7463 }
 0x390   : > { %v3632_v7 = vadd.f32 %v3631_v60, %v3630_v14  ;;  %v9440_v52 = vpop.eup %7465  ;;  %v4017_v60 = vsel %vm2795_vm1, %v9436_v2, 0.0 }
 0x391   : > { %v2890_v32 = vpop.permute.xlu1 %2889  ;;  %v2888_v5 = vpop.permute.xlu0 %2887  ;;  %v3635_v18 = vsel %vm2795_vm1, %v9440_v52, 0.0 }
 0x392   : > { %2905 = vxpose.xlu0.b32.cont [3/8] (short) (narrow) %v2884_v19, 16  ;;  %v4008_v19 = vmul.f32 1.442695, %v3996_v50  ;;  %v4010_v50 = vmul.f32 1.442695, %v3997_v24  ;;  %v9450_v34 = vpop.eup %7467  ;;  %v3999_v24 = vsub.f32 %v9349_v55, %v9395_v35 }
 0x394   : > { %7473 = vpow2.f32 %v4008_v19  ;;  %v4014_v49 = vmul.f32 1.442695, %v3999_v24 }
 0x395   : > { %v2894_v45 = vpop.permute.xlu1 %2893  ;;  %v2892_v6 = vpop.permute.xlu0 %2891  ;;  %7475 = vpow2.f32 %v4010_v50 }
 0x396   : > { %2906 = vxpose.xlu0.b32.cont [4/8] (short) (narrow) %v2886_v25, 16  ;;  %v3633_v25 = vsel %vm2795_vm1, %v9430_v11, 0.0 }
 0x397   : > { %v3634_v14 = vadd.f32 %v3633_v25, %v3632_v7  ;;  %v4012_v7 = vmul.f32 1.442695, %v3998_v13 }
 0x399   : > { %v2956_v51 = vpop.permute.xlu1 %2955  ;;  %v2958_v57 = vpop.permute.xlu0 %2957  ;;  %v3636_v19 = vadd.f32 %v3635_v18, %v3634_v14  ;;  %7477 = vpow2.f32 %v4012_v7 }
 0x39a   : > { %2907 = vxpose.xlu0.b32.cont [5/8] (short) (narrow) %v2888_v5, 16  ;;  %7101 = vmatprep.subr.mxu1 %v2958_v57  ;;  %7479 = vpow2.f32 %v4014_v49 }
 0x39b   : > { %7102 = vmatpush3.msra.mxu1 %v2958_v57  ;;  %v4016_v57 = vsel %vm2795_vm1, %v9434_v58, 0.0 }
 0x39c   : > { %7103 = vmatprep.subr.mxu1 %v2956_v51  ;;  %v4018_v36 = vadd.f32 %v4017_v60, %v4016_v57 }
 0x39d   : > { %v2952_v33 = vpop.permute.xlu1 %2951  ;;  %7104 = vmatpush3.msra.mxu1 %v2956_v51  ;;  %v2954_v5 = vpop.permute.xlu0 %2953 }
 0x39e   : > { %2908 = vxpose.xlu0.b32.cont [6/8] (short) (narrow) %v2890_v32, 16  ;;  %7105 = vmatprep.subr.mxu1 %v2954_v5  ;;  %v9454_v51 = vpop.eup %7469 }
 0x39f   : > { %7106 = vmatpush3.msra.mxu1 %v2954_v5  ;;  %v3637_v5 = vsel %vm2795_vm1, %v9450_v34, 0.0  ;;  %v4019_v13 = vsel %vm2795_vm1, %v9454_v51, 0.0  ;;  %v9460_v18 = vpop.eup %7471 }
 0x3a0   : > { %7107 = vmatprep.subr.mxu1 %v2952_v33  ;;  %v3638_v50 = vadd.f32 %v3637_v5, %v3636_v19  ;;  %v4021_v60 = vsel %vm2795_vm1, %v9460_v18, 0.0 }
 0x3a1   : > { %v2948_v32 = vpop.permute.xlu1 %2947  ;;  %7108 = vmatpush3.msra.mxu1 %v2952_v33  ;;  %v2950_v25 = vpop.permute.xlu0 %2949 }
 0x3a2   : > { %2909 = vxpose.xlu0.b32.cont [7/8] (short) (narrow) %v2892_v6, 16  ;;  %7109 = vmatprep.subr.mxu1 %v2950_v25  ;;  %v4020_v6 = vadd.f32 %v4019_v13, %v4018_v36  ;;  %v3639_v57 = vrot.slane %v3638_v50, 4  ;;  %v9464_v24 = vpop.eup %7473 }
 0x3a3   : > { %7110 = vmatpush3.msra.mxu1 %v2950_v25  ;;  %v9468_v36 = vpop.eup %7475 }
 0x3a4   : > { %7111 = vmatprep.subr.mxu1 %v2948_v32  ;;  %v4022_v7 = vadd.f32 %v4021_v60, %v4020_v6  ;;  %v3640_v25 = vadd.f32 %v3639_v57, %v3638_v50  ;;  %v4025_v13 = vsel %vm2795_vm1, %v9468_v36, 0.0 }
 0x3a5   : > { %v2944_v35 = vpop.permute.xlu1 %2943  ;;  %7112 = vmatpush3.msra.mxu1 %v2948_v32  ;;  %v2946_v33 = vpop.permute.xlu0 %2945 }
 0x3a6   : > { %2910 = vxpose.xlu0.b32.end [8/8] (short) (narrow) %v2894_v45, 16  ;;  %7113 = vmatprep.subr.mxu1 %v2946_v33  ;;  %v4023_v45 = vsel %vm2795_vm1, %v9464_v24, 0.0  ;;  %v3641_v5 = vrot.slane %v3640_v25, 2 }
 0x3a7   : > { %7114 = vmatpush3.msra.mxu1 %v2946_v33  ;;  %v4024_v49 = vadd.f32 %v4023_v45, %v4022_v7  ;;  %v9472_v33 = vpop.eup %7477 }
 0x3a8   : > { %7115 = vmatprep.subr.mxu1 %v2944_v35  ;;  %v3642_v6 = vadd.f32 %v3641_v5, %v3640_v25  ;;  %v4027_v50 = vsel %vm2795_vm1, %v9472_v33, 0.0  ;;  %v7480_v57 = vpop.eup %7479 }
 0x3a9   : > { %v3272_v14 = vpop.permute.xlu1 %3271  ;;  %7116 = vmatpush3.msra.mxu1 %v2944_v35  ;;  %v4026_v35 = vadd.f32 %v4025_v13, %v4024_v49 }
 0x3aa   : > { %3295 = vxpose.xlu1.b32.start [1/8] (short) (narrow) %v3272_v14, 16  ;;  %v3643_v45 = vrot.slane %v3642_v6, 1 }
 0x3ab   : > { %v4028_v60 = vadd.f32 %v4027_v50, %v4026_v35 }
 0x3ac   : > { %v3644_v46 = vadd.f32 %v3643_v45, %v3642_v6 }
 0x3ad   : > { %v3274_v19 = vpop.permute.xlu1 %3273 }
 0x3ae   : > { %3296 = vxpose.xlu1.b32.cont [2/8] (short) (narrow) %v3274_v19, 16  ;;  %v4029_v19 = vsel %vm2795_vm1, %v7480_v57, 0.0  ;;  %7481 = vrcp.f32 %v3644_v46 }
 0x3af   : > { %v4030_v47 = vadd.f32 %v4029_v19, %v4028_v60 }
 0x3b1   : > { %v3276_v32 = vpop.permute.xlu1 %3275  ;;  %v4031_v10 = vrot.slane %v4030_v47, 4 }
 0x3b2   : > { %3297 = vxpose.xlu1.b32.cont [3/8] (short) (narrow) %v3276_v32, 16 }
 0x3b3   : > { %v4032_v25 = vadd.f32 %v4031_v10, %v4030_v47 }
 0x3b5   : > { %v3278_v14 = vpop.permute.xlu1 %3277  ;;  %v4033_v5 = vrot.slane %v4032_v25, 2 }
 0x3b6   : > { %3298 = vxpose.xlu1.b32.cont [4/8] (short) (narrow) %v3278_v14, 16 }
 0x3b7   : > { %v4034_v13 = vadd.f32 %v4033_v5, %v4032_v25 }
 0x3b9   : > { %v3280_v7 = vpop.permute.xlu1 %3279  ;;  %v4035_v35 = vrot.slane %v4034_v13, 1 }
 0x3ba   : > { %3299 = vxpose.xlu1.b32.cont [5/8] (short) (narrow) %v3280_v7, 16 }
 0x3bb   : > { %v7482_v14 = vpop.eup %7481  ;;  %v4036_v60 = vadd.f32 %v4035_v35, %v4034_v13 }
 0x3bc   : > { %v3646_v50 = vmul.f32 %v7482_v14, %v9398_v41  ;;  %v3648_v46 = vmul.f32 %v7482_v14, %v9412_v59  ;;  %v3649_v47 = vmul.f32 %v7482_v14, %v9418_v9  ;;  %v3650_v10 = vmul.f32 %v7482_v14, %v9424_v20 }
 0x3bd   : > { %v3282_v29 = vpop.permute.xlu1 %3281  ;;  %7483 = vrcp.f32 %v4036_v60  ;;  %v3651_v41 = vmul.f32 %v7482_v14, %v9430_v11  ;;  %v3652_v59 = vmul.f32 %v7482_v14, %v9440_v52  ;;  %v3653_v20 = vmul.f32 %v7482_v14, %v9450_v34 }
 0x3be   : > { %3300 = vxpose.xlu1.b32.cont [6/8] (short) (narrow) %v3282_v29, 16  ;;  %v3647_v29 = vmul.f32 %v7482_v14, %v9402_v53 }
 0x3c1   : > { %v3284_v32 = vpop.permute.xlu1 %3283 }
 0x3c2   : > { %3301 = vxpose.xlu1.b32.cont [7/8] (short) (narrow) %v3284_v32, 16 }
 0x3c5   : > { %v3286_v49 = vpop.permute.xlu1 %3285 }
 0x3c6   : > { %3302 = vxpose.xlu1.b32.end [8/8] (short) (narrow) %v3286_v49, 16 }
 0x3ca   : > { %v7484_v6 = vpop.eup %7483 }
 0x3cb   : > { %v4038_v53 = vmul.f32 %v7484_v6, %v9434_v58  ;;  %v4039_v9 = vmul.f32 %v7484_v6, %v9436_v2  ;;  %v4040_v19 = vmul.f32 %v7484_v6, %v9454_v51  ;;  %v4041_v11 = vmul.f32 %v7484_v6, %v9460_v18 }
 0x3cc   : > { %v4042_v58 = vmul.f32 %v7484_v6, %v9464_v24  ;;  %v4043_v34 = vmul.f32 %v7484_v6, %v9468_v36  ;;  %v4044_v2 = vmul.f32 %v7484_v6, %v9472_v33  ;;  %v4045_v52 = vmul.f32 %v7484_v6, %v7480_v57 }
 0x3cd   : > { %v2761_v24 = vmul.f32 0.70710677, %v9072_v17  ;;  %v3350_v17 = vpop.permute.xlu1 %3349 }
 0x3cf   : > { %3335 = vrot.lane.b32.xlu0 %v9066_v23, %s7669_s26 }
 0x3d1   : > { %v3348_v36 = vpop.permute.xlu1 %3347 }
 0x3d3   : > { %3662 = vrot.lane.b32.xlu0 %v3646_v50, %s7668_s23 }
 0x3d5   : > { %v9544_v33 = vpop.permute.xlu1 %3345 }
 0x3d7   : > { %3664 = vrot.lane.b32.xlu0 %v3647_v29, %s7668_s23 }
 0x3d9   : > { %v9546_v57 = vpop.permute.xlu1 %3343 }
 0x3db   : > { %3666 = vrot.lane.b32.xlu0 %v3648_v46, %s7668_s23 }
 0x3dd   : > { %v9548_v7 = vpop.permute.xlu1 %3341 }
 0x3df   : > { %3668 = vrot.lane.b32.xlu0 %v3649_v47, %s7668_s23 }
 0x3e1   : > { %v9550_v45 = vpop.permute.xlu1 %3339 }
 0x3e3   : > { %3670 = vrot.lane.b32.xlu0 %v3650_v10, %s7668_s23 }
 0x3e4   : > { %3740 = vrot.lane.b32.xlu1 %v9297_v42, %s7669_s26 }
 0x3e5   : > { %v9554_v49 = vpop.permute.xlu1 %3337 }
 0x3e7   : > { %3672 = vrot.lane.b32.xlu0 %v3651_v41, %s7668_s23 }
 0x3e8   : > { %4054 = vrot.lane.b32.xlu1 %v4038_v53, %s7668_s23 }
 0x3eb   : > { %3674 = vrot.lane.b32.xlu0 %v3652_v59, %s7668_s23 }
 0x3ec   : > { %4056 = vrot.lane.b32.xlu1 %v4039_v9, %s7668_s23 }
 0x3ef   : > { %3676 = vrot.lane.b32.xlu0 %v3653_v20, %s7668_s23 }
 0x3f0   : > { %4058 = vrot.lane.b32.xlu1 %v4040_v19, %s7668_s23 }
 0x3f3   : > { %3738 = vrot.lane.b32.xlu0 %v9294_v26, %s7669_s26 }
 0x3f4   : > { %4060 = vrot.lane.b32.xlu1 %v4041_v11, %s7668_s23 }
 0x3f7   : > { %3736 = vrot.lane.b32.xlu0 %v9301_v39, %s7669_s26 }
 0x3f8   : > { %4062 = vrot.lane.b32.xlu1 %v4042_v58, %s7668_s23  ;;  %v9567_v58 = vld [vmem:[%s10658_s12 + $0x8] sm:$0xff] }
 0x3fb   : > { %3734 = vrot.lane.b32.xlu0 %v9312_v27, %s7669_s26 }
 0x3fc   : > { %4064 = vrot.lane.b32.xlu1 %v4043_v34, %s7668_s23 }
 0x3ff   : > { %3732 = vrot.lane.b32.xlu0 %v9291_v48, %s7669_s26 }
 0x400   : > { %4066 = vrot.lane.b32.xlu1 %v4044_v2, %s7668_s23  ;;  %v9572_v2 = vld [vmem:[%s10658_s12] sm:$0xff] }
 0x403   : > { %3730 = vrot.lane.b32.xlu0 %v9287_v37, %s7669_s26 }
 0x404   : > { %4068 = vrot.lane.b32.xlu1 %v4045_v52, %s7668_s23 }
 0x406   : > { %v2919_v51 = vpop.trf.xlu0 }
 0x407   : > { %7117 = vmatprep.mubr.msk.f32.mxu1 %vm2967_vm2, %v2919_v51  ;;  %3728 = vrot.lane.b32.xlu0 %v9304_v21, %s7669_s26 }
 0x408   : > { %4132 = vrot.lane.b32.xlu1 %v9349_v55, %s7669_s26 }
 0x40a   : > { %v2920_v18 = vpop.trf.xlu0 }
 0x40b   : > { %7118 = vmatmul.mubr.msk.f32.vlgmr.msra.gmra.mxu1 %vm2967_vm2, %v2920_v18  ;;  %3726 = vrot.lane.b32.xlu0 %v9321_v62, %s7669_s26 }
 0x40c   : > { %7124 = vmatprep.mubr.msk.f32.mxu1 %vm661_vm0, %v2761_v24  ;;  %4130 = vrot.lane.b32.xlu1 %v9346_v31, %s7669_s26  ;;  %v2765_v24 = vmul.f32 0.70710677, %v9110_v4  ;;  %v2773_v4 = vmul.f32 0.70710677, %v9103_v63 }
 0x410   : > { %4128 = vrot.lane.b32.xlu1 %v9354_v8, %s7669_s26 }
 0x414   : > { %4126 = vrot.lane.b32.xlu1 %v9366_v56, %s7669_s26 }
 0x418   : > { %4124 = vrot.lane.b32.xlu1 %v9343_v61, %s7669_s26 }
 0x41c   : > { %4122 = vrot.lane.b32.xlu1 %v9339_v3, %s7669_s26 }
 0x420   : > { %4120 = vrot.lane.b32.xlu1 %v9358_v43, %s7669_s26 }
 0x426   : > { %v9556_v13 = vpop.trf.xlu1 }
 0x42a   : > { %v9558_v35 = vpop.trf.xlu1 }
 0x441   : > { %v9552_v32 = vpop.permute.xlu0 %3335 }
 0x445   : > { %v3663_v25 = vpop.permute.xlu0 %3662 }
 0x446   : > { %3686 = vxpose.xlu0.b32.start [1/8] (short) (narrow) %v3663_v25, 16  ;;  %v2767_v25 = vmul.f32 0.70710677, %v9113_v38 }
 0x449   : > { %v3665_v5 = vpop.permute.xlu0 %3664 }
 0x44a   : > { %3687 = vxpose.xlu0.b32.cont [2/8] (short) (narrow) %v3665_v5, 16  ;;  %v2769_v5 = vmul.f32 0.70710677, %v9093_v15  ;;  %v2775_v15 = vmul.f32 0.70710677, %v9137_v0 }
 0x44d   : > { %v3667_v14 = vpop.permute.xlu0 %3666 }
 0x44e   : > { %3688 = vxpose.xlu0.b32.cont [3/8] (short) (narrow) %v3667_v14, 16 }
 0x451   : > { %v3669_v50 = vpop.permute.xlu0 %3668 }
 0x452   : > { %3689 = vxpose.xlu0.b32.cont [4/8] (short) (narrow) %v3669_v50, 16 }
 0x455   : > { %v3671_v60 = vpop.permute.xlu0 %3670 }
 0x456   : > { %v9560_v29 = vpop.permute.xlu1 %3740  ;;  %3690 = vxpose.xlu0.b32.cont [5/8] (short) (narrow) %v3671_v60, 16 }
 0x459   : > { %v3673_v46 = vpop.permute.xlu0 %3672 }
 0x45a   : > { %v4055_v47 = vpop.permute.xlu1 %4054  ;;  %3691 = vxpose.xlu0.b32.cont [6/8] (short) (narrow) %v3673_v46, 16  ;;  %v2764_v46 = vmul.f32 0.70710677, %v9075_v28 }
 0x45b   : > { %4078 = vxpose.xlu1.b32.start [1/8] (short) (narrow) %v4055_v47, 16 }
 0x45d   : > { %v3675_v10 = vpop.permute.xlu0 %3674 }
 0x45e   : > { %v4057_v6 = vpop.permute.xlu1 %4056  ;;  %3692 = vxpose.xlu0.b32.cont [7/8] (short) (narrow) %v3675_v10, 16  ;;  %v2766_v10 = vmul.f32 0.70710677, %v9090_v30  ;;  %v2772_v30 = vmul.f32 0.70710677, %v9069_v44 }
 0x45f   : > { %4079 = vxpose.xlu1.b32.cont [2/8] (short) (narrow) %v4057_v6, 16  ;;  %v2768_v6 = vmul.f32 0.70710677, %v9098_v16 }
 0x461   : > { %v3677_v41 = vpop.permute.xlu0 %3676 }
 0x462   : > { %v4059_v53 = vpop.permute.xlu1 %4058  ;;  %3693 = vxpose.xlu0.b32.end [8/8] (short) (narrow) %v3677_v41, 16  ;;  %v2770_v41 = vmul.f32 0.70710677, %v9078_v40  ;;  %v10747_v40 = vld [vmem:[#allocation36_spill] sm:$0xff] }
 0x463   : > { %4080 = vxpose.xlu1.b32.cont [3/8] (short) (narrow) %v4059_v53, 16  ;;  %v2774_v53 = vmul.f32 0.70710677, %v9084_v22  ;;  %v2777_v22 = vmul.f32 0.70710677, %v9321_v62 }
 0x465   : > { %v3739_v63 = vpop.permute.xlu0 %3738 }
 0x466   : > { %v4061_v59 = vpop.permute.xlu1 %4060 }
 0x467   : > { %4081 = vxpose.xlu1.b32.cont [4/8] (short) (narrow) %v4061_v59, 16 }
 0x469   : > { %v3737_v38 = vpop.permute.xlu0 %3736 }
 0x46a   : > { %v4063_v9 = vpop.permute.xlu1 %4062 }
 0x46b   : > { %4082 = vxpose.xlu1.b32.cont [5/8] (short) (narrow) %v4063_v9, 16 }
 0x46e   : > { %v4065_v20 = vpop.permute.xlu1 %4064 }
 0x46f   : > { %4083 = vxpose.xlu1.b32.cont [6/8] (short) (narrow) %v4065_v20, 16 }
 0x472   : > { %v4067_v19 = vpop.permute.xlu1 %4066 }
 0x473   : > { %4084 = vxpose.xlu1.b32.cont [7/8] (short) (narrow) %v4067_v19, 16 }
 0x476   : > { %v4069_v11 = vpop.permute.xlu1 %4068 }
 0x477   : > { %4085 = vxpose.xlu1.b32.end [8/8] (short) (narrow) %v4069_v11, 16 }
 0x47a   : > { %v4133_v59 = vpop.permute.xlu1 %4132 }
 0x47e   : > { %v4131_v9 = vpop.permute.xlu1 %4130 }
 0x482   : > { %v4129_v19 = vpop.permute.xlu1 %4128 }
 0x486   : > { %v4127_v62 = vpop.permute.xlu1 %4126 }
 0x48b   : > { %4118 = vrot.lane.b32.xlu0 %v9146_v1, %s7669_s26  ;;  %v2763_v1 = vmul.f32 0.70710677, %v9087_v54  ;;  %v2771_v54 = vmul.f32 0.70710677, %v9081_v12  ;;  %v2762_v12 = vmul.f32 0.70710677, %v9066_v23 }
 0x4cb   : > { %v7119_v34 = vpop.f32.mrf.mxu1 }
 0x4cc   : > { %v3050_v52 = vmul.f32 %v7119_v34, %v9567_v58 }
 0x4cd   : > { %v3040_v51 = vpop.f32.mrf.mxu1 }
 0x4ce   : > { %v3049_v18 = vmul.f32 %v3040_v51, %v9572_v2  ;;  %7120 = vmatprep.subr.mxu1 %v3050_v52 }
 0x4cf   : > { %7121 = vmatpush3.msra.mxu1 %v3050_v52 }
 0x4d0   : > { %7122 = vmatprep.subr.mxu1 %v3049_v18 }
 0x4d1   : > { %7123 = vmatpush3.msra.mxu1 %v3049_v18 }
 0x4d2   : > { %7125 = vmatmul.mubr.msk.f32.vlgmr.msra.gmra.mxu1 %vm661_vm0, %v2763_v1  ;;  %7136 = vmatprep.subr.mxu1 %v3350_v17 }
 0x4d3   : > { %7127 = vmatprep.mubr.msk.f32.mxu1 %vm661_vm0, %v2765_v24  ;;  %7137 = vmatpush3.msra.mxu1 %v3350_v17  ;;  %v4125_v24 = vpop.permute.xlu1 %4124 }
 0x4d4   : > { %7138 = vmatprep.subr.mxu1 %v3348_v36 }
 0x4d5   : > { %7139 = vmatpush3.msra.mxu1 %v3348_v36  ;;  %v3735_v36 = vpop.permute.xlu0 %3734 }
 0x4d6   : > { %7128 = vmatmul.mubr.msk.f32.gmra.mxu1 %vm661_vm0, %v2767_v25  ;;  %7140 = vmatprep.subr.mxu1 %v9544_v33 }
 0x4d7   : > { %7130 = vmatprep.mubr.msk.f32.mxu1 %vm661_vm0, %v2769_v5  ;;  %7141 = vmatpush3.msra.mxu1 %v9544_v33 }
 0x4d8   : > { %7142 = vmatprep.subr.mxu1 %v9546_v57 }
 0x4d9   : > { %7143 = vmatpush3.msra.mxu1 %v9546_v57 }
 0x4da   : > { %7131 = vmatmul.mubr.msk.f32.gmra.mxu1 %vm661_vm0, %v2771_v54  ;;  %7144 = vmatprep.subr.mxu1 %v9548_v7 }
 0x4db   : > { %7133 = vmatprep.mubr.msk.f32.mxu1 %vm661_vm0, %v2773_v4  ;;  %7145 = vmatpush3.msra.mxu1 %v9548_v7  ;;  %v3733_v7 = vpop.permute.xlu0 %3732 }
 0x4dc   : > { %7146 = vmatprep.subr.mxu1 %v9550_v45 }
 0x4dd   : > { %7147 = vmatpush3.msra.mxu1 %v9550_v45 }
 0x4de   : > { %7134 = vmatmul.mubr.msk.f32.gmra.mxu1 %vm661_vm0, %v2775_v15  ;;  %7148 = vmatprep.subr.mxu1 %v9554_v49 }
 0x4df   : > { %7149 = vmatpush3.msra.mxu1 %v9554_v49  ;;  %7152 = vmatprep.mubr.msk.f32.mxu1 %vm2967_vm2, %v9556_v13  ;;  %v3731_v13 = vpop.permute.xlu0 %3730 }
 0x4e0   : > { %7150 = vmatprep.subr.mxu1 %v9552_v32 }
 0x4e1   : > { %7151 = vmatpush3.msra.mxu1 %v9552_v32 }
 0x4e2   : > { %7153 = vmatmul.mubr.msk.f32.vlgmr.msra.gmra.mxu1 %vm2967_vm2, %v9558_v35 }
 0x4e3   : > { %7159 = vmatprep.mubr.msk.f32.mxu1 %vm661_vm0, %v2762_v12  ;;  %v3729_v47 = vpop.permute.xlu0 %3728  ;;  %v4123_v12 = vpop.permute.xlu1 %4122 }
 0x4e7   : > { %v3727_v28 = vpop.permute.xlu0 %3726 }
 0x4eb   : > { %v3702_v16 = vpop.trf.xlu0 }
 0x4ef   : > { %v3703_v44 = vpop.trf.xlu0 }
 0x592   : > { %v7126_v0 = vpop.f32.mrf.mxu1 }
 0x593   : > { %3181 = vst.msk [vmem:[#allocation3 + $0x10] sm:$0xff] %vm661_vm0, %v7126_v0  ;;  %v2783_v0 = vmul.f32 0.70710677, %v9291_v48  ;;  %v2791_v48 = vmul.f32 0.70710677, %v9297_v42 }
 0x594   : > { %v3141_v17 = vpop.f32.mrf.mxu1 }
 0x595   : > { %3180 = vst.msk [vmem:[#allocation3] sm:$0xff] %vm661_vm0, %v3141_v17  ;;  %v4121_v17 = vpop.permute.xlu1 %4120 }
 0x596   : > { %v7129_v33 = vpop.f32.mrf.mxu1 }
 0x597   : > { %3183 = vst.msk [vmem:[#allocation3 + $0x30] sm:$0xff] %vm661_vm0, %v7129_v33 }
 0x598   : > { %v3151_v57 = vpop.f32.mrf.mxu1 }
 0x599   : > { %3182 = vst.msk [vmem:[#allocation3 + $0x20] sm:$0xff] %vm661_vm0, %v3151_v57  ;;  %v4094_v33 = vpop.trf.xlu1  ;;  %v4394_v57 = vld [vmem:[%s10656_s10] sm:$0xff] }
 0x59a   : > { %v7132_v23 = vpop.f32.mrf.mxu1 }
 0x59b   : > { %3185 = vst.msk [vmem:[#allocation3 + $0x50] sm:$0xff] %vm661_vm0, %v7132_v23 }
 0x59c   : > { %v3161_v45 = vpop.f32.mrf.mxu1  ;;  %v4362_v42 = vld [vmem:[#allocation3] sm:$0xff] }
 0x59d   : > { %3184 = vst.msk [vmem:[#allocation3 + $0x40] sm:$0xff] %vm661_vm0, %v3161_v45 }
 0x59e   : > { %v7135_v32 = vpop.f32.mrf.mxu1 }
 0x59f   : > { %3187 = vst.msk [vmem:[#allocation3 + $0x70] sm:$0xff] %vm661_vm0, %v7135_v32 }
 0x5a0   : > { %v3171_v49 = vpop.f32.mrf.mxu1  ;;  %v4366_v32 = vld [vmem:[#allocation3 + $0x20] sm:$0xff] }
 0x5a1   : > { %3186 = vst.msk [vmem:[#allocation3 + $0x60] sm:$0xff] %vm661_vm0, %v3171_v49 }
 0x5a2   : > { %v7154_v14 = vpop.f32.mrf.mxu1 }
 0x5a3   : > { %v3441_v35 = vmul.f32 %v7154_v14, %v9567_v58 }
 0x5a4   : > { %v3431_v50 = vpop.f32.mrf.mxu1 }
 0x5a5   : > { %v3440_v60 = vmul.f32 %v3431_v50, %v9572_v2  ;;  %7155 = vmatprep.subr.mxu1 %v3441_v35 }
 0x5a6   : > { %7156 = vmatpush3.msra.mxu1 %v3441_v35  ;;  %v4370_v35 = vld [vmem:[#allocation3 + $0x40] sm:$0xff] }
 0x5a7   : > { %7157 = vmatprep.subr.mxu1 %v3440_v60 }
 0x5a8   : > { %7158 = vmatpush3.msra.mxu1 %v3440_v60  ;;  %v4372_v60 = vld [vmem:[#allocation3 + $0x50] sm:$0xff] }
 0x5a9   : > { %7160 = vmatmul.mubr.msk.f32.vlgmr.msra.gmra.mxu1 %vm661_vm0, %v2764_v46  ;;  %7171 = vmatprep.subr.mxu1 %v9560_v29 }
 0x5aa   : > { %7162 = vmatprep.mubr.msk.f32.mxu1 %vm661_vm0, %v2766_v10  ;;  %7172 = vmatpush3.msra.mxu1 %v9560_v29  ;;  %v2776_v29 = vmul.f32 0.70710677, %v10747_v40 }
 0x5ab   : > { %7173 = vmatprep.subr.mxu1 %v3739_v63 }
 0x5ac   : > { %7174 = vmatpush3.msra.mxu1 %v3739_v63  ;;  %v2779_v63 = vmul.f32 0.70710677, %v9304_v21  ;;  %v2789_v21 = vmul.f32 0.70710677, %v9294_v26  ;;  %v4395_v26 = vld [vmem:[%s10656_s10 + $0x8] sm:$0xff] }
 0x5ad   : > { %7163 = vmatmul.mubr.msk.f32.gmra.mxu1 %vm661_vm0, %v2768_v6  ;;  %7175 = vmatprep.subr.mxu1 %v3737_v38  ;;  %v4376_v6 = vld [vmem:[#allocation3 + $0x70] sm:$0xff] }
 0x5ae   : > { %7165 = vmatprep.mubr.msk.f32.mxu1 %vm661_vm0, %v2770_v41  ;;  %7176 = vmatpush3.msra.mxu1 %v3737_v38  ;;  %v2781_v38 = vmul.f32 0.70710677, %v9287_v37  ;;  %v2787_v37 = vmul.f32 0.70710677, %v9301_v39  ;;  %v4095_v39 = vpop.trf.xlu1 }
 0x5af   : > { %7177 = vmatprep.subr.mxu1 %v3735_v36 }
 0x5b0   : > { %7178 = vmatpush3.msra.mxu1 %v3735_v36  ;;  %v2785_v36 = vmul.f32 0.70710677, %v9312_v27  ;;  %v4119_v27 = vpop.permute.xlu0 %4118 }
 0x5b1   : > { %7166 = vmatmul.mubr.msk.f32.gmra.mxu1 %vm661_vm0, %v2772_v30  ;;  %7179 = vmatprep.subr.mxu1 %v3733_v7 }
 0x5b2   : > { %7168 = vmatprep.mubr.msk.f32.mxu1 %vm661_vm0, %v2774_v53  ;;  %7180 = vmatpush3.msra.mxu1 %v3733_v7  ;;  %v4364_v7 = vld [vmem:[#allocation3 + $0x10] sm:$0xff] }
 0x5b3   : > { %7181 = vmatprep.subr.mxu1 %v3731_v13 }
 0x5b4   : > { %7182 = vmatpush3.msra.mxu1 %v3731_v13  ;;  %v4368_v13 = vld [vmem:[#allocation3 + $0x30] sm:$0xff] }
 0x5b5   : > { %7169 = vmatmul.mubr.msk.f32.gmra.mxu1 %vm661_vm0, %v2776_v29  ;;  %7183 = vmatprep.subr.mxu1 %v3729_v47 }
 0x5b6   : > { %7184 = vmatpush3.msra.mxu1 %v3729_v47  ;;  %7187 = vmatprep.mubr.msk.f32.mxu1 %vm2967_vm2, %v3702_v16  ;;  %v4374_v47 = vld [vmem:[#allocation3 + $0x60] sm:$0xff] }
 0x5b7   : > { %7185 = vmatprep.subr.mxu1 %v3727_v28 }
 0x5b8   : > { %7186 = vmatpush3.msra.mxu1 %v3727_v28 }
 0x5b9   : > { %7188 = vmatmul.mubr.msk.f32.vlgmr.msra.gmra.mxu1 %vm2967_vm2, %v3703_v44 }
 0x5ba   : > { %7194 = vmatprep.mubr.msk.f32.mxu1 %vm661_vm0, %v2777_v22 }
 0x669   : > { %v7161_v20 = vpop.f32.mrf.mxu1 }
 0x66a   : > { %3572 = vst.msk [vmem:[#allocation3 + $0x18] sm:$0xff] %vm661_vm0, %v7161_v20 }
 0x66b   : > { %v3532_v11 = vpop.f32.mrf.mxu1 }
 0x66c   : > { %3571 = vst.msk [vmem:[#allocation3 + $0x8] sm:$0xff] %vm661_vm0, %v3532_v11 }
 0x66d   : > { %v7164_v34 = vpop.f32.mrf.mxu1 }
 0x66e   : > { %3574 = vst.msk [vmem:[#allocation3 + $0x38] sm:$0xff] %vm661_vm0, %v7164_v34 }
 0x66f   : > { %v3542_v52 = vpop.f32.mrf.mxu1 }
 0x670   : > { %3573 = vst.msk [vmem:[#allocation3 + $0x28] sm:$0xff] %vm661_vm0, %v3542_v52  ;;  %v4757_v52 = vld [vmem:[%s10659_s13 + $0x8] sm:$0xff] }
 0x671   : > { %v7167_v51 = vpop.f32.mrf.mxu1  ;;  %v4365_v45 = vld [vmem:[#allocation3 + $0x18] sm:$0xff] }
 0x672   : > { %3576 = vst.msk [vmem:[#allocation3 + $0x58] sm:$0xff] %vm661_vm0, %v7167_v51 }
 0x673   : > { %v3552_v18 = vpop.f32.mrf.mxu1  ;;  %v4363_v23 = vld [vmem:[#allocation3 + $0x8] sm:$0xff] }
 0x674   : > { %3575 = vst.msk [vmem:[#allocation3 + $0x48] sm:$0xff] %vm661_vm0, %v3552_v18  ;;  %v2782_v18 = vmul.f32 0.70710677, %v9339_v3 }
 0x675   : > { %v7170_v1 = vpop.f32.mrf.mxu1  ;;  %v4369_v14 = vld [vmem:[#allocation3 + $0x38] sm:$0xff] }
 0x676   : > { %3578 = vst.msk [vmem:[#allocation3 + $0x78] sm:$0xff] %vm661_vm0, %v7170_v1  ;;  %v2784_v1 = vmul.f32 0.70710677, %v9343_v61  ;;  %v2790_v61 = vmul.f32 0.70710677, %v9346_v31  ;;  %v10749_v31 = vld [vmem:[#allocation5_spill] sm:$0xff] }
 0x677   : > { %v3562_v25 = vpop.f32.mrf.mxu1  ;;  %v4367_v49 = vld [vmem:[#allocation3 + $0x28] sm:$0xff] }
 0x678   : > { %3577 = vst.msk [vmem:[#allocation3 + $0x68] sm:$0xff] %vm661_vm0, %v3562_v25  ;;  %v6558_v25 = vld [vmem:[%s10657_s11] ss:$0 sm:$0xff] }
 0x679   : > { %v7189_v5 = vpop.f32.mrf.mxu1  ;;  %v4373_v46 = vld [vmem:[#allocation3 + $0x58] sm:$0xff] }
 0x67a   : > { %v3832_v54 = vmul.f32 %v7189_v5, %v9567_v58  ;;  %v2788_v5 = vmul.f32 0.70710677, %v9354_v8 }
 0x67b   : > { %v3822_v4 = vpop.f32.mrf.mxu1  ;;  %v4371_v50 = vld [vmem:[#allocation3 + $0x48] sm:$0xff] }
 0x67c   : > { %v3831_v15 = vmul.f32 %v3822_v4, %v9572_v2  ;;  %7190 = vmatprep.subr.mxu1 %v3832_v54 }
 0x67d   : > { %7191 = vmatpush3.msra.mxu1 %v3832_v54  ;;  %v4377_v41 = vld [vmem:[#allocation3 + $0x78] sm:$0xff] }
 0x67e   : > { %7192 = vmatprep.subr.mxu1 %v3831_v15 }
 0x67f   : > { %7193 = vmatpush3.msra.mxu1 %v3831_v15  ;;  %v4375_v10 = vld [vmem:[#allocation3 + $0x68] sm:$0xff] }
 0x680   : > { %7195 = vmatmul.mubr.msk.f32.vlgmr.msra.gmra.mxu1 %vm661_vm0, %v2779_v63  ;;  %7206 = vmatprep.subr.mxu1 %v4133_v59  ;;  %v10748_v63 = vld [vmem:[#allocation4_spill] sm:$0xff] }
 0x681   : > { %7197 = vmatprep.mubr.msk.f32.mxu1 %vm661_vm0, %v2781_v38  ;;  %7207 = vmatpush3.msra.mxu1 %v4133_v59 }
 0x682   : > { %7208 = vmatprep.subr.mxu1 %v4131_v9 }
 0x683   : > { %7209 = vmatpush3.msra.mxu1 %v4131_v9 }
 0x684   : > { %7198 = vmatmul.mubr.msk.f32.gmra.mxu1 %vm661_vm0, %v2783_v0  ;;  %7210 = vmatprep.subr.mxu1 %v4129_v19 }
 0x685   : > { %7200 = vmatprep.mubr.msk.f32.mxu1 %vm661_vm0, %v2785_v36  ;;  %7211 = vmatpush3.msra.mxu1 %v4129_v19 }
 0x686   : > { %7212 = vmatprep.subr.mxu1 %v4127_v62 }
 0x687   : > { %7213 = vmatpush3.msra.mxu1 %v4127_v62  ;;  %v2780_v62 = vmul.f32 0.70710677, %v9358_v43 }
 0x688   : > { %7201 = vmatmul.mubr.msk.f32.gmra.mxu1 %vm661_vm0, %v2787_v37  ;;  %7214 = vmatprep.subr.mxu1 %v4125_v24 }
 0x689   : > { %7203 = vmatprep.mubr.msk.f32.mxu1 %vm661_vm0, %v2789_v21  ;;  %7215 = vmatpush3.msra.mxu1 %v4125_v24  ;;  %v2786_v24 = vmul.f32 0.70710677, %v9366_v56  ;;  %v10750_v21 = vld [vmem:[#allocation6_spill] sm:$0xff] }
 0x68a   : > { %7216 = vmatprep.subr.mxu1 %v4123_v12 }
 0x68b   : > { %7217 = vmatpush3.msra.mxu1 %v4123_v12  ;;  %v2792_v12 = vmul.f32 0.70710677, %v9349_v55 }
 0x68c   : > { %7204 = vmatmul.mubr.msk.f32.gmra.mxu1 %vm661_vm0, %v2791_v48  ;;  %7218 = vmatprep.subr.mxu1 %v4121_v17 }
 0x68d   : > { %7219 = vmatpush3.msra.mxu1 %v4121_v17  ;;  %7222 = vmatprep.mubr.msk.f32.mxu1 %vm2967_vm2, %v4094_v33 }
 0x68e   : > { %7220 = vmatprep.subr.mxu1 %v4119_v27 }
 0x68f   : > { %7221 = vmatpush3.msra.mxu1 %v4119_v27 }
 0x690   : > { %7223 = vmatmul.mubr.msk.f32.vlgmr.msra.gmra.mxu1 %vm2967_vm2, %v4095_v39  ;;  %7241 = vmatprep.subr.mxu1 %v4395_v26  ;;  %v10751_v39 = vld [vmem:[#allocation7_spill] sm:$0xff] }
 0x691   : > { %7242 = vmatpush3.msra.mxu1 %v4395_v26  ;;  %7245 = vmatprep.mubr.msk.f32.mxu1 %vm661_vm0, %v4362_v42  ;;  %v10752_v42 = vld [vmem:[#allocation8_spill] sm:$0xff] }
 0x692   : > { %7243 = vmatprep.subr.mxu1 %v4394_v57 }
 0x693   : > { %7244 = vmatpush3.msra.mxu1 %v4394_v57 }
 0x694   : > { %7246 = vmatmul.mubr.msk.f32.vlgmr.msra.gmra.mxu1 %vm661_vm0, %v4363_v23 }
 0x695   : > { %7248 = vmatprep.mubr.msk.f32.mxu1 %vm661_vm0, %v4364_v7 }
 0x698   : > { %7249 = vmatmul.mubr.msk.f32.gmra.mxu1 %vm661_vm0, %v4365_v45 }
 0x699   : > { %7251 = vmatprep.mubr.msk.f32.mxu1 %vm661_vm0, %v4366_v32 }
 0x69c   : > { %7252 = vmatmul.mubr.msk.f32.gmra.mxu1 %vm661_vm0, %v4367_v49  ;;  %v10753_v49 = vld [vmem:[#allocation9_spill] sm:$0xff] }
 0x69d   : > { %7254 = vmatprep.mubr.msk.f32.mxu1 %vm661_vm0, %v4368_v13 }
 0x6a0   : > { %7255 = vmatmul.mubr.msk.f32.gmra.mxu1 %vm661_vm0, %v4369_v14 }
 0x6a1   : > { %7257 = vmatprep.mubr.msk.f32.mxu1 %vm661_vm0, %v4370_v35  ;;  %v10754_v35 = vld [vmem:[#allocation10_spill] sm:$0xff] }
 0x6a4   : > { %7258 = vmatmul.mubr.msk.f32.gmra.mxu1 %vm661_vm0, %v4371_v50 }
 0x6a5   : > { %7260 = vmatprep.mubr.msk.f32.mxu1 %vm661_vm0, %v4372_v60 }
 0x6a8   : > { %7261 = vmatmul.mubr.msk.f32.gmra.mxu1 %vm661_vm0, %v4373_v46 }
 0x6a9   : > { %7263 = vmatprep.mubr.msk.f32.mxu1 %vm661_vm0, %v4374_v47  ;;  %v10755_v47 = vld [vmem:[#allocation11_spill] sm:$0xff] }
 0x6ac   : > { %7264 = vmatmul.mubr.msk.f32.gmra.mxu1 %vm661_vm0, %v4375_v10 }
 0x6ad   : > { %7266 = vmatprep.mubr.msk.f32.mxu1 %vm661_vm0, %v4376_v6 }
 0x6b0   : > { %7267 = vmatmul.mubr.msk.f32.gmra.mxu1 %vm661_vm0, %v4377_v41  ;;  %v10756_v41 = vld [vmem:[#allocation12_spill] sm:$0xff] }
 0x740   : > { %v7196_v28 = vpop.f32.mrf.mxu1 }
 0x741   : > { %3964 = vst.msk [vmem:[#allocation3 + $0x90] sm:$0xff] %vm661_vm0, %v7196_v28 }
 0x742   : > { %v3923_v30 = vpop.f32.mrf.mxu1 }
 0x743   : > { %3963 = vst.msk [vmem:[#allocation3 + $0x80] sm:$0xff] %vm661_vm0, %v3923_v30 }
 0x744   : > { %v7199_v53 = vpop.f32.mrf.mxu1 }
 0x745   : > { %3966 = vst.msk [vmem:[#allocation3 + $0xb0] sm:$0xff] %vm661_vm0, %v7199_v53 }
 0x746   : > { %v3933_v16 = vpop.f32.mrf.mxu1 }
 0x747   : > { %3965 = vst.msk [vmem:[#allocation3 + $0xa0] sm:$0xff] %vm661_vm0, %v3933_v16  ;;  %v10757_v16 = vld [vmem:[#allocation13_spill] sm:$0xff] }
 0x748   : > { %v7202_v40 = vpop.f32.mrf.mxu1 }
 0x749   : > { %3968 = vst.msk [vmem:[#allocation3 + $0xd0] sm:$0xff] %vm661_vm0, %v7202_v40 }
 0x74a   : > { %v3943_v29 = vpop.f32.mrf.mxu1  ;;  %v4378_v44 = vld [vmem:[#allocation3 + $0x80] sm:$0xff] }
 0x74b   : > { %3967 = vst.msk [vmem:[#allocation3 + $0xc0] sm:$0xff] %vm661_vm0, %v3943_v29  ;;  %7269 = vmatprep.mubr.msk.f32.mxu1 %vm661_vm0, %v4378_v44  ;;  %v10758_v44 = vld [vmem:[#allocation14_spill] sm:$0xff] }
 0x74c   : > { %v7205_v22 = vpop.f32.mrf.mxu1 }
 0x74d   : > { %3970 = vst.msk [vmem:[#allocation3 + $0xf0] sm:$0xff] %vm661_vm0, %v7205_v22 }
 0x74e   : > { %v3953_v59 = vpop.f32.mrf.mxu1 }
 0x74f   : > { %3969 = vst.msk [vmem:[#allocation3 + $0xe0] sm:$0xff] %vm661_vm0, %v3953_v59 }
 0x750   : > { %v7224_v9 = vpop.f32.mrf.mxu1 }
 0x751   : > { %v4224_v20 = vmul.f32 %v7224_v9, %v9567_v58  ;;  %v4756_v58 = vld [vmem:[%s10659_s13] sm:$0xff] }
 0x752   : > { %v4214_v19 = vpop.f32.mrf.mxu1 }
 0x753   : > { %v4223_v11 = vmul.f32 %v4214_v19, %v9572_v2  ;;  %7225 = vmatprep.subr.mxu0 %v4224_v20 }
 0x754   : > { %7226 = vmatpush3.msra.mxu0 %v4224_v20  ;;  %v7247_v34 = vpop.f32.mrf.mxu1  ;;  %v10760_v20 = vld [vmem:[#allocation15_spill] sm:$0xff] }
 0x755   : > { %7227 = vmatprep.subr.mxu0 %v4223_v11  ;;  %v4571_v15 = vadd.f32 %v7247_v34, %v6558_v25  ;;  %v10761_v34 = vld [vmem:[#allocation16_spill] sm:$0xff] }
 0x756   : > { %7228 = vmatpush3.msra.mxu0 %v4223_v11  ;;  %v4565_v51 = vpop.f32.mrf.mxu1 }
 0x757   : > { %7230 = vmatmul.mubr.msk.f32.vlgmr.msra.gmra.mxu0 %vm661_vm0, %v2780_v62  ;;  %7293 = vmatprep.subr.mxu0 %v4757_v52  ;;  %v4566_v54 = vadd.f32 %v6558_v25, %v4565_v51  ;;  %v9726_v36 = vadd.f32 %v4571_v15, %v10749_v31  ;;  %v10763_v51 = vld [vmem:[#allocation17_spill] sm:$0xff]  ;;  %v9818_v31 = vld [vmem:[%s10660_s14] ss:$0 sm:$0xff] }
 0x758   : > { %7232 = vmatprep.mubr.msk.f32.mxu0 %vm661_vm0, %v2782_v18  ;;  %v7250_v2 = vpop.f32.mrf.mxu1  ;;  %7294 = vmatpush3.msra.mxu0 %v4757_v52 }
 0x759   : > { %7295 = vmatprep.subr.mxu0 %v4756_v58  ;;  %v9720_v38 = vadd.f32 %v4566_v54, %v10748_v63  ;;  %v4581_v37 = vadd.f32 %v7250_v2, %v6558_v25  ;;  %v10765_v2 = vld [vmem:[#allocation18_spill] sm:$0xff] }
 0x75a   : > { %v4575_v43 = vpop.f32.mrf.mxu1  ;;  %7296 = vmatpush3.msra.mxu0 %v4756_v58  ;;  %v4380_v63 = vld [vmem:[#allocation3 + $0x90] sm:$0xff] }
 0x75b   : > { %7233 = vmatmul.mubr.msk.f32.gmra.mxu0 %vm661_vm0, %v2784_v1  ;;  %v4576_v0 = vadd.f32 %v6558_v25, %v4575_v43  ;;  %v9736_v26 = vadd.f32 %v4581_v37, %v10751_v39  ;;  %v10767_v43 = vld [vmem:[#allocation19_spill] sm:$0xff]  ;;  %v4382_v37 = vld [vmem:[#allocation3 + $0xa0] sm:$0xff] }
 0x75c   : > { %7235 = vmatprep.mubr.msk.f32.mxu0 %vm661_vm0, %v2786_v24  ;;  %v7253_v3 = vpop.f32.mrf.mxu1 }
 0x75d   : > { %v9729_v33 = vadd.f32 %v4576_v0, %v10750_v21  ;;  %v4591_v57 = vadd.f32 %v7253_v3, %v6558_v25  ;;  %v5951_v3 = vld [vmem:[%s10661_s15 + $0x8] sm:$0xff] }
 0x75e   : > { %v4585_v4 = vpop.f32.mrf.mxu1  ;;  %7345 = vmatprep.subr.mxu1 %v5951_v3 }
 0x75f   : > { %7236 = vmatmul.mubr.msk.f32.gmra.mxu0 %vm661_vm0, %v2788_v5  ;;  %v4586_v48 = vadd.f32 %v6558_v25, %v4585_v4  ;;  %v9746_v13 = vadd.f32 %v4591_v57, %v10753_v49  ;;  %7346 = vmatpush3.msra.mxu1 %v5951_v3 }
 0x760   : > { %7238 = vmatprep.mubr.msk.f32.mxu0 %vm661_vm0, %v2790_v61  ;;  %v7256_v56 = vpop.f32.mrf.mxu1 }
 0x761   : > { %v9739_v23 = vadd.f32 %v4586_v48, %v10752_v42  ;;  %v4601_v14 = vadd.f32 %v7256_v56, %v6558_v25  ;;  %v4384_v42 = vld [vmem:[#allocation3 + $0xb0] sm:$0xff] }
 0x762   : > { %v4595_v17 = vpop.f32.mrf.mxu1 }
 0x763   : > { %7239 = vmatmul.mubr.msk.f32.gmra.mxu0 %vm661_vm0, %v2792_v12  ;;  %v4596_v7 = vadd.f32 %v6558_v25, %v4595_v17  ;;  %v9756_v10 = vadd.f32 %v4601_v14, %v10755_v47  ;;  %v4386_v47 = vld [vmem:[#allocation3 + $0xc0] sm:$0xff] }
 0x764   : > { %v7259_v8 = vpop.f32.mrf.mxu1  ;;  %7297 = vmatprep.mubr.msk.f32.mxu0 %vm661_vm0, %v9720_v38 }
 0x765   : > { %v9749_v50 = vadd.f32 %v4596_v7, %v10754_v35  ;;  %v4611_v6 = vadd.f32 %v7259_v8, %v6558_v25 }
 0x766   : > { %v4605_v55 = vpop.f32.mrf.mxu1 }
 0x767   : > { %7298 = vmatmul.mubr.msk.f32.vlgmr.msra.gmra.mxu0 %vm661_vm0, %v9726_v36  ;;  %v4606_v60 = vadd.f32 %v6558_v25, %v4605_v55  ;;  %v9766_v40 = vadd.f32 %v4611_v6, %v10757_v16 }
 0x768   : > { %v7262_v27 = vpop.f32.mrf.mxu1  ;;  %7300 = vmatprep.mubr.msk.f32.mxu0 %vm661_vm0, %v9729_v33 }
 0x769   : > { %v9759_v28 = vadd.f32 %v4606_v60, %v10756_v41  ;;  %v4621_v29 = vadd.f32 %v7262_v27, %v6558_v25 }
 0x76a   : > { %v4615_v45 = vpop.f32.mrf.mxu1 }
 0x76b   : > { %7301 = vmatmul.mubr.msk.f32.gmra.mxu0 %vm661_vm0, %v9736_v26  ;;  %v4616_v30 = vadd.f32 %v6558_v25, %v4615_v45  ;;  %v9776_v19 = vadd.f32 %v4621_v29, %v10760_v20 }
 0x76c   : > { %v7265_v32 = vpop.f32.mrf.mxu1  ;;  %7303 = vmatprep.mubr.msk.f32.mxu0 %vm661_vm0, %v9739_v23 }
 0x76d   : > { %v9769_v22 = vadd.f32 %v4616_v30, %v10758_v44  ;;  %v4631_v11 = vadd.f32 %v7265_v32, %v6558_v25 }
 0x76e   : > { %v4625_v46 = vpop.f32.mrf.mxu1 }
 0x76f   : > { %7304 = vmatmul.mubr.msk.f32.gmra.mxu0 %vm661_vm0, %v9746_v13  ;;  %10759 = vst [vmem:[#allocation36_spill] sm:$0xff] %v9769_v22  ;;  %v4626_v59 = vadd.f32 %v6558_v25, %v4625_v46  ;;  %v9786_v18 = vadd.f32 %v4631_v11, %v10763_v51 }
 0x770   : > { %7306 = vmatprep.mubr.msk.f32.mxu0 %vm661_vm0, %v9749_v50  ;;  %v7268_v53 = vpop.f32.mrf.mxu1 }
 0x771   : > { %v9779_v52 = vadd.f32 %v4626_v59, %v10761_v34  ;;  %10764 = vst [vmem:[#allocation5_spill] sm:$0xff] %v9786_v18  ;;  %v4641_v58 = vadd.f32 %v7268_v53, %v6558_v25  ;;  %v4388_v34 = vld [vmem:[#allocation3 + $0xd0] sm:$0xff] }
 0x772   : > { %v4635_v9 = vpop.f32.mrf.mxu1 }
 0x773   : > { %7307 = vmatmul.mubr.msk.f32.gmra.mxu0 %vm661_vm0, %v9756_v10  ;;  %10762 = vst [vmem:[#allocation4_spill] sm:$0xff] %v9779_v52  ;;  %v4636_v62 = vadd.f32 %v6558_v25, %v4635_v9  ;;  %v9796_v24 = vadd.f32 %v4641_v58, %v10767_v43  ;;  %v5950_v25 = vld [vmem:[%s10661_s15] sm:$0xff] }
 0x774   : > { %7309 = vmatprep.mubr.msk.f32.mxu0 %vm661_vm0, %v9759_v28  ;;  %7347 = vmatprep.subr.mxu1 %v5950_v25 }
 0x775   : > { %v9789_v1 = vadd.f32 %v4636_v62, %v10765_v2  ;;  %10768 = vst [vmem:[#allocation7_spill] sm:$0xff] %v9796_v24  ;;  %7348 = vmatpush3.msra.mxu1 %v5950_v25 }
 0x777   : > { %7310 = vmatmul.mubr.msk.f32.gmra.mxu0 %vm661_vm0, %v9766_v40  ;;  %10766 = vst [vmem:[#allocation6_spill] sm:$0xff] %v9789_v1 }
 0x778   : > { %7312 = vmatprep.mubr.msk.f32.mxu0 %vm661_vm0, %v9769_v22 }
 0x77b   : > { %7313 = vmatmul.mubr.msk.f32.gmra.mxu0 %vm661_vm0, %v9776_v19 }
 0x77c   : > { %7315 = vmatprep.mubr.msk.f32.mxu0 %vm661_vm0, %v9779_v52 }
 0x77f   : > { %7316 = vmatmul.mubr.msk.f32.gmra.mxu0 %vm661_vm0, %v9786_v18 }
 0x780   : > { %7318 = vmatprep.mubr.msk.f32.mxu0 %vm661_vm0, %v9789_v1 }
 0x783   : > { %7319 = vmatmul.mubr.msk.f32.gmra.mxu0 %vm661_vm0, %v9796_v24 }
 0x817   : > { %v7231_v5 = vpop.f32.mrf.mxu0 }
 0x818   : > { %4355 = vst.msk [vmem:[#allocation3 + $0x98] sm:$0xff] %vm661_vm0, %v7231_v5 }
 0x819   : > { %v4315_v54 = vpop.f32.mrf.mxu0 }
 0x81a   : > { %4354 = vst.msk [vmem:[#allocation3 + $0x88] sm:$0xff] %vm661_vm0, %v4315_v54 }
 0x81b   : > { %v7234_v4 = vpop.f32.mrf.mxu0 }
 0x81c   : > { %4357 = vst.msk [vmem:[#allocation3 + $0xb8] sm:$0xff] %vm661_vm0, %v7234_v4 }
 0x81d   : > { %v4325_v61 = vpop.f32.mrf.mxu0 }
 0x81e   : > { %4356 = vst.msk [vmem:[#allocation3 + $0xa8] sm:$0xff] %vm661_vm0, %v4325_v61  ;;  %v4390_v61 = vld [vmem:[#allocation3 + $0xe0] sm:$0xff] }
 0x81f   : > { %v7237_v56 = vpop.f32.mrf.mxu0  ;;  %v4381_v8 = vld [vmem:[#allocation3 + $0x98] sm:$0xff] }
 0x820   : > { %4359 = vst.msk [vmem:[#allocation3 + $0xd8] sm:$0xff] %vm661_vm0, %v7237_v56 }
 0x821   : > { %v4335_v15 = vpop.f32.mrf.mxu0  ;;  %v4379_v12 = vld [vmem:[#allocation3 + $0x88] sm:$0xff] }
 0x822   : > { %4358 = vst.msk [vmem:[#allocation3 + $0xc8] sm:$0xff] %vm661_vm0, %v4335_v15  ;;  %7270 = vmatmul.mubr.msk.f32.gmra.mxu1 %vm661_vm0, %v4379_v12 }
 0x823   : > { %v7240_v0 = vpop.f32.mrf.mxu0  ;;  %7272 = vmatprep.mubr.msk.f32.mxu1 %vm661_vm0, %v4380_v63  ;;  %v4385_v35 = vld [vmem:[#allocation3 + $0xb8] sm:$0xff] }
 0x824   : > { %4361 = vst.msk [vmem:[#allocation3 + $0xf8] sm:$0xff] %vm661_vm0, %v7240_v0 }
 0x825   : > { %v4345_v17 = vpop.f32.mrf.mxu0  ;;  %v4383_v27 = vld [vmem:[#allocation3 + $0xa8] sm:$0xff] }
 0x826   : > { %4360 = vst.msk [vmem:[#allocation3 + $0xe8] sm:$0xff] %vm661_vm0, %v4345_v17  ;;  %7273 = vmatmul.mubr.msk.f32.gmra.mxu1 %vm661_vm0, %v4381_v8  ;;  %v10697_v8 = vmov 1.0  }
 0x827   : > { %7275 = vmatprep.mubr.msk.f32.mxu1 %vm661_vm0, %v4382_v37  ;;  %v7299_v21 = vpop.f32.mrf.mxu0  ;;  %v4389_v25 = vld [vmem:[#allocation3 + $0xd8] sm:$0xff] }
 0x828   : > { %v4933_v48 = vadd.f32 %v7299_v21, %v9818_v31 }
 0x829   : > { %v4927_v55 = vpop.f32.mrf.mxu0  ;;  %v4387_v9 = vld [vmem:[#allocation3 + $0xc8] sm:$0xff] }
 0x82a   : > { %v5119_v39 = vmul.f32 0.70710677, %v4933_v48  ;;  %v4928_v57 = vadd.f32 %v9818_v31, %v4927_v55  ;;  %7276 = vmatmul.mubr.msk.f32.gmra.mxu1 %vm661_vm0, %v4383_v27  ;;  %v9848_v12 = vmul.f32 0.5, %v4933_v48 }
 0x82b   : > { %7278 = vmatprep.mubr.msk.f32.mxu1 %vm661_vm0, %v4384_v42  ;;  %v7302_v7 = vpop.f32.mrf.mxu0 }
 0x82c   : > { %v5215_v45 = vand.u32 2147483647, %v5119_v39  ;;  %v5118_v32 = vmul.f32 0.70710677, %v4928_v57  ;;  %v4943_v49 = vadd.f32 %v7302_v7, %v9818_v31  ;;  %vm5151_vm3 = vcmp.lt.f32.partialorder %v5119_v39, 0.0  ;;  %v4392_v39 = vld [vmem:[#allocation3 + $0xf0] sm:$0xff] }
 0x82d   : > { %v4937_v14 = vpop.f32.mrf.mxu0  ;;  %v9850_v63 = vmul.f32 0.5, %v4928_v57  ;;  %v9856_v37 = vsel %vm5151_vm3, -1.0, %v10697_v8  ;;  %v4391_v7 = vld [vmem:[#allocation3 + $0xe8] sm:$0xff] }
 0x82e   : > { %v5247_v60 = vmul.f32 0.3275911, %v5215_v45  ;;  %v5214_v46 = vand.u32 2147483647, %v5118_v32  ;;  %7279 = vmatmul.mubr.msk.f32.gmra.mxu1 %vm661_vm0, %v4385_v35  ;;  %v9829_v6 = vmul.f32 0.70710677, %v4943_v49  ;;  %v4938_v41 = vadd.f32 %v9818_v31, %v4937_v14 }
 0x82f   : > { %7281 = vmatprep.mubr.msk.f32.mxu1 %vm661_vm0, %v4386_v47  ;;  %v7305_v30 = vpop.f32.mrf.mxu0  ;;  %v5663_v20 = vsub.f32 0.0, %v5215_v45  ;;  %vm5150_vm4 = vcmp.lt.f32.partialorder %v5118_v32, 0.0 }
 0x830   : > { %v5279_v53 = vadd.f32 1.0, %v5247_v60  ;;  %v5246_v16 = vmul.f32 0.3275911, %v5214_v46  ;;  %v5217_v29 = vand.u32 2147483647, %v9829_v6  ;;  %v5662_v58 = vsub.f32 0.0, %v5214_v46 }
 0x831   : > { %v9834_v44 = vmul.f32 0.70710677, %v4938_v41  ;;  %v4947_v59 = vpop.f32.mrf.mxu0  ;;  %v9840_v43 = vadd.f32 %v7305_v30, %v9818_v31  ;;  %v5695_v5 = vmul.f32 %v5663_v20, %v5215_v45  ;;  %v9864_v57 = vsel %vm5150_vm4, -1.0, %v10697_v8  ;;  %v4393_v30 = vld [vmem:[#allocation3 + $0xf8] sm:$0xff] }
 0x832   : > { %7485 = vrcp.f32 %v5279_v53  ;;  %v5278_v11 = vadd.f32 1.0, %v5246_v16  ;;  %7282 = vmatmul.mubr.msk.f32.gmra.mxu1 %vm661_vm0, %v4387_v9  ;;  %v5249_v62 = vmul.f32 0.3275911, %v5217_v29  ;;  %v4948_v4 = vadd.f32 %v9818_v31, %v4947_v59 }
 0x833   : > { %7284 = vmatprep.mubr.msk.f32.mxu1 %vm661_vm0, %v4388_v34  ;;  %v5216_v51 = vand.u32 2147483647, %v9834_v44  ;;  %v7308_v3 = vpop.f32.mrf.mxu0  ;;  %v5665_v56 = vsub.f32 0.0, %v5217_v29  ;;  %v9845_v15 = vmul.f32 0.70710677, %v9840_v43  ;;  %v5694_v21 = vmul.f32 %v5662_v58, %v5214_v46 }
 0x834   : > { %7487 = vrcp.f32 %v5278_v11  ;;  %v5281_v2 = vadd.f32 1.0, %v5249_v62  ;;  %v9852_v17 = vmul.f32 0.70710677, %v4948_v4  ;;  %v9860_v27 = vadd.f32 %v7308_v3, %v9818_v31 }
 0x835   : > { %v5248_v54 = vmul.f32 0.3275911, %v5216_v51  ;;  %v5219_v55 = vand.u32 2147483647, %v9845_v15  ;;  %v4957_v42 = vpop.f32.mrf.mxu0  ;;  %v5728_v48 = vmul.f32 1.442695, %v5695_v5  ;;  %v5697_v14 = vmul.f32 %v5665_v56, %v5217_v29 }
 0x836   : > { %7285 = vmatmul.mubr.msk.f32.gmra.mxu1 %vm661_vm0, %v4389_v25  ;;  %7489 = vrcp.f32 %v5281_v2  ;;  %vm5153_vm5 = vcmp.lt.f32.partialorder %v9829_v6, 0.0  ;;  %v9868_v45 = vmul.f32 0.5, %v4943_v49  ;;  %v5218_v60 = vand.u32 2147483647, %v9852_v17 }
 0x837   : > { %7287 = vmatprep.mubr.msk.f32.mxu1 %vm661_vm0, %v4390_v61  ;;  %v5280_v0 = vadd.f32 1.0, %v5248_v54  ;;  %v5251_v35 = vmul.f32 0.3275911, %v5219_v55  ;;  %v9872_v46 = vmul.f32 0.5, %v4938_v41  ;;  %v5664_v47 = vsub.f32 0.0, %v5216_v51 }
 0x838   : > { %v9875_v32 = vmul.f32 0.70710677, %v9860_v27  ;;  %v9878_v6 = vadd.f32 %v9818_v31, %v4957_v42  ;;  %v5726_v53 = vmul.f32 1.442695, %v5694_v21  ;;  %v9881_v49 = vsel %vm5153_vm5, -1.0, %v10697_v8  ;;  %v7311_v21 = vpop.f32.mrf.mxu0 }
 0x839   : > { %7491 = vrcp.f32 %v5280_v0  ;;  %v5283_v16 = vadd.f32 1.0, %v5251_v35  ;;  %v5250_v29 = vmul.f32 0.3275911, %v5218_v60  ;;  %vm5152_vm6 = vcmp.lt.f32.partialorder %v9834_v44, 0.0 }
 0x83a   : > { %7288 = vmatmul.mubr.msk.f32.gmra.mxu1 %vm661_vm0, %v4391_v7  ;;  %7493 = vpow2.f32 %v5728_v48  ;;  %v5221_v41 = vand.u32 2147483647, %v9875_v32  ;;  %v9886_v59 = vmul.f32 0.70710677, %v9878_v6  ;;  %v5732_v20 = vmul.f32 1.442695, %v5697_v14 }
 0x83b   : > { %7290 = vmatprep.mubr.msk.f32.mxu1 %vm661_vm0, %v4392_v39  ;;  %7495 = vrcp.f32 %v5283_v16  ;;  %v5667_v11 = vsub.f32 0.0, %v5219_v55  ;;  %v5282_v34 = vadd.f32 1.0, %v5250_v29  ;;  %v5696_v58 = vmul.f32 %v5664_v47, %v5216_v51 }
 0x83c   : > { %v5666_v2 = vsub.f32 0.0, %v5218_v60  ;;  %v5253_v3 = vmul.f32 0.3275911, %v5221_v41  ;;  %7497 = vpow2.f32 %v5726_v53  ;;  %v9893_v44 = vsel %vm5152_vm6, -1.0, %v10697_v8 }
 0x83d   : > { %v9895_v25 = vmul.f32 0.5, %v4948_v4  ;;  %v5220_v5 = vand.u32 2147483647, %v9886_v59  ;;  %7499 = vrcp.f32 %v5282_v34  ;;  %v5669_v0 = vsub.f32 0.0, %v5221_v41 }
 0x83e   : > { %7291 = vmatmul.mubr.msk.f32.gmra.mxu1 %vm661_vm0, %v4393_v30  ;;  %v5285_v56 = vadd.f32 1.0, %v5253_v3  ;;  %7501 = vpow2.f32 %v5732_v20  ;;  %v5699_v51 = vmul.f32 %v5667_v11, %v5219_v55  ;;  %v5730_v4 = vmul.f32 1.442695, %v5696_v58 }
 0x83f   : > { %v9889_v9 = vpop.eup %7485  ;;  %v5252_v7 = vmul.f32 0.3275911, %v5220_v5  ;;  %v5698_v14 = vmul.f32 %v5666_v2, %v5218_v60  ;;  %v9906_v53 = vadd.f32 %v7311_v21, %v9818_v31  ;;  %vm5155_vm7 = vcmp.lt.f32.partialorder %v9845_v15, 0.0 }
 0x840   : > { %v5375_v62 = vmul.f32 1.0614054, %v9889_v9  ;;  %7503 = vrcp.f32 %v5285_v56  ;;  %v5701_v29 = vmul.f32 %v5669_v0, %v5221_v41  ;;  %v5668_v55 = vsub.f32 0.0, %v5220_v5  ;;  %v4967_v56 = vpop.f32.mrf.mxu0 }
 0x841   : > { %v9898_v54 = vpop.eup %7487  ;;  %v5284_v30 = vadd.f32 1.0, %v5252_v7  ;;  %v5734_v2 = vmul.f32 1.442695, %v5698_v14  ;;  %v9915_v3 = vmul.f32 0.70710677, %v9906_v53  ;;  %v9919_v41 = vsel %vm5155_vm7, -1.0, %v10697_v8 }
 0x842   : > { %v5407_v61 = vadd.f32 -1.4531521, %v5375_v62  ;;  %v5374_v42 = vmul.f32 1.0614054, %v9898_v54  ;;  %v5736_v62 = vmul.f32 1.442695, %v5699_v51  ;;  %v5700_v51 = vmul.f32 %v5668_v55, %v5220_v5 }
 0x843   : > { %v9901_v48 = vpop.eup %7489  ;;  %7505 = vrcp.f32 %v5284_v30  ;;  %v9923_v14 = vand.u32 2147483647, %v9915_v3  ;;  %vm5154_vm8 = vcmp.lt.f32.partialorder %v9852_v17, 0.0  ;;  %vm5157_vm9 = vcmp.lt.f32.partialorder %v9875_v32, 0.0 }
 0x844   : > { %v5439_v39 = vmul.f32 %v9889_v9, %v5407_v61  ;;  %v5406_v35 = vadd.f32 -1.4531521, %v5374_v42  ;;  %v5377_v47 = vmul.f32 1.0614054, %v9901_v48  ;;  %7507 = vpow2.f32 %v5730_v4 }
 0x845   : > { %v5740_v42 = vmul.f32 1.442695, %v5701_v29  ;;  %7509 = vpow2.f32 %v5736_v62  ;;  %vm5156_vm10 = vcmp.lt.f32.partialorder %v9886_v59, 0.0  ;;  %vm5159_vm11 = vcmp.lt.f32.partialorder %v9915_v3, 0.0 }
 0x846   : > { %v5471_v16 = vadd.f32 1.4214138, %v5439_v39  ;;  %v9909_v20 = vpop.eup %7491  ;;  %v5438_v11 = vmul.f32 %v9898_v54, %v5406_v35  ;;  %v5409_v34 = vadd.f32 -1.4531521, %v5377_v47  ;;  %7511 = vpow2.f32 %v5734_v2 }
 0x847   : > { %v5376_v58 = vmul.f32 1.0614054, %v9909_v20  ;;  %v7494_v7 = vpop.eup %7493  ;;  %7513 = vpow2.f32 %v5740_v42 }
 0x848   : > { %v5503_v60 = vmul.f32 %v9889_v9, %v5471_v16  ;;  %v5470_v61 = vadd.f32 1.4214138, %v5438_v11  ;;  %v5441_v15 = vmul.f32 %v9901_v48, %v5409_v34  ;;  %v9925_v47 = vpop.eup %7495  ;;  %v9930_v16 = vadd.f32 %v9818_v31, %v4967_v56 }
 0x849   : > { %v5408_v21 = vadd.f32 -1.4531521, %v5376_v58  ;;  %v5379_v55 = vmul.f32 1.0614054, %v9925_v47  ;;  %v5255_v11 = vmul.f32 0.3275911, %v9923_v14  ;;  %v7498_v34 = vpop.eup %7497 }
 0x84a   : > { %v5535_v0 = vadd.f32 -0.28449672, %v5503_v60  ;;  %v5502_v39 = vmul.f32 %v9898_v54, %v5470_v61  ;;  %v5473_v35 = vadd.f32 1.4214138, %v5441_v15  ;;  %v5738_v58 = vmul.f32 1.442695, %v5700_v51  ;;  %v9935_v61 = vpop.eup %7499 }
 0x84b   : > { %v5440_v30 = vmul.f32 %v9909_v20, %v5408_v21  ;;  %v5287_v56 = vadd.f32 1.0, %v5255_v11  ;;  %v7502_v21 = vpop.eup %7501  ;;  %v5378_v8 = vmul.f32 1.0614054, %v9935_v61  ;;  %v9942_v1 = vmul.f32 0.70710677, %v9930_v16 }
 0x84c   : > { %v5567_v4 = vmul.f32 %v9889_v9, %v5535_v0  ;;  %v5534_v29 = vadd.f32 -0.28449672, %v5502_v39  ;;  %v5505_v5 = vmul.f32 %v9901_v48, %v5473_v35  ;;  %v5411_v0 = vadd.f32 -1.4531521, %v5379_v55 }
 0x84d   : > { %v5472_v60 = vadd.f32 1.4214138, %v5440_v30  ;;  %7515 = vrcp.f32 %v5287_v56  ;;  %v5410_v55 = vadd.f32 -1.4531521, %v5378_v8  ;;  %vm5158_vm12 = vcmp.lt.f32.partialorder %v9942_v1, 0.0 }
 0x84e   : > { %v5599_v62 = vadd.f32 0.2548296, %v5567_v4  ;;  %v5566_v15 = vmul.f32 %v9898_v54, %v5534_v29  ;;  %v5537_v2 = vadd.f32 -0.28449672, %v5505_v5  ;;  %v9944_v4 = vpop.eup %7503  ;;  %v5443_v30 = vmul.f32 %v9925_v47, %v5411_v0 }
 0x84f   : > { %v5504_v35 = vmul.f32 %v9909_v20, %v5472_v60  ;;  %7517 = vpow2.f32 %v5738_v58 }
 0x850   : > { %v5631_v39 = vmul.f32 %v9889_v9, %v5599_v62  ;;  %v5598_v42 = vadd.f32 0.2548296, %v5566_v15  ;;  %v5569_v51 = vmul.f32 %v9901_v48, %v5537_v2  ;;  %v5381_v9 = vmul.f32 1.0614054, %v9944_v4  ;;  %v9950_v24 = vpop.eup %7505 }
 0x851   : > { %v5536_v5 = vadd.f32 -0.28449672, %v5504_v35  ;;  %v5475_v60 = vadd.f32 1.4214138, %v5443_v30  ;;  %v5442_v2 = vmul.f32 %v9935_v61, %v5410_v55  ;;  %v5380_v56 = vmul.f32 1.0614054, %v9950_v24 }
 0x852   : > { %v5791_v29 = vmul.f32 %v7494_v7, %v5631_v39  ;;  %v5630_v11 = vmul.f32 %v9898_v54, %v5598_v42  ;;  %v5601_v62 = vadd.f32 0.2548296, %v5569_v51  ;;  %v5413_v18 = vadd.f32 -1.4531521, %v5381_v9  ;;  %v7508_v39 = vpop.eup %7507 }
 0x853   : > { %v5568_v15 = vmul.f32 %v9909_v20, %v5536_v5  ;;  %v5507_v8 = vmul.f32 %v9925_v47, %v5475_v60  ;;  %v5474_v58 = vadd.f32 1.4214138, %v5442_v2  ;;  %v5412_v5 = vadd.f32 -1.4531521, %v5380_v56  ;;  %v7510_v55 = vpop.eup %7509 }
 0x854   : > { %v5823_v52 = vsub.f32 1.0, %v5791_v29  ;;  %v5790_v0 = vmul.f32 %v7498_v34, %v5630_v11  ;;  %v5633_v7 = vmul.f32 %v9901_v48, %v5601_v62  ;;  %v5445_v42 = vmul.f32 %v9944_v4, %v5413_v18  ;;  %v7512_v62 = vpop.eup %7511 }
 0x855   : > { %v5600_v35 = vadd.f32 0.2548296, %v5568_v15  ;;  %v5539_v29 = vadd.f32 -0.28449672, %v5507_v8  ;;  %v5506_v48 = vmul.f32 %v9935_v61, %v5474_v58  ;;  %v5444_v18 = vmul.f32 %v9950_v24, %v5412_v5 }
 0x856   : > { %v5855_v54 = vmul.f32 %v5823_v52, %v9856_v37  ;;  %v5822_v51 = vsub.f32 1.0, %v5790_v0  ;;  %v5793_v30 = vmul.f32 %v7502_v21, %v5633_v7  ;;  %v5477_v11 = vadd.f32 1.4214138, %v5445_v42 }
 0x857   : > { %v5632_v34 = vmul.f32 %v9909_v20, %v5600_v35  ;;  %v5571_v52 = vmul.f32 %v9925_v47, %v5539_v29  ;;  %v5538_v21 = vadd.f32 -0.28449672, %v5506_v48  ;;  %v9967_v2 = vand.u32 2147483647, %v9942_v1  ;;  %v7514_v20 = vpop.eup %7513 }
 0x858   : > { %v5887_v9 = vadd.f32 1.0, %v5855_v54  ;;  %v5854_v60 = vmul.f32 %v5822_v51, %v9864_v57  ;;  %v5825_v22 = vsub.f32 1.0, %v5793_v30  ;;  %v5509_v15 = vmul.f32 %v9944_v4, %v5477_v11 }
 0x859   : > { %v5792_v37 = vmul.f32 %v7508_v39, %v5632_v34  ;;  %v5603_v8 = vadd.f32 0.2548296, %v5571_v52  ;;  %v5476_v57 = vadd.f32 1.4214138, %v5444_v18  ;;  %v5570_v54 = vmul.f32 %v9935_v61, %v5538_v21  ;;  %v7314_v34 = vpop.f32.mrf.mxu0 }
 0x85a   : > { %v5886_v0 = vadd.f32 1.0, %v5854_v60  ;;  %v5857_v7 = vmul.f32 %v5825_v22, %v9881_v49  ;;  %v5541_v35 = vadd.f32 -0.28449672, %v5509_v15  ;;  %v5919_v39 = vmul.f32 %v5887_v9, %v9848_v12  ;;  %v9976_v30 = vpop.eup %7515 }
 0x85b   : > { %v5824_v56 = vsub.f32 1.0, %v5792_v37  ;;  %v5635_v42 = vmul.f32 %v9925_v47, %v5603_v8  ;;  %v5508_v51 = vmul.f32 %v9950_v24, %v5476_v57  ;;  %v5602_v49 = vadd.f32 0.2548296, %v5570_v54  ;;  %v4977_v8 = vpop.f32.mrf.mxu0 }
 0x85c   : > { %v5918_v58 = vmul.f32 %v5886_v0, %v9850_v63  ;;  %v5573_v29 = vmul.f32 %v9944_v4, %v5541_v35  ;;  %v5254_v5 = vmul.f32 0.3275911, %v9967_v2  ;;  %v5889_v48 = vadd.f32 1.0, %v5857_v7  ;;  %v7518_v63 = vpop.eup %7517 }
 0x85d   : > { %v5856_v22 = vmul.f32 %v5824_v56, %v9893_v44  ;;  %v5795_v11 = vmul.f32 %v7510_v55, %v5635_v42  ;;  %v5540_v60 = vadd.f32 -0.28449672, %v5508_v51  ;;  %v5383_v12 = vmul.f32 1.0614054, %v9976_v30 }
 0x85e   : > { %7349 = vmatprep.mubr.msk.f32.mxu1 %vm661_vm0, %v5918_v58  ;;  %v5634_v9 = vmul.f32 %v9935_v61, %v5602_v49  ;;  %v5605_v52 = vadd.f32 0.2548296, %v5573_v29  ;;  %v5286_v18 = vadd.f32 1.0, %v5254_v5  ;;  %v5671_v15 = vsub.f32 0.0, %v9923_v14 }
 0x85f   : > { %v5888_v47 = vadd.f32 1.0, %v5856_v22  ;;  %7350 = vmatmul.mubr.msk.f32.vlgmr.msra.gmra.mxu1 %vm661_vm0, %v5919_v39  ;;  %v5827_v44 = vsub.f32 1.0, %v5795_v11  ;;  %v5572_v37 = vmul.f32 %v9950_v24, %v5540_v60  ;;  %v5415_v21 = vadd.f32 -1.4531521, %v5383_v12  ;;  %v7317_v22 = vpop.f32.mrf.mxu0 }
 0x860   : > { %v5794_v0 = vmul.f32 %v7512_v62, %v5634_v9  ;;  %v5637_v7 = vmul.f32 %v9944_v4, %v5605_v52  ;;  %7519 = vrcp.f32 %v5286_v18  ;;  %v5921_v57 = vmul.f32 %v5889_v48, %v9868_v45 }
 0x861   : > { %v5920_v55 = vmul.f32 %v5888_v47, %v9872_v46  ;;  %v5859_v61 = vmul.f32 %v5827_v44, %v9919_v41  ;;  %v5604_v56 = vadd.f32 0.2548296, %v5572_v37  ;;  %v5447_v54 = vmul.f32 %v9976_v30, %v5415_v21  ;;  %v4987_v18 = vpop.f32.mrf.mxu0 }
 0x862   : > { %v10769_v35 = vmov 1.0   ;;  %v5826_v58 = vsub.f32 1.0, %v5794_v0  ;;  %v5797_v42 = vmul.f32 %v7514_v20, %v5637_v7  ;;  %v9996_v46 = vadd.f32 %v7314_v34, %v9818_v31 }
 0x863   : > { %v5186_v39 = vsel %vm5154_vm8, -1.0, %v10769_v35  ;;  %7352 = vmatprep.mubr.msk.f32.mxu1 %vm661_vm0, %v5920_v55  ;;  %v5189_v45 = vsel %vm5157_vm9, -1.0, %v10769_v35  ;;  %v5636_v41 = vmul.f32 %v9950_v24, %v5604_v56  ;;  %v5479_v4 = vadd.f32 1.4214138, %v5447_v54 }
 0x864   : > { %v5703_v62 = vmul.f32 %v5671_v15, %v9923_v14  ;;  %7353 = vmatmul.mubr.msk.f32.gmra.mxu1 %vm661_vm0, %v5921_v57  ;;  %v5858_v17 = vmul.f32 %v5826_v58, %v5186_v39  ;;  %v5829_v51 = vsub.f32 1.0, %v5797_v42  ;;  %v10007_v20 = vmul.f32 0.70710677, %v9996_v46 }
 0x865   : > { %v5891_v49 = vadd.f32 1.0, %v5859_v61  ;;  %v5796_v29 = vmul.f32 %v7518_v63, %v5636_v41  ;;  %v5511_v32 = vmul.f32 %v9976_v30, %v5479_v4  ;;  %v10011_v5 = vadd.f32 %v9818_v31, %v4977_v8 }
 0x866   : > { %v5890_v24 = vadd.f32 1.0, %v5858_v17  ;;  %v5861_v34 = vmul.f32 %v5829_v51, %v5189_v45  ;;  %v5670_v14 = vsub.f32 0.0, %v9967_v2  ;;  %v5225_v48 = vand.u32 2147483647, %v10007_v20  ;;  %v7320_v45 = vpop.f32.mrf.mxu0 }
 0x867   : > { %v5091_v11 = vmul.f32 0.5, %v9840_v43  ;;  %v5828_v60 = vsub.f32 1.0, %v5796_v29  ;;  %v5744_v12 = vmul.f32 1.442695, %v5703_v62  ;;  %v5092_v9 = vmul.f32 0.5, %v9878_v6 }
 0x868   : > { %v5922_v47 = vmul.f32 %v5890_v24, %v9895_v25  ;;  %v5188_v63 = vsel %vm5156_vm10, -1.0, %v10769_v35  ;;  %v5257_v52 = vmul.f32 0.3275911, %v5225_v48  ;;  %v5543_v21 = vadd.f32 -0.28449672, %v5511_v32  ;;  %v4997_v24 = vpop.f32.mrf.mxu0 }
 0x869   : > { %v5923_v44 = vmul.f32 %v5891_v49, %v5091_v11  ;;  %v5860_v37 = vmul.f32 %v5828_v60, %v5188_v63  ;;  %v10022_v15 = vmul.f32 0.70710677, %v10011_v5  ;;  %v5893_v55 = vadd.f32 1.0, %v5861_v34 }
 0x86a   : > { %v5702_v43 = vmul.f32 %v5670_v14, %v9967_v2  ;;  %v5289_v0 = vadd.f32 1.0, %v5257_v52  ;;  %v10026_v25 = vadd.f32 %v7317_v22, %v9818_v31  ;;  %7355 = vmatprep.mubr.msk.f32.mxu1 %vm661_vm0, %v5922_v47  ;;  %7521 = vpow2.f32 %v5744_v12 }
 0x86b   : > { %v5892_v6 = vadd.f32 1.0, %v5860_v37  ;;  %v5224_v59 = vand.u32 2147483647, %v10022_v15  ;;  %v10031_v7 = vadd.f32 %v9818_v31, %v4987_v18  ;;  %7356 = vmatmul.mubr.msk.f32.gmra.mxu1 %vm661_vm0, %v5923_v44  ;;  %v5093_v8 = vmul.f32 0.5, %v9860_v27 }
 0x86c   : > { %7523 = vrcp.f32 %v5289_v0  ;;  %v5575_v61 = vmul.f32 %v9976_v30, %v5543_v21  ;;  %v5742_v58 = vmul.f32 1.442695, %v5702_v43  ;;  %v10037_v42 = vmul.f32 0.70710677, %v10026_v25 }
 0x86d   : > { %v7520_v57 = vpop.eup %7519  ;;  %v5924_v2 = vmul.f32 %v5892_v6, %v5092_v9  ;;  %v5256_v56 = vmul.f32 0.3275911, %v5224_v59  ;;  %v5925_v54 = vmul.f32 %v5893_v55, %v5093_v8  ;;  %v10040_v4 = vmul.f32 0.70710677, %v10031_v7 }
 0x86e   : > { %v5382_v39 = vmul.f32 1.0614054, %v7520_v57  ;;  %v5227_v62 = vand.u32 2147483647, %v10037_v42  ;;  %v5607_v17 = vadd.f32 0.2548296, %v5575_v61  ;;  %v10046_v22 = vadd.f32 %v7320_v45, %v9818_v31 }
 0x86f   : > { %v5288_v41 = vadd.f32 1.0, %v5256_v56  ;;  %7358 = vmatprep.mubr.msk.f32.mxu1 %vm661_vm0, %v5924_v2  ;;  %v5673_v51 = vsub.f32 0.0, %v5225_v48  ;;  %v5226_v32 = vand.u32 2147483647, %v10040_v4  ;;  %v10054_v63 = vadd.f32 %v9818_v31, %v4997_v24 }
 0x870   : > { %v5414_v27 = vadd.f32 -1.4531521, %v5382_v39  ;;  %7359 = vmatmul.mubr.msk.f32.gmra.mxu1 %vm661_vm0, %v5925_v54  ;;  %v5259_v29 = vmul.f32 0.3275911, %v5227_v62  ;;  %v5639_v11 = vmul.f32 %v9976_v30, %v5607_v17  ;;  %v10051_v47 = vmul.f32 0.70710677, %v10046_v22 }
 0x871   : > { %7525 = vrcp.f32 %v5288_v41  ;;  %v5705_v60 = vmul.f32 %v5673_v51, %v5225_v48  ;;  %v5258_v12 = vmul.f32 0.3275911, %v5226_v32  ;;  %v5672_v52 = vsub.f32 0.0, %v5224_v59 }
 0x872   : > { %v5446_v49 = vmul.f32 %v7520_v57, %v5414_v27  ;;  %7527 = vpow2.f32 %v5742_v58  ;;  %v5291_v14 = vadd.f32 1.0, %v5259_v29  ;;  %v10057_v21 = vand.u32 2147483647, %v10051_v47 }
 0x873   : > { %v5290_v18 = vadd.f32 1.0, %v5258_v12  ;;  %v5748_v48 = vmul.f32 1.442695, %v5705_v60  ;;  %v10062_v43 = vmul.f32 0.70710677, %v10054_v63  ;;  %v5675_v31 = vsub.f32 0.0, %v5227_v62 }
 0x874   : > { %v5478_v34 = vadd.f32 1.4214138, %v5446_v49  ;;  %7529 = vrcp.f32 %v5291_v14  ;;  %v5261_v8 = vmul.f32 0.3275911, %v10057_v21  ;;  %v5704_v2 = vmul.f32 %v5672_v52, %v5224_v59 }
 0x875   : > { %7531 = vrcp.f32 %v5290_v18  ;;  %v10067_v61 = vand.u32 2147483647, %v10062_v43  ;;  %v5707_v51 = vmul.f32 %v5675_v31, %v5227_v62  ;;  %v5674_v24 = vsub.f32 0.0, %v5226_v32 }
 0x876   : > { %v5510_v9 = vmul.f32 %v7520_v57, %v5478_v34  ;;  %v5293_v39 = vadd.f32 1.0, %v5261_v8  ;;  %7533 = vpow2.f32 %v5748_v48  ;;  %v5746_v29 = vmul.f32 1.442695, %v5704_v2 }
 0x877   : > { %v7522_v44 = vpop.eup %7521  ;;  %v5260_v45 = vmul.f32 0.3275911, %v10067_v61  ;;  %v5191_v14 = vsel %vm5159_vm11, -1.0, %v10769_v35  ;;  %v5752_v62 = vmul.f32 1.442695, %v5707_v51  ;;  %v5190_v18 = vsel %vm5158_vm12, -1.0, %v10769_v35 }
 0x878   : > { %v5542_v37 = vadd.f32 -0.28449672, %v5510_v9  ;;  %v5799_v30 = vmul.f32 %v7522_v44, %v5639_v11  ;;  %7535 = vrcp.f32 %v5293_v39  ;;  %v5094_v8 = vmul.f32 0.5, %v9930_v16 }
 0x879   : > { %v10059_v55 = vpop.eup %7523  ;;  %v5292_v34 = vadd.f32 1.0, %v5260_v45  ;;  %vm5161_vm13 = vcmp.lt.f32.partialorder %v10007_v20, 0.0  ;;  %vm5160_vm14 = vcmp.lt.f32.partialorder %v10022_v15, 0.0  ;;  %vm5163_vm15 = vcmp.lt.f32.partialorder %v10037_v42, 0.0 }
 0x87a   : > { %v5574_v0 = vmul.f32 %v7520_v57, %v5542_v37  ;;  %v5385_v6 = vmul.f32 1.0614054, %v10059_v55  ;;  %v5831_v58 = vsub.f32 1.0, %v5799_v30  ;;  %v5706_v37 = vmul.f32 %v5674_v24, %v5226_v32 }
 0x87b   : > { %7537 = vrcp.f32 %v5292_v34  ;;  %vm5162_vm1 = vcmp.lt.f32.partialorder %v10040_v4, 0.0  ;;  %vm5165_vm2 = vcmp.lt.f32.partialorder %v10051_v47, 0.0  ;;  %vm5164_vm3 = vcmp.lt.f32.partialorder %v10062_v43, 0.0 }
 0x87c   : > { %v5606_v56 = vadd.f32 0.2548296, %v5574_v0  ;;  %v5417_v54 = vadd.f32 -1.4531521, %v5385_v6  ;;  %v5863_v60 = vmul.f32 %v5831_v58, %v5191_v14  ;;  %7539 = vpow2.f32 %v5746_v29 }
 0x87d   : > { %v5677_v0 = vsub.f32 0.0, %v10057_v21  ;;  %v5095_v6 = vmul.f32 0.5, %v9906_v53  ;;  %7541 = vpow2.f32 %v5752_v62 }
 0x87e   : > { %v10071_v41 = vpop.eup %7525  ;;  %v5638_v27 = vmul.f32 %v7520_v57, %v5606_v56  ;;  %v5449_v17 = vmul.f32 %v10059_v55, %v5417_v54  ;;  %v5895_v31 = vadd.f32 1.0, %v5863_v60 }
 0x87f   : > { %v7528_v59 = vpop.eup %7527  ;;  %v5384_v49 = vmul.f32 1.0614054, %v10071_v41  ;;  %v5709_v16 = vmul.f32 %v5677_v0, %v10057_v21 }
 0x880   : > { %v5798_v3 = vmul.f32 %v7528_v59, %v5638_v27  ;;  %v5481_v11 = vadd.f32 1.4214138, %v5449_v17  ;;  %v5750_v27 = vmul.f32 1.442695, %v5706_v37  ;;  %v5676_v17 = vsub.f32 0.0, %v10067_v61 }
 0x881   : > { %v5416_v12 = vadd.f32 -1.4531521, %v5384_v49  ;;  %v10078_v52 = vpop.eup %7529  ;;  %v5927_v49 = vmul.f32 %v5895_v31, %v5095_v6 }
 0x882   : > { %v5830_v57 = vsub.f32 1.0, %v5798_v3  ;;  %v5513_v9 = vmul.f32 %v10059_v55, %v5481_v11  ;;  %v5387_v1 = vmul.f32 1.0614054, %v10078_v52  ;;  %v10086_v56 = vpop.eup %7531  ;;  %7543 = vpow2.f32 %v5750_v27 }
 0x883   : > { %v5448_v44 = vmul.f32 %v10071_v41, %v5416_v12  ;;  %v5386_v45 = vmul.f32 1.0614054, %v10086_v56  ;;  %v7534_v34 = vpop.eup %7533 }
 0x884   : > { %v5862_v30 = vmul.f32 %v5830_v57, %v5190_v18  ;;  %v5545_v48 = vadd.f32 -0.28449672, %v5513_v9  ;;  %v5419_v58 = vadd.f32 -1.4531521, %v5387_v1  ;;  %v5708_v57 = vmul.f32 %v5676_v17, %v10067_v61 }
 0x885   : > { %v5480_v2 = vadd.f32 1.4214138, %v5448_v44  ;;  %v5418_v24 = vadd.f32 -1.4531521, %v5386_v45  ;;  %v10096_v11 = vpop.eup %7535 }
 0x886   : > { %v5894_v54 = vadd.f32 1.0, %v5862_v30  ;;  %v5577_v39 = vmul.f32 %v10059_v55, %v5545_v48  ;;  %v5451_v59 = vmul.f32 %v10078_v52, %v5419_v58  ;;  %v5389_v62 = vmul.f32 1.0614054, %v10096_v11 }
 0x887   : > { %v5512_v32 = vmul.f32 %v10071_v41, %v5480_v2  ;;  %v5450_v12 = vmul.f32 %v10086_v56, %v5418_v24  ;;  %v5754_v31 = vmul.f32 1.442695, %v5708_v57  ;;  %v5193_v2 = vsel %vm5161_vm13, -1.0, %v10769_v35 }
 0x888   : > { %v5926_v51 = vmul.f32 %v5894_v54, %v5094_v8  ;;  %v5609_v53 = vadd.f32 0.2548296, %v5577_v39  ;;  %v5483_v3 = vadd.f32 1.4214138, %v5451_v59  ;;  %v10105_v37 = vpop.eup %7537  ;;  %v5421_v1 = vadd.f32 -1.4531521, %v5389_v62 }
 0x889   : > { %v5544_v29 = vadd.f32 -0.28449672, %v5512_v32  ;;  %v5482_v44 = vadd.f32 1.4214138, %v5450_v12  ;;  %v5388_v6 = vmul.f32 1.0614054, %v10105_v37  ;;  %v7540_v8 = vpop.eup %7539 }
 0x88a   : > { %v5641_v14 = vmul.f32 %v10059_v55, %v5609_v53  ;;  %7361 = vmatprep.mubr.msk.f32.mxu1 %vm661_vm0, %v5926_v51  ;;  %v5515_v9 = vmul.f32 %v10078_v52, %v5483_v3  ;;  %v5756_v55 = vmul.f32 1.442695, %v5709_v16  ;;  %v5453_v20 = vmul.f32 %v10096_v11, %v5421_v1  ;;  %v7542_v17 = vpop.eup %7541 }
 0x88b   : > { %v5576_v60 = vmul.f32 %v10071_v41, %v5544_v29  ;;  %7362 = vmatmul.mubr.msk.f32.gmra.mxu1 %vm661_vm0, %v5927_v49  ;;  %v5514_v61 = vmul.f32 %v10086_v56, %v5482_v44  ;;  %v5420_v32 = vadd.f32 -1.4531521, %v5388_v6  ;;  %v5192_v16 = vsel %vm5160_vm14, -1.0, %v10769_v35 }
 0x88c   : > { %v5801_v21 = vmul.f32 %v7534_v34, %v5641_v14  ;;  %v5547_v48 = vadd.f32 -0.28449672, %v5515_v9  ;;  %7545 = vpow2.f32 %v5756_v55  ;;  %v5485_v27 = vadd.f32 1.4214138, %v5453_v20 }
 0x88d   : > { %v5608_v18 = vadd.f32 0.2548296, %v5576_v60  ;;  %v5546_v58 = vadd.f32 -0.28449672, %v5514_v61  ;;  %v5452_v59 = vmul.f32 %v10105_v37, %v5420_v32  ;;  %7547 = vpow2.f32 %v5754_v31 }
 0x88e   : > { %v5833_v30 = vsub.f32 1.0, %v5801_v21  ;;  %v5579_v54 = vmul.f32 %v10078_v52, %v5547_v48  ;;  %v5517_v29 = vmul.f32 %v10096_v11, %v5485_v27  ;;  %v5096_v12 = vmul.f32 0.5, %v10011_v5 }
 0x88f   : > { %v5640_v0 = vmul.f32 %v10071_v41, %v5608_v18  ;;  %v5578_v53 = vmul.f32 %v10086_v56, %v5546_v58  ;;  %v5484_v34 = vadd.f32 1.4214138, %v5452_v59  ;;  %v7544_v62 = vpop.eup %7543  ;;  %v5195_v55 = vsel %vm5163_vm15, -1.0, %v10769_v35 }
 0x890   : > { %v5865_v45 = vmul.f32 %v5833_v30, %v5193_v2  ;;  %v5611_v41 = vadd.f32 0.2548296, %v5579_v54  ;;  %v5549_v60 = vadd.f32 -0.28449672, %v5517_v29  ;;  %v5098_v20 = vmul.f32 0.5, %v10031_v7 }
 0x891   : > { %v5800_v39 = vmul.f32 %v7540_v8, %v5640_v0  ;;  %v5610_v24 = vadd.f32 0.2548296, %v5578_v53  ;;  %v5516_v9 = vmul.f32 %v10105_v37, %v5484_v34  ;;  %v5196_v7 = vsel %vm5164_vm3, -1.0, %v10769_v35 }
 0x892   : > { %v5643_v49 = vmul.f32 %v10078_v52, %v5611_v41  ;;  %v5897_v14 = vadd.f32 1.0, %v5865_v45  ;;  %v5097_v52 = vmul.f32 0.5, %v9996_v46  ;;  %v5581_v42 = vmul.f32 %v10096_v11, %v5549_v60 }
 0x893   : > { %v5832_v51 = vsub.f32 1.0, %v5800_v39  ;;  %v5642_v21 = vmul.f32 %v10086_v56, %v5610_v24  ;;  %v5548_v48 = vadd.f32 -0.28449672, %v5516_v9  ;;  %v5194_v46 = vsel %vm5162_vm1, -1.0, %v10769_v35  ;;  %v7656_v24 = vld [vmem:[%s10657_s11] ss:$0 sm:$0xff] }
 0x894   : > { %v5803_v3 = vmul.f32 %v7542_v17, %v5643_v49  ;;  %v5929_v1 = vmul.f32 %v5897_v14, %v5097_v52  ;;  %v5613_v0 = vadd.f32 0.2548296, %v5581_v42  ;;  %v5099_v45 = vmul.f32 0.5, %v10026_v25  ;;  %v10773_v42 = vld [vmem:[#allocation23_spill] sm:$0xff] }
 0x895   : > { %v5864_v15 = vmul.f32 %v5832_v51, %v5192_v16  ;;  %v5802_v30 = vmul.f32 %v7544_v62, %v5642_v21  ;;  %v5580_v56 = vmul.f32 %v10105_v37, %v5548_v48  ;;  %v5100_v25 = vmul.f32 0.5, %v10054_v63 }
 0x896   : > { %v5835_v18 = vsub.f32 1.0, %v5803_v3  ;;  %v5645_v6 = vmul.f32 %v10096_v11, %v5613_v0  ;;  %v5197_v11 = vsel %vm5165_vm2, -1.0, %v10769_v35  ;;  %v5101_v49 = vmul.f32 0.5, %v10046_v22  ;;  %v10774_v0 = vld [vmem:[#allocation25_spill] sm:$0xff] }
 0x897   : > { %v5896_v57 = vadd.f32 1.0, %v5864_v15  ;;  %v5834_v61 = vsub.f32 1.0, %v5802_v30  ;;  %v5612_v2 = vadd.f32 0.2548296, %v5580_v56  ;;  %v10775_v56 = vld [vmem:[#allocation24_spill] sm:$0xff] }
 0x898   : > { %v5867_v5 = vmul.f32 %v5835_v18, %v5195_v55  ;;  %v10772_v55 = vld [vmem:[#allocation22_spill] sm:$0xff] }
 0x899   : > { %v5928_v44 = vmul.f32 %v5896_v57, %v5096_v12  ;;  %v7546_v31 = vpop.eup %7545  ;;  %v5866_v8 = vmul.f32 %v5834_v61, %v5194_v46  ;;  %v5644_v58 = vmul.f32 %v10105_v37, %v5612_v2  ;;  %v10770_v12 = vld [vmem:[#allocation20_spill] sm:$0xff]  ;;  %v10771_v57 = vld [vmem:[#allocation21_spill] sm:$0xff] }
 0x89a   : > { %v5899_v4 = vadd.f32 1.0, %v5867_v5  ;;  %v5805_v54 = vmul.f32 %v7546_v31, %v5645_v6  ;;  %v7548_v32 = vpop.eup %7547 }
 0x89b   : > { %7364 = vmatprep.mubr.msk.f32.mxu1 %vm661_vm0, %v5928_v44  ;;  %v5898_v39 = vadd.f32 1.0, %v5866_v8  ;;  %v5804_v17 = vmul.f32 %v7548_v32, %v5644_v58 }
 0x89c   : > { %7365 = vmatmul.mubr.msk.f32.gmra.mxu1 %vm661_vm0, %v5929_v1  ;;  %v5837_v41 = vsub.f32 1.0, %v5805_v54  ;;  %v5931_v51 = vmul.f32 %v5899_v4, %v5099_v45  ;;  %v10776_v4 = vld [vmem:[#allocation27_spill] sm:$0xff] }
 0x89d   : > { %v5930_v27 = vmul.f32 %v5898_v39, %v5098_v20  ;;  %v5836_v59 = vsub.f32 1.0, %v5804_v17  ;;  %v10777_v20 = vld [vmem:[#allocation26_spill] sm:$0xff]  ;;  %v10779_v17 = vld [vmem:[#allocation28_spill] sm:$0xff] }
 0x89e   : > { %v5869_v53 = vmul.f32 %v5837_v41, %v5197_v11 }
 0x89f   : > { %7367 = vmatprep.mubr.msk.f32.mxu1 %vm661_vm0, %v5930_v27  ;;  %v5868_v47 = vmul.f32 %v5836_v59, %v5196_v7  ;;  %v10778_v27 = vld [vmem:[#allocation29_spill] sm:$0xff] }
 0x8a0   : > { %7368 = vmatmul.mubr.msk.f32.gmra.mxu1 %vm661_vm0, %v5931_v51  ;;  %v5901_v37 = vadd.f32 1.0, %v5869_v53 }
 0x8a1   : > { %v5900_v16 = vadd.f32 1.0, %v5868_v47 }
 0x8a2   : > { %v5933_v15 = vmul.f32 %v5901_v37, %v5101_v49  ;;  %v10780_v37 = vld [vmem:[#allocation31_spill] sm:$0xff] }
 0x8a3   : > { %v5932_v29 = vmul.f32 %v5900_v16, %v5100_v25  ;;  %v10782_v16 = vld [vmem:[#allocation30_spill] sm:$0xff] }
 0x8a5   : > { %7370 = vmatprep.mubr.msk.f32.mxu1 %vm661_vm0, %v5932_v29 }
 0x8a6   : > { %7371 = vmatmul.mubr.msk.f32.gmra.mxu1 %vm661_vm0, %v5933_v15 }
 0x8e2   : > { %v7271_v43 = vpop.f32.mrf.mxu1 }
 0x8e3   : > { %v4651_v34 = vadd.f32 %v7656_v24, %v7271_v43 }
 0x8e4   : > { %v4645_v14 = vpop.f32.mrf.mxu1 }
 0x8e5   : > { %v4646_v3 = vadd.f32 %v7656_v24, %v4645_v14  ;;  %v10152_v22 = vadd.f32 %v4651_v34, %v10771_v57  ;;  %v10784_v14 = vld [vmem:[#allocation33_spill] sm:$0xff] }
 0x8e6   : > { %v7274_v60 = vpop.f32.mrf.mxu1 }
 0x8e7   : > { %v10149_v63 = vadd.f32 %v4646_v3, %v10770_v12  ;;  %v4661_v21 = vadd.f32 %v7656_v24, %v7274_v60  ;;  %v10786_v60 = vld [vmem:[#allocation32_spill] sm:$0xff] }
 0x8e8   : > { %v4655_v9 = vpop.f32.mrf.mxu1 }
 0x8e9   : > { %v4656_v62 = vadd.f32 %v7656_v24, %v4655_v9  ;;  %7321 = vmatprep.mubr.msk.f32.mxu0 %vm661_vm0, %v10149_v63  ;;  %v10162_v44 = vadd.f32 %v4661_v21, %v10773_v42 }
 0x8ea   : > { %v7277_v52 = vpop.f32.mrf.mxu1  ;;  %7322 = vmatmul.mubr.msk.f32.gmra.mxu0 %vm661_vm0, %v10152_v22 }
 0x8eb   : > { %v10159_v18 = vadd.f32 %v4656_v62, %v10772_v55  ;;  %v4671_v30 = vadd.f32 %v7656_v24, %v7277_v52  ;;  %v10788_v62 = vld [vmem:[#allocation35_spill] sm:$0xff]  ;;  %v10790_v55 = vld [vmem:[#allocation34_spill] sm:$0xff] }
 0x8ec   : > { %v4665_v48 = vpop.f32.mrf.mxu1 }
 0x8ed   : > { %v4666_v1 = vadd.f32 %v7656_v24, %v4665_v48  ;;  %7324 = vmatprep.mubr.msk.f32.mxu0 %vm661_vm0, %v10159_v18  ;;  %v10172_v46 = vadd.f32 %v4671_v30, %v10775_v56 }
 0x8ee   : > { %v7280_v5 = vpop.f32.mrf.mxu1  ;;  %7325 = vmatmul.mubr.msk.f32.gmra.mxu0 %vm661_vm0, %v10162_v44 }
 0x8ef   : > { %v10169_v61 = vadd.f32 %v4666_v1, %v10774_v0  ;;  %v4681_v6 = vadd.f32 %v7656_v24, %v7280_v5 }
 0x8f0   : > { %v4675_v31 = vpop.f32.mrf.mxu1 }
 0x8f1   : > { %v4676_v8 = vadd.f32 %v7656_v24, %v4675_v31  ;;  %7327 = vmatprep.mubr.msk.f32.mxu0 %vm661_vm0, %v10169_v61  ;;  %v10182_v39 = vadd.f32 %v4681_v6, %v10777_v20 }
 0x8f2   : > { %v7283_v2 = vpop.f32.mrf.mxu1  ;;  %7328 = vmatmul.mubr.msk.f32.gmra.mxu0 %vm661_vm0, %v10172_v46 }
 0x8f3   : > { %v10179_v54 = vadd.f32 %v4676_v8, %v10776_v4  ;;  %v4691_v58 = vadd.f32 %v7656_v24, %v7283_v2 }
 0x8f4   : > { %v4685_v32 = vpop.f32.mrf.mxu1 }
 0x8f5   : > { %v4686_v45 = vadd.f32 %v7656_v24, %v4685_v32  ;;  %7330 = vmatprep.mubr.msk.f32.mxu0 %vm661_vm0, %v10179_v54  ;;  %v10192_v51 = vadd.f32 %v4691_v58, %v10779_v17 }
 0x8f6   : > { %v7286_v41 = vpop.f32.mrf.mxu1  ;;  %7331 = vmatmul.mubr.msk.f32.gmra.mxu0 %vm661_vm0, %v10182_v39 }
 0x8f7   : > { %v10189_v11 = vadd.f32 %v4686_v45, %v10778_v27  ;;  %v4701_v53 = vadd.f32 %v7656_v24, %v7286_v41 }
 0x8f8   : > { %v4695_v59 = vpop.f32.mrf.mxu1 }
 0x8f9   : > { %v4696_v7 = vadd.f32 %v7656_v24, %v4695_v59  ;;  %7333 = vmatprep.mubr.msk.f32.mxu0 %vm661_vm0, %v10189_v11  ;;  %v10202_v49 = vadd.f32 %v4701_v53, %v10782_v16 }
 0x8fa   : > { %v7289_v47 = vpop.f32.mrf.mxu1  ;;  %7334 = vmatmul.mubr.msk.f32.gmra.mxu0 %vm661_vm0, %v10192_v51 }
 0x8fb   : > { %v10199_v25 = vadd.f32 %v4696_v7, %v10780_v37  ;;  %10783 = vst [vmem:[#allocation9_spill] sm:$0xff] %v10202_v49  ;;  %v4711_v29 = vadd.f32 %v7656_v24, %v7289_v47 }
 0x8fc   : > { %v4705_v15 = vpop.f32.mrf.mxu1 }
 0x8fd   : > { %10781 = vst [vmem:[#allocation8_spill] sm:$0xff] %v10199_v25  ;;  %v4706_v43 = vadd.f32 %v7656_v24, %v4705_v15  ;;  %7336 = vmatprep.mubr.msk.f32.mxu0 %vm661_vm0, %v10199_v25  ;;  %v10212_v12 = vadd.f32 %v4711_v29, %v10786_v60 }
 0x8fe   : > { %v7292_v34 = vpop.f32.mrf.mxu1  ;;  %7337 = vmatmul.mubr.msk.f32.gmra.mxu0 %vm661_vm0, %v10202_v49 }
 0x8ff   : > { %v10209_v3 = vadd.f32 %v4706_v43, %v10784_v14  ;;  %10787 = vst [vmem:[#allocation11_spill] sm:$0xff] %v10212_v12  ;;  %v4721_v57 = vadd.f32 %v7656_v24, %v7292_v34  ;;  %v10792_v34 = vld [vmem:[#allocation36_spill] sm:$0xff] }
 0x900   : > { %v4715_v21 = vpop.f32.mrf.mxu1 }
 0x901   : > { %10785 = vst [vmem:[#allocation10_spill] sm:$0xff] %v10209_v3  ;;  %v4716_v9 = vadd.f32 %v7656_v24, %v4715_v21  ;;  %7339 = vmatprep.mubr.msk.f32.mxu0 %vm661_vm0, %v10209_v3  ;;  %v10222_v42 = vadd.f32 %v4721_v57, %v10790_v55  ;;  %v6624_v24 = vld [vmem:[%s10662_s16] ss:$0 sm:$0xff]  ;;  %v10793_v57 = vld [vmem:[#allocation5_spill] sm:$0xff] }
 0x902   : > { %7340 = vmatmul.mubr.msk.f32.gmra.mxu0 %vm661_vm0, %v10212_v12 }
 0x903   : > { %v10219_v52 = vadd.f32 %v4716_v9, %v10788_v62  ;;  %10791 = vst [vmem:[#allocation13_spill] sm:$0xff] %v10222_v42  ;;  %v10794_v62 = vld [vmem:[#allocation4_spill] sm:$0xff] }
 0x905   : > { %10789 = vst [vmem:[#allocation12_spill] sm:$0xff] %v10219_v52  ;;  %7342 = vmatprep.mubr.msk.f32.mxu0 %vm661_vm0, %v10219_v52 }
 0x906   : > { %7343 = vmatmul.mubr.msk.f32.gmra.mxu0 %vm661_vm0, %v10222_v42 }
 0x91f   : > { %v7351_v30 = vpop.f32.mrf.mxu1 }
 0x920   : > { %v6127_v48 = vadd.f32 %v7351_v30, %v6624_v24 }
 0x921   : > { %v6121_v1 = vpop.f32.mrf.mxu1 }
 0x922   : > { %v6281_v5 = vadd.f32 %v6127_v48, %v9726_v36  ;;  %v6122_v0 = vadd.f32 %v6624_v24, %v6121_v1  ;;  %v10795_v1 = vld [vmem:[#allocation7_spill] sm:$0xff] }
 0x924   : > { %6313 = vst.msk [vmem:[%s10236_s29 + $0x8] sm:$0xff] %vm661_vm0, %v6281_v5  ;;  %v6280_v56 = vadd.f32 %v6122_v0, %v9720_v38  ;;  %v7354_v6 = vpop.f32.mrf.mxu1 }
 0x925   : > { %v6137_v31 = vadd.f32 %v7354_v6, %v6624_v24 }
 0x926   : > { %6312 = vst.msk [vmem:[%s10236_s29] sm:$0xff] %vm661_vm0, %v6280_v56  ;;  %v6131_v8 = vpop.f32.mrf.mxu1  ;;  %v10796_v56 = vld [vmem:[#allocation6_spill] sm:$0xff] }
 0x927   : > { %v6283_v2 = vadd.f32 %v6137_v31, %v9736_v26  ;;  %v6132_v4 = vadd.f32 %v6624_v24, %v6131_v8  ;;  %v10289_v8 = vld [vmem:[%s10660_s14] ss:$0 sm:$0xff] }
 0x929   : > { %6315 = vst.msk [vmem:[%s10236_s29 + $0x18] sm:$0xff] %vm661_vm0, %v6283_v2  ;;  %v6282_v36 = vadd.f32 %v6132_v4, %v9729_v33 }
 0x92b   : > { %6314 = vst.msk [vmem:[%s10236_s29 + $0x10] sm:$0xff] %vm661_vm0, %v6282_v36  ;;  %v7357_v20 = vpop.f32.mrf.mxu1 }
 0x92c   : > { %v6147_v58 = vadd.f32 %v7357_v20, %v6624_v24 }
 0x92d   : > { %v6141_v38 = vpop.f32.mrf.mxu1 }
 0x92e   : > { %v6285_v32 = vadd.f32 %v6147_v58, %v9746_v13  ;;  %v6142_v45 = vadd.f32 %v6624_v24, %v6141_v38 }
 0x930   : > { %6317 = vst.msk [vmem:[%s10236_s29 + $0x28] sm:$0xff] %vm661_vm0, %v6285_v32  ;;  %v6284_v26 = vadd.f32 %v6142_v45, %v9739_v23  ;;  %v7360_v41 = vpop.f32.mrf.mxu1 }
 0x931   : > { %v6157_v27 = vadd.f32 %v7360_v41, %v6624_v24 }
 0x932   : > { %6316 = vst.msk [vmem:[%s10236_s29 + $0x20] sm:$0xff] %vm661_vm0, %v6284_v26  ;;  %v6151_v33 = vpop.f32.mrf.mxu1 }
 0x933   : > { %v6287_v17 = vadd.f32 %v6157_v27, %v9756_v10  ;;  %v6152_v53 = vadd.f32 %v6624_v24, %v6151_v33 }
 0x935   : > { %6319 = vst.msk [vmem:[%s10236_s29 + $0x38] sm:$0xff] %vm661_vm0, %v6287_v17  ;;  %v6286_v13 = vadd.f32 %v6152_v53, %v9749_v50 }
 0x937   : > { %6318 = vst.msk [vmem:[%s10236_s29 + $0x30] sm:$0xff] %vm661_vm0, %v6286_v13 }
 0x94b   : > { %v7363_v59 = vpop.f32.mrf.mxu1 }
 0x94c   : > { %v6167_v7 = vadd.f32 %v7363_v59, %v6624_v24 }
 0x94d   : > { %v6161_v23 = vpop.f32.mrf.mxu1 }
 0x94e   : > { %v6289_v47 = vadd.f32 %v6167_v7, %v9766_v40  ;;  %v6162_v37 = vadd.f32 %v6624_v24, %v6161_v23 }
 0x950   : > { %6321 = vst.msk [vmem:[%s10236_s29 + $0x48] sm:$0xff] %vm661_vm0, %v6289_v47  ;;  %v6288_v10 = vadd.f32 %v6162_v37, %v9759_v28 }
 0x952   : > { %6320 = vst.msk [vmem:[%s10236_s29 + $0x40] sm:$0xff] %vm661_vm0, %v6288_v10 }
 0x95c   : > { %v7366_v16 = vpop.f32.mrf.mxu1 }
 0x95d   : > { %v6177_v29 = vadd.f32 %v7366_v16, %v6624_v24 }
 0x95e   : > { %v6171_v50 = vpop.f32.mrf.mxu1 }
 0x95f   : > { %v6291_v15 = vadd.f32 %v6177_v29, %v9776_v19  ;;  %v6172_v43 = vadd.f32 %v6624_v24, %v6171_v50 }
 0x960   : > { %v7369_v14 = vpop.f32.mrf.mxu1 }
 0x961   : > { %6323 = vst.msk [vmem:[%s10236_s29 + $0x58] sm:$0xff] %vm661_vm0, %v6291_v15  ;;  %v6290_v40 = vadd.f32 %v6172_v43, %v10792_v34  ;;  %v6187_v60 = vadd.f32 %v7369_v14, %v6624_v24 }
 0x962   : > { %v6181_v28 = vpop.f32.mrf.mxu1 }
 0x963   : > { %6322 = vst.msk [vmem:[%s10236_s29 + $0x50] sm:$0xff] %vm661_vm0, %v6290_v40  ;;  %v6293_v21 = vadd.f32 %v6187_v60, %v10793_v57  ;;  %v6182_v9 = vadd.f32 %v6624_v24, %v6181_v28 }
 0x965   : > { %6325 = vst.msk [vmem:[%s10236_s29 + $0x68] sm:$0xff] %vm661_vm0, %v6293_v21  ;;  %v6292_v55 = vadd.f32 %v6182_v9, %v10794_v62 }
 0x966   : > { %v7372_v19 = vpop.f32.mrf.mxu1 }
 0x967   : > { %6324 = vst.msk [vmem:[%s10236_s29 + $0x60] sm:$0xff] %vm661_vm0, %v6292_v55  ;;  %v6197_v30 = vadd.f32 %v7372_v19, %v6624_v24 }
 0x968   : > { %v6191_v48 = vpop.f32.mrf.mxu1 }
 0x969   : > { %v6295_v5 = vadd.f32 %v6197_v30, %v10795_v1  ;;  %v6192_v0 = vadd.f32 %v6624_v24, %v6191_v48 }
 0x96b   : > { %6327 = vst.msk [vmem:[%s10236_s29 + $0x78] sm:$0xff] %vm661_vm0, %v6295_v5  ;;  %v6294_v6 = vadd.f32 %v6192_v0, %v10796_v56 }
 0x96d   : > { %6326 = vst.msk [vmem:[%s10236_s29 + $0x70] sm:$0xff] %vm661_vm0, %v6294_v6 }
 0x9aa   : > { %v7323_v31 = vpop.f32.mrf.mxu0 }
 0x9ab   : > { %v5013_v2 = vadd.f32 %v10289_v8, %v7323_v31 }
 0x9ac   : > { %v5007_v4 = vpop.f32.mrf.mxu0 }
 0x9ad   : > { %v5135_v36 = vmul.f32 0.70710677, %v5013_v2  ;;  %v5008_v20 = vadd.f32 %v10289_v8, %v5007_v4  ;;  %v10302_v57 = vmul.f32 0.5, %v5013_v2 }
 0x9ae   : > { %v7326_v58 = vpop.f32.mrf.mxu0 }
 0x9af   : > { %v5231_v24 = vand.u32 2147483647, %v5135_v36  ;;  %v5134_v38 = vmul.f32 0.70710677, %v5008_v20  ;;  %v5023_v32 = vadd.f32 %v10289_v8, %v7326_v58  ;;  %vm5167_vm4 = vcmp.lt.f32.partialorder %v5135_v36, 0.0 }
 0x9b0   : > { %v5017_v45 = vpop.f32.mrf.mxu0  ;;  %v10304_v21 = vmul.f32 0.5, %v5008_v20  ;;  %v10309_v55 = vsel %vm5167_vm4, -1.0, %v10769_v35 }
 0x9b1   : > { %v5263_v26 = vmul.f32 0.3275911, %v5231_v24  ;;  %v5230_v41 = vand.u32 2147483647, %v5134_v38  ;;  %v5137_v27 = vmul.f32 0.70710677, %v5023_v32  ;;  %v5018_v33 = vadd.f32 %v10289_v8, %v5017_v45 }
 0x9b2   : > { %v7329_v17 = vpop.f32.mrf.mxu0  ;;  %v5679_v47 = vsub.f32 0.0, %v5231_v24  ;;  %vm5166_vm5 = vcmp.lt.f32.partialorder %v5134_v38, 0.0  ;;  %v10318_v56 = vmul.f32 0.5, %v5023_v32 }
 0x9b3   : > { %v5295_v53 = vadd.f32 1.0, %v5263_v26  ;;  %v5262_v13 = vmul.f32 0.3275911, %v5230_v41  ;;  %v5233_v59 = vand.u32 2147483647, %v5137_v27  ;;  %v5678_v29 = vsub.f32 0.0, %v5230_v41 }
 0x9b4   : > { %v5136_v7 = vmul.f32 0.70710677, %v5018_v33  ;;  %v5027_v23 = vpop.f32.mrf.mxu0  ;;  %v10296_v15 = vadd.f32 %v10289_v8, %v7329_v17  ;;  %v5711_v34 = vmul.f32 %v5679_v47, %v5231_v24  ;;  %v10316_v0 = vsel %vm5166_vm5, -1.0, %v10769_v35 }
 0x9b5   : > { %7549 = vrcp.f32 %v5295_v53  ;;  %v5294_v37 = vadd.f32 1.0, %v5262_v13  ;;  %v5265_v10 = vmul.f32 0.3275911, %v5233_v59  ;;  %v5028_v14 = vadd.f32 %v10289_v8, %v5027_v23 }
 0x9b6   : > { %v5232_v16 = vand.u32 2147483647, %v5136_v7  ;;  %v7332_v43 = vpop.f32.mrf.mxu0  ;;  %v5681_v60 = vsub.f32 0.0, %v5233_v59  ;;  %v10300_v28 = vmul.f32 0.70710677, %v10296_v15  ;;  %v5710_v19 = vmul.f32 %v5678_v29, %v5230_v41 }
 0x9b7   : > { %7551 = vrcp.f32 %v5294_v37  ;;  %v5297_v50 = vadd.f32 1.0, %v5265_v10  ;;  %v10306_v62 = vmul.f32 0.70710677, %v5028_v14  ;;  %v10313_v48 = vadd.f32 %v10289_v8, %v7332_v43 }
 0x9b8   : > { %v5264_v40 = vmul.f32 0.3275911, %v5232_v16  ;;  %v5235_v30 = vand.u32 2147483647, %v10300_v28  ;;  %v5037_v1 = vpop.f32.mrf.mxu0  ;;  %v5760_v5 = vmul.f32 1.442695, %v5711_v34  ;;  %v5713_v6 = vmul.f32 %v5681_v60, %v5233_v59 }
 0x9b9   : > { %7553 = vrcp.f32 %v5297_v50  ;;  %vm5169_vm6 = vcmp.lt.f32.partialorder %v5137_v27, 0.0  ;;  %v5234_v2 = vand.u32 2147483647, %v10306_v62  ;;  %v10321_v4 = vmul.f32 0.5, %v5018_v33 }
 0x9ba   : > { %v5296_v9 = vadd.f32 1.0, %v5264_v40  ;;  %v5267_v31 = vmul.f32 0.3275911, %v5235_v30  ;;  %v5680_v36 = vsub.f32 0.0, %v5232_v16  ;;  %v10324_v20 = vmul.f32 0.70710677, %v10313_v48  ;;  %v7335_v40 = vpop.f32.mrf.mxu0 }
 0x9bb   : > { %v10327_v58 = vadd.f32 %v10289_v8, %v5037_v1  ;;  %v5758_v24 = vmul.f32 1.442695, %v5710_v19  ;;  %v10330_v38 = vsel %vm5169_vm6, -1.0, %v10769_v35  ;;  %v5266_v32 = vmul.f32 0.3275911, %v5234_v2 }
 0x9bc   : > { %7555 = vrcp.f32 %v5296_v9  ;;  %v5299_v45 = vadd.f32 1.0, %v5267_v31  ;;  %vm5168_vm7 = vcmp.lt.f32.partialorder %v5136_v7, 0.0  ;;  %v5237_v26 = vand.u32 2147483647, %v10324_v20 }
 0x9bd   : > { %7557 = vpow2.f32 %v5760_v5  ;;  %v10334_v41 = vmul.f32 0.70710677, %v10327_v58  ;;  %v5764_v33 = vmul.f32 1.442695, %v5713_v6  ;;  %v5683_v17 = vsub.f32 0.0, %v5235_v30 }
 0x9be   : > { %7559 = vrcp.f32 %v5299_v45  ;;  %v5298_v53 = vadd.f32 1.0, %v5266_v32  ;;  %v5712_v59 = vmul.f32 %v5680_v36, %v5232_v16  ;;  %v5682_v23 = vsub.f32 0.0, %v5234_v2 }
 0x9bf   : > { %v5269_v47 = vmul.f32 0.3275911, %v5237_v26  ;;  %7561 = vpow2.f32 %v5758_v24  ;;  %v10340_v37 = vsel %vm5168_vm7, -1.0, %v10769_v35  ;;  %v10342_v7 = vmul.f32 0.5, %v5028_v14 }
 0x9c0   : > { %v5236_v10 = vand.u32 2147483647, %v10334_v41  ;;  %7563 = vrcp.f32 %v5298_v53  ;;  %v5685_v34 = vsub.f32 0.0, %v5237_v26  ;;  %v5715_v16 = vmul.f32 %v5683_v17, %v5235_v30 }
 0x9c1   : > { %v5301_v43 = vadd.f32 1.0, %v5269_v47  ;;  %7565 = vpow2.f32 %v5764_v33  ;;  %v5762_v14 = vmul.f32 1.442695, %v5712_v59  ;;  %v5714_v5 = vmul.f32 %v5682_v23, %v5234_v2 }
 0x9c2   : > { %v10336_v27 = vpop.eup %7549  ;;  %v5268_v9 = vmul.f32 0.3275911, %v5236_v10  ;;  %v10353_v24 = vadd.f32 %v10289_v8, %v7335_v40  ;;  %vm5171_vm8 = vcmp.lt.f32.partialorder %v10300_v28, 0.0  ;;  %v5717_v32 = vmul.f32 %v5685_v34, %v5237_v26 }
 0x9c3   : > { %v5391_v13 = vmul.f32 1.0614054, %v10336_v27  ;;  %7567 = vrcp.f32 %v5301_v43  ;;  %v5684_v30 = vsub.f32 0.0, %v5236_v10  ;;  %v5766_v23 = vmul.f32 1.442695, %v5714_v5  ;;  %v5047_v43 = vpop.f32.mrf.mxu0 }
 0x9c4   : > { %v10345_v29 = vpop.eup %7551  ;;  %v5300_v36 = vadd.f32 1.0, %v5268_v9  ;;  %v10362_v47 = vmul.f32 0.70710677, %v10353_v24  ;;  %v10366_v26 = vsel %vm5171_vm8, -1.0, %v10769_v35  ;;  %vm5170_vm9 = vcmp.lt.f32.partialorder %v10306_v62, 0.0 }
 0x9c5   : > { %v5423_v50 = vadd.f32 -1.4531521, %v5391_v13  ;;  %v5390_v60 = vmul.f32 1.0614054, %v10345_v29  ;;  %v5768_v13 = vmul.f32 1.442695, %v5715_v16  ;;  %v5716_v16 = vmul.f32 %v5684_v30, %v5236_v10 }
 0x9c6   : > { %v10348_v19 = vpop.eup %7553  ;;  %7569 = vrcp.f32 %v5300_v36  ;;  %v10370_v5 = vand.u32 2147483647, %v10362_v47  ;;  %vm5173_vm10 = vcmp.lt.f32.partialorder %v10324_v20, 0.0  ;;  %vm5172_vm11 = vcmp.lt.f32.partialorder %v10334_v41, 0.0 }
 0x9c7   : > { %v5455_v1 = vmul.f32 %v10336_v27, %v5423_v50  ;;  %v5422_v6 = vadd.f32 -1.4531521, %v5390_v60  ;;  %v5393_v31 = vmul.f32 1.0614054, %v10348_v19  ;;  %7571 = vpow2.f32 %v5762_v14 }
 0x9c8   : > { %v5772_v60 = vmul.f32 1.442695, %v5717_v32  ;;  %7573 = vpow2.f32 %v5768_v13  ;;  %vm5175_vm12 = vcmp.lt.f32.partialorder %v10362_v47, 0.0 }
 0x9c9   : > { %v5487_v45 = vadd.f32 1.4214138, %v5455_v1  ;;  %v10356_v33 = vpop.eup %7555  ;;  %v5454_v17 = vmul.f32 %v10345_v29, %v5422_v6  ;;  %v5425_v53 = vadd.f32 -1.4531521, %v5393_v31  ;;  %7575 = vpow2.f32 %v5766_v23 }
 0x9ca   : > { %v5392_v59 = vmul.f32 1.0614054, %v10356_v33  ;;  %v7558_v9 = vpop.eup %7557  ;;  %7577 = vpow2.f32 %v5772_v60 }
 0x9cb   : > { %v5519_v2 = vmul.f32 %v10336_v27, %v5487_v45  ;;  %v5486_v50 = vadd.f32 1.4214138, %v5454_v17  ;;  %v5457_v28 = vmul.f32 %v10348_v19, %v5425_v53  ;;  %v10372_v31 = vpop.eup %7559  ;;  %v10377_v45 = vadd.f32 %v10289_v8, %v5047_v43 }
 0x9cc   : > { %v5424_v40 = vadd.f32 -1.4531521, %v5392_v59  ;;  %v5395_v30 = vmul.f32 1.0614054, %v10372_v31  ;;  %v5271_v17 = vmul.f32 0.3275911, %v10370_v5  ;;  %v7562_v53 = vpop.eup %7561 }
 0x9cd   : > { %v5551_v34 = vadd.f32 -0.28449672, %v5519_v2  ;;  %v5518_v1 = vmul.f32 %v10345_v29, %v5486_v50  ;;  %v5489_v6 = vadd.f32 1.4214138, %v5457_v28  ;;  %v5770_v59 = vmul.f32 1.442695, %v5716_v16  ;;  %v10382_v50 = vpop.eup %7563 }
 0x9ce   : > { %v5456_v36 = vmul.f32 %v10356_v33, %v5424_v40  ;;  %v5303_v43 = vadd.f32 1.0, %v5271_v17  ;;  %v7566_v40 = vpop.eup %7565  ;;  %v5394_v52 = vmul.f32 1.0614054, %v10382_v50  ;;  %v10389_v42 = vmul.f32 0.70710677, %v10377_v45 }
 0x9cf   : > { %v5583_v14 = vmul.f32 %v10336_v27, %v5551_v34  ;;  %v5550_v32 = vadd.f32 -0.28449672, %v5518_v1  ;;  %v5521_v10 = vmul.f32 %v10348_v19, %v5489_v6  ;;  %v5427_v34 = vadd.f32 -1.4531521, %v5395_v30 }
 0x9d0   : > { %v5488_v2 = vadd.f32 1.4214138, %v5456_v36  ;;  %7579 = vrcp.f32 %v5303_v43  ;;  %v5426_v30 = vadd.f32 -1.4531521, %v5394_v52  ;;  %vm5174_vm13 = vcmp.lt.f32.partialorder %v10389_v42, 0.0 }
 0x9d1   : > { %v5615_v13 = vadd.f32 0.2548296, %v5583_v14  ;;  %v5582_v28 = vmul.f32 %v10345_v29, %v5550_v32  ;;  %v5553_v23 = vadd.f32 -0.28449672, %v5521_v10  ;;  %v10391_v14 = vpop.eup %7567  ;;  %v5459_v36 = vmul.f32 %v10372_v31, %v5427_v34 }
 0x9d2   : > { %v5520_v6 = vmul.f32 %v10356_v33, %v5488_v2  ;;  %7581 = vpow2.f32 %v5770_v59 }
 0x9d3   : > { %v5647_v1 = vmul.f32 %v10336_v27, %v5615_v13  ;;  %v5614_v60 = vadd.f32 0.2548296, %v5582_v28  ;;  %v5585_v16 = vmul.f32 %v10348_v19, %v5553_v23  ;;  %v5397_v27 = vmul.f32 1.0614054, %v10391_v14  ;;  %v10397_v3 = vpop.eup %7569 }
 0x9d4   : > { %v5552_v10 = vadd.f32 -0.28449672, %v5520_v6  ;;  %v5491_v2 = vadd.f32 1.4214138, %v5459_v36  ;;  %v5458_v23 = vmul.f32 %v10382_v50, %v5426_v30  ;;  %v5396_v43 = vmul.f32 1.0614054, %v10397_v3 }
 0x9d5   : > { %v5807_v32 = vmul.f32 %v7558_v9, %v5647_v1  ;;  %v5646_v17 = vmul.f32 %v10345_v29, %v5614_v60  ;;  %v5617_v13 = vadd.f32 0.2548296, %v5585_v16  ;;  %v5429_v25 = vadd.f32 -1.4531521, %v5397_v27  ;;  %v7572_v1 = vpop.eup %7571 }
 0x9d6   : > { %v5584_v28 = vmul.f32 %v10356_v33, %v5552_v10  ;;  %v5523_v52 = vmul.f32 %v10372_v31, %v5491_v2  ;;  %v5490_v59 = vadd.f32 1.4214138, %v5458_v23  ;;  %v5428_v10 = vadd.f32 -1.4531521, %v5396_v43  ;;  %v7574_v30 = vpop.eup %7573 }
 0x9d7   : > { %v5839_v12 = vsub.f32 1.0, %v5807_v32  ;;  %v5806_v34 = vmul.f32 %v7562_v53, %v5646_v17  ;;  %v5649_v9 = vmul.f32 %v10348_v19, %v5617_v13  ;;  %v5461_v60 = vmul.f32 %v10391_v14, %v5429_v25  ;;  %v7576_v13 = vpop.eup %7575 }
 0x9d8   : > { %v5616_v6 = vadd.f32 0.2548296, %v5584_v28  ;;  %v5555_v32 = vadd.f32 -0.28449672, %v5523_v52  ;;  %v5522_v19 = vmul.f32 %v10382_v50, %v5490_v59  ;;  %v5460_v25 = vmul.f32 %v10397_v3, %v5428_v10 }
 0x9d9   : > { %v5871_v29 = vmul.f32 %v5839_v12, %v10309_v55  ;;  %v5838_v16 = vsub.f32 1.0, %v5806_v34  ;;  %v5809_v36 = vmul.f32 %v7566_v40, %v5649_v9  ;;  %v5493_v17 = vadd.f32 1.4214138, %v5461_v60 }
 0x9da   : > { %v5648_v53 = vmul.f32 %v10356_v33, %v5616_v6  ;;  %v5587_v12 = vmul.f32 %v10372_v31, %v5555_v32  ;;  %v5554_v40 = vadd.f32 -0.28449672, %v5522_v19  ;;  %v10414_v23 = vand.u32 2147483647, %v10389_v42  ;;  %v7578_v33 = vpop.eup %7577 }
 0x9db   : > { %v5903_v27 = vadd.f32 1.0, %v5871_v29  ;;  %v5870_v2 = vmul.f32 %v5838_v16, %v10316_v0  ;;  %v5841_v49 = vsub.f32 1.0, %v5809_v36  ;;  %v5525_v28 = vmul.f32 %v10391_v14, %v5493_v17 }
 0x9dc   : > { %v5808_v55 = vmul.f32 %v7572_v1, %v5648_v53  ;;  %v5619_v52 = vadd.f32 0.2548296, %v5587_v12  ;;  %v5492_v0 = vadd.f32 1.4214138, %v5460_v25  ;;  %v5586_v29 = vmul.f32 %v10382_v50, %v5554_v40  ;;  %v7338_v53 = vpop.f32.mrf.mxu0 }
 0x9dd   : > { %v5902_v34 = vadd.f32 1.0, %v5870_v2  ;;  %v5873_v9 = vmul.f32 %v5841_v49, %v10330_v38  ;;  %v5557_v6 = vadd.f32 -0.28449672, %v5525_v28  ;;  %v5935_v1 = vmul.f32 %v5903_v27, %v10302_v57  ;;  %v10423_v36 = vpop.eup %7579 }
 0x9de   : > { %v5840_v43 = vsub.f32 1.0, %v5808_v55  ;;  %v5651_v60 = vmul.f32 %v10372_v31, %v5619_v52  ;;  %v5524_v16 = vmul.f32 %v10397_v3, %v5492_v0  ;;  %v5618_v38 = vadd.f32 0.2548296, %v5586_v29  ;;  %v5057_v52 = vpop.f32.mrf.mxu0 }
 0x9df   : > { %v5934_v59 = vmul.f32 %v5902_v34, %v10304_v21  ;;  %v5589_v32 = vmul.f32 %v10391_v14, %v5557_v6  ;;  %v5270_v10 = vmul.f32 0.3275911, %v10414_v23  ;;  %v5905_v19 = vadd.f32 1.0, %v5873_v9  ;;  %v7582_v21 = vpop.eup %7581 }
 0x9e0   : > { %v5872_v49 = vmul.f32 %v5840_v43, %v10340_v37  ;;  %v5811_v17 = vmul.f32 %v7574_v30, %v5651_v60  ;;  %v5556_v2 = vadd.f32 -0.28449672, %v5524_v16  ;;  %v5399_v57 = vmul.f32 1.0614054, %v10423_v36  ;;  %v7341_v16 = vpop.f32.mrf.mxu0 }
 0x9e1   : > { %7373 = vmatprep.mubr.msk.f32.mxu1 %vm661_vm0, %v5934_v59  ;;  %v5650_v27 = vmul.f32 %v10382_v50, %v5618_v38  ;;  %v5621_v12 = vadd.f32 0.2548296, %v5589_v32  ;;  %v5302_v25 = vadd.f32 1.0, %v5270_v10  ;;  %v5687_v28 = vsub.f32 0.0, %v10370_v5 }
 0x9e2   : > { %v5904_v31 = vadd.f32 1.0, %v5872_v49  ;;  %7374 = vmatmul.mubr.msk.f32.gmra.mxu1 %vm661_vm0, %v5935_v1  ;;  %v5843_v37 = vsub.f32 1.0, %v5811_v17  ;;  %v5588_v55 = vmul.f32 %v10397_v3, %v5556_v2  ;;  %v5431_v40 = vadd.f32 -1.4531521, %v5399_v57 }
 0x9e3   : > { %v5810_v34 = vmul.f32 %v7576_v13, %v5650_v27  ;;  %v5653_v9 = vmul.f32 %v10391_v14, %v5621_v12  ;;  %7583 = vrcp.f32 %v5302_v25  ;;  %v5937_v0 = vmul.f32 %v5905_v19, %v10318_v56  ;;  %v5067_v12 = vpop.f32.mrf.mxu0 }
 0x9e4   : > { %v5936_v30 = vmul.f32 %v5904_v31, %v10321_v4  ;;  %v5875_v50 = vmul.f32 %v5843_v37, %v10366_v26  ;;  %v5620_v43 = vadd.f32 0.2548296, %v5588_v55  ;;  %v5463_v29 = vmul.f32 %v10423_v36, %v5431_v40 }
 0x9e5   : > { %v5202_v6 = vsel %vm5170_vm9, -1.0, %v10769_v35  ;;  %v5842_v1 = vsub.f32 1.0, %v5810_v34  ;;  %v5813_v59 = vmul.f32 %v7578_v33, %v5653_v9  ;;  %v10443_v4 = vadd.f32 %v10289_v8, %v7338_v53 }
 0x9e6   : > { %7376 = vmatprep.mubr.msk.f32.mxu1 %vm661_vm0, %v5936_v30  ;;  %v5205_v56 = vsel %vm5173_vm10, -1.0, %v10769_v35  ;;  %v5652_v26 = vmul.f32 %v10397_v3, %v5620_v43  ;;  %v5495_v14 = vadd.f32 1.4214138, %v5463_v29  ;;  %v5719_v13 = vmul.f32 %v5687_v28, %v10370_v5 }
 0x9e7   : > { %7377 = vmatmul.mubr.msk.f32.gmra.mxu1 %vm661_vm0, %v5937_v0  ;;  %v5874_v62 = vmul.f32 %v5842_v1, %v5202_v6  ;;  %v5845_v60 = vsub.f32 1.0, %v5813_v59  ;;  %v10454_v33 = vmul.f32 0.70710677, %v10443_v4  ;;  %v5907_v49 = vadd.f32 1.0, %v5875_v50  ;;  %v7344_v59 = vpop.f32.mrf.mxu0 }
 0x9e8   : > { %v5812_v38 = vmul.f32 %v7582_v21, %v5652_v26  ;;  %v5527_v20 = vmul.f32 %v10423_v36, %v5495_v14  ;;  %v10458_v32 = vadd.f32 %v10289_v8, %v5057_v52  ;;  %v5686_v5 = vsub.f32 0.0, %v10414_v23 }
 0x9e9   : > { %v5906_v3 = vadd.f32 1.0, %v5874_v62  ;;  %v5877_v10 = vmul.f32 %v5845_v60, %v5205_v56  ;;  %v5241_v53 = vand.u32 2147483647, %v10454_v33  ;;  %v5107_v19 = vmul.f32 0.5, %v10296_v15 }
 0x9ea   : > { %v5844_v17 = vsub.f32 1.0, %v5812_v38  ;;  %v5776_v2 = vmul.f32 1.442695, %v5719_v13  ;;  %v5108_v31 = vmul.f32 0.5, %v10327_v58  ;;  %v5204_v21 = vsel %vm5172_vm11, -1.0, %v10769_v35 }
 0x9eb   : > { %v5938_v57 = vmul.f32 %v5906_v3, %v10342_v7  ;;  %v5273_v27 = vmul.f32 0.3275911, %v5241_v53  ;;  %v5939_v25 = vmul.f32 %v5907_v49, %v5107_v19  ;;  %v5559_v55 = vadd.f32 -0.28449672, %v5527_v20  ;;  %v5077_v20 = vpop.f32.mrf.mxu0 }
 0x9ec   : > { %v5876_v37 = vmul.f32 %v5844_v17, %v5204_v21  ;;  %v10469_v40 = vmul.f32 0.70710677, %v10458_v32  ;;  %v5909_v28 = vadd.f32 1.0, %v5877_v10  ;;  %v5718_v15 = vmul.f32 %v5686_v5, %v10414_v23 }
 0x9ed   : > { %v5305_v30 = vadd.f32 1.0, %v5273_v27  ;;  %v10473_v7 = vadd.f32 %v10289_v8, %v7341_v16  ;;  %7379 = vmatprep.mubr.msk.f32.mxu1 %vm661_vm0, %v5938_v57  ;;  %7585 = vpow2.f32 %v5776_v2  ;;  %v10478_v34 = vadd.f32 %v10289_v8, %v5067_v12 }
 0x9ee   : > { %v5908_v58 = vadd.f32 1.0, %v5876_v37  ;;  %v5240_v41 = vand.u32 2147483647, %v10469_v40  ;;  %7380 = vmatmul.mubr.msk.f32.gmra.mxu1 %vm661_vm0, %v5939_v25  ;;  %v5109_v9 = vmul.f32 0.5, %v10313_v48  ;;  %v5591_v0 = vmul.f32 %v10423_v36, %v5559_v55 }
 0x9ef   : > { %7587 = vrcp.f32 %v5305_v30  ;;  %v5774_v6 = vmul.f32 1.442695, %v5718_v15  ;;  %v10484_v1 = vmul.f32 0.70710677, %v10473_v7  ;;  %v10487_v26 = vmul.f32 0.70710677, %v10478_v34 }
 0x9f0   : > { %v7584_v52 = vpop.eup %7583  ;;  %v5940_v23 = vmul.f32 %v5908_v58, %v5108_v31  ;;  %v5272_v50 = vmul.f32 0.3275911, %v5240_v41  ;;  %v5941_v43 = vmul.f32 %v5909_v28, %v5109_v9  ;;  %v5623_v13 = vadd.f32 0.2548296, %v5591_v0 }
 0x9f1   : > { %v5398_v29 = vmul.f32 1.0614054, %v7584_v52  ;;  %v5243_v14 = vand.u32 2147483647, %v10484_v1  ;;  %v5689_v62 = vsub.f32 0.0, %v5241_v53  ;;  %v10493_v60 = vadd.f32 %v10289_v8, %v7344_v59 }
 0x9f2   : > { %v5304_v56 = vadd.f32 1.0, %v5272_v50  ;;  %7382 = vmatprep.mubr.msk.f32.mxu1 %vm661_vm0, %v5940_v23  ;;  %v5242_v38 = vand.u32 2147483647, %v10487_v26  ;;  %v5655_v5 = vmul.f32 %v10423_v36, %v5623_v13  ;;  %v10501_v31 = vadd.f32 %v10289_v8, %v5077_v20 }
 0x9f3   : > { %v5430_v48 = vadd.f32 -1.4531521, %v5398_v29  ;;  %7383 = vmatmul.mubr.msk.f32.gmra.mxu1 %vm661_vm0, %v5941_v43  ;;  %v5275_v49 = vmul.f32 0.3275911, %v5243_v14  ;;  %v5721_v19 = vmul.f32 %v5689_v62, %v5241_v53  ;;  %v10498_v2 = vmul.f32 0.70710677, %v10493_v60 }
 0x9f4   : > { %7589 = vrcp.f32 %v5304_v56  ;;  %v5274_v17 = vmul.f32 0.3275911, %v5242_v38  ;;  %v5688_v21 = vsub.f32 0.0, %v5240_v41  ;;  %v10509_v28 = vmul.f32 0.70710677, %v10501_v31 }
 0x9f5   : > { %v5462_v16 = vmul.f32 %v7584_v52, %v5430_v48  ;;  %7591 = vpow2.f32 %v5774_v6  ;;  %v5307_v10 = vadd.f32 1.0, %v5275_v49  ;;  %v10504_v37 = vand.u32 2147483647, %v10498_v2 }
 0x9f6   : > { %v5306_v27 = vadd.f32 1.0, %v5274_v17  ;;  %v5780_v53 = vmul.f32 1.442695, %v5721_v19  ;;  %v5691_v8 = vsub.f32 0.0, %v5243_v14  ;;  %v5720_v9 = vmul.f32 %v5688_v21, %v5240_v41 }
 0x9f7   : > { %v5494_v3 = vadd.f32 1.4214138, %v5462_v16  ;;  %7593 = vrcp.f32 %v5307_v10  ;;  %v5277_v58 = vmul.f32 0.3275911, %v10504_v37  ;;  %v10514_v23 = vand.u32 2147483647, %v10509_v28 }
 0x9f8   : > { %7595 = vrcp.f32 %v5306_v27  ;;  %v5723_v13 = vmul.f32 %v5691_v8, %v5243_v14  ;;  %v5778_v16 = vmul.f32 1.442695, %v5720_v9  ;;  %v5690_v49 = vsub.f32 0.0, %v5242_v38 }
 0x9f9   : > { %v5526_v57 = vmul.f32 %v7584_v52, %v5494_v3  ;;  %v5309_v43 = vadd.f32 1.0, %v5277_v58  ;;  %7597 = vpow2.f32 %v5780_v53  ;;  %v5276_v6 = vmul.f32 0.3275911, %v10514_v23 }
 0x9fa   : > { %v7586_v12 = vpop.eup %7585  ;;  %v5207_v3 = vsel %vm5175_vm12, -1.0, %v10769_v35  ;;  %v5784_v14 = vmul.f32 1.442695, %v5723_v13  ;;  %v5206_v21 = vsel %vm5174_vm13, -1.0, %v10769_v35  ;;  %v5693_v53 = vsub.f32 0.0, %v10504_v37 }
 0x9fb   : > { %v5558_v25 = vadd.f32 -0.28449672, %v5526_v57  ;;  %v5815_v36 = vmul.f32 %v7586_v12, %v5655_v5  ;;  %7599 = vrcp.f32 %v5309_v43  ;;  %v5308_v20 = vadd.f32 1.0, %v5276_v6 }
 0x9fc   : > { %v10506_v55 = vpop.eup %7587  ;;  %v5722_v12 = vmul.f32 %v5690_v49, %v5242_v38  ;;  %v5110_v8 = vmul.f32 0.5, %v10377_v45  ;;  %v5725_v45 = vmul.f32 %v5693_v53, %v10504_v37  ;;  %vm5177_vm14 = vcmp.lt.f32.partialorder %v10454_v33, 0.0 }
 0x9fd   : > { %v5590_v15 = vmul.f32 %v7584_v52, %v5558_v25  ;;  %v5401_v30 = vmul.f32 1.0614054, %v10506_v55  ;;  %v5847_v29 = vsub.f32 1.0, %v5815_v36  ;;  %7601 = vrcp.f32 %v5308_v20 }
 0x9fe   : > { %7603 = vpow2.f32 %v5778_v16  ;;  %v5782_v6 = vmul.f32 1.442695, %v5722_v12  ;;  %vm5176_vm15 = vcmp.lt.f32.partialorder %v10469_v40, 0.0  ;;  %vm5179_vm1 = vcmp.lt.f32.partialorder %v10484_v1, 0.0 }
 0x9ff   : > { %v5622_v0 = vadd.f32 0.2548296, %v5590_v15  ;;  %v5433_v50 = vadd.f32 -1.4531521, %v5401_v30  ;;  %v5879_v5 = vmul.f32 %v5847_v29, %v5207_v3  ;;  %v5111_v15 = vmul.f32 0.5, %v10353_v24 }
 0xa00   : > { %7605 = vpow2.f32 %v5784_v14  ;;  %vm5178_vm2 = vcmp.lt.f32.partialorder %v10487_v26, 0.0  ;;  %vm5181_vm3 = vcmp.lt.f32.partialorder %v10498_v2, 0.0  ;;  %vm5180_vm4 = vcmp.lt.f32.partialorder %v10509_v28, 0.0 }
 0xa01   : > { %v10518_v59 = vpop.eup %7589  ;;  %v5654_v56 = vmul.f32 %v7584_v52, %v5622_v0  ;;  %v5465_v48 = vmul.f32 %v10506_v55, %v5433_v50  ;;  %v5911_v30 = vadd.f32 1.0, %v5879_v5  ;;  %7607 = vpow2.f32 %v5782_v6 }
 0xa02   : > { %v7592_v41 = vpop.eup %7591  ;;  %v5400_v62 = vmul.f32 1.0614054, %v10518_v59 }
 0xa03   : > { %v5814_v47 = vmul.f32 %v7592_v41, %v5654_v56  ;;  %v5497_v10 = vadd.f32 1.4214138, %v5465_v48  ;;  %v5692_v56 = vsub.f32 0.0, %v10514_v23  ;;  %v5943_v41 = vmul.f32 %v5911_v30, %v5111_v15 }
 0xa04   : > { %v5432_v19 = vadd.f32 -1.4531521, %v5400_v62  ;;  %v10525_v57 = vpop.eup %7593 }
 0xa05   : > { %v5846_v52 = vsub.f32 1.0, %v5814_v47  ;;  %v5529_v17 = vmul.f32 %v10506_v55, %v5497_v10  ;;  %v5403_v42 = vmul.f32 1.0614054, %v10525_v57  ;;  %v10533_v9 = vpop.eup %7595 }
 0xa06   : > { %v5464_v27 = vmul.f32 %v10518_v59, %v5432_v19  ;;  %v5402_v29 = vmul.f32 1.0614054, %v10533_v9  ;;  %v7598_v49 = vpop.eup %7597  ;;  %v5724_v19 = vmul.f32 %v5692_v56, %v10514_v23 }
 0xa07   : > { %v5878_v25 = vmul.f32 %v5846_v52, %v5206_v21  ;;  %v5561_v36 = vadd.f32 -0.28449672, %v5529_v17  ;;  %v5435_v43 = vadd.f32 -1.4531521, %v5403_v42 }
 0xa08   : > { %v5496_v58 = vadd.f32 1.4214138, %v5464_v27  ;;  %v5434_v16 = vadd.f32 -1.4531521, %v5402_v29  ;;  %v10543_v47 = vpop.eup %7599  ;;  %v5786_v15 = vmul.f32 1.442695, %v5724_v19 }
 0xa09   : > { %v5910_v0 = vadd.f32 1.0, %v5878_v25  ;;  %v5593_v50 = vmul.f32 %v10506_v55, %v5561_v36  ;;  %v5467_v13 = vmul.f32 %v10525_v57, %v5435_v43  ;;  %v5405_v17 = vmul.f32 1.0614054, %v10543_v47 }
 0xa0a   : > { %v5528_v38 = vmul.f32 %v10518_v59, %v5496_v58  ;;  %v5466_v5 = vmul.f32 %v10533_v9, %v5434_v16  ;;  %v10552_v27 = vpop.eup %7601 }
 0xa0b   : > { %v5942_v48 = vmul.f32 %v5910_v0, %v5110_v8  ;;  %v5625_v24 = vadd.f32 0.2548296, %v5593_v50  ;;  %v5499_v3 = vadd.f32 1.4214138, %v5467_v13  ;;  %v5437_v36 = vadd.f32 -1.4531521, %v5405_v17  ;;  %v7604_v30 = vpop.eup %7603 }
 0xa0c   : > { %v5560_v62 = vadd.f32 -0.28449672, %v5528_v38  ;;  %v5498_v21 = vadd.f32 1.4214138, %v5466_v5  ;;  %v5404_v53 = vmul.f32 1.0614054, %v10552_v27 }
 0xa0d   : > { %v5657_v20 = vmul.f32 %v10506_v55, %v5625_v24  ;;  %7385 = vmatprep.mubr.msk.f32.mxu1 %vm661_vm0, %v5942_v48  ;;  %v5531_v52 = vmul.f32 %v10525_v57, %v5499_v3  ;;  %v5788_v55 = vmul.f32 1.442695, %v5725_v45  ;;  %v5209_v8 = vsel %vm5177_vm14, -1.0, %v10769_v35  ;;  %v7606_v6 = vpop.eup %7605 }
 0xa0e   : > { %v5592_v10 = vmul.f32 %v10518_v59, %v5560_v62  ;;  %7386 = vmatmul.mubr.msk.f32.gmra.mxu1 %vm661_vm0, %v5943_v41  ;;  %v5530_v23 = vmul.f32 %v10533_v9, %v5498_v21  ;;  %v5469_v33 = vmul.f32 %v10543_v47, %v5437_v36  ;;  %v5436_v43 = vadd.f32 -1.4531521, %v5404_v53 }
 0xa0f   : > { %v5817_v37 = vmul.f32 %v7598_v49, %v5657_v20  ;;  %v5563_v25 = vadd.f32 -0.28449672, %v5531_v52  ;;  %7609 = vpow2.f32 %v5788_v55  ;;  %v5208_v13 = vsel %vm5176_vm15, -1.0, %v10769_v35  ;;  %v7608_v52 = vpop.eup %7607 }
 0xa10   : > { %v5624_v14 = vadd.f32 0.2548296, %v5592_v10  ;;  %v5562_v50 = vadd.f32 -0.28449672, %v5530_v23  ;;  %v5501_v29 = vadd.f32 1.4214138, %v5469_v33  ;;  %v5468_v24 = vmul.f32 %v10552_v27, %v5436_v43 }
 0xa11   : > { %v5849_v12 = vsub.f32 1.0, %v5817_v37  ;;  %v5595_v58 = vmul.f32 %v10525_v57, %v5563_v25  ;;  %7611 = vpow2.f32 %v5786_v15  ;;  %v5112_v10 = vmul.f32 0.5, %v10458_v32 }
 0xa12   : > { %v5656_v42 = vmul.f32 %v10518_v59, %v5624_v14  ;;  %v5594_v48 = vmul.f32 %v10533_v9, %v5562_v50  ;;  %v5533_v41 = vmul.f32 %v10543_v47, %v5501_v29  ;;  %v5500_v16 = vadd.f32 1.4214138, %v5468_v24 }
 0xa13   : > { %v5881_v38 = vmul.f32 %v5849_v12, %v5209_v8  ;;  %v5627_v59 = vadd.f32 0.2548296, %v5595_v58  ;;  %v5211_v17 = vsel %vm5179_vm1, -1.0, %v10769_v35  ;;  %v5114_v58 = vmul.f32 0.5, %v10478_v34 }
 0xa14   : > { %v5816_v0 = vmul.f32 %v7604_v30, %v5656_v42  ;;  %v5626_v62 = vadd.f32 0.2548296, %v5594_v48  ;;  %v5565_v3 = vadd.f32 -0.28449672, %v5533_v41  ;;  %v5532_v37 = vmul.f32 %v10552_v27, %v5500_v16 }
 0xa15   : > { %v5659_v45 = vmul.f32 %v10525_v57, %v5627_v59  ;;  %v5913_v49 = vadd.f32 1.0, %v5881_v38  ;;  %v5113_v57 = vmul.f32 0.5, %v10443_v4  ;;  %v5210_v4 = vsel %vm5178_vm2, -1.0, %v10769_v35 }
 0xa16   : > { %v5848_v56 = vsub.f32 1.0, %v5816_v0  ;;  %v5658_v19 = vmul.f32 %v10533_v9, %v5626_v62  ;;  %v5597_v1 = vmul.f32 %v10543_v47, %v5565_v3  ;;  %v5564_v12 = vadd.f32 -0.28449672, %v5532_v37 }
 0xa17   : > { %v5819_v20 = vmul.f32 %v7606_v6, %v5659_v45  ;;  %v5945_v25 = vmul.f32 %v5913_v49, %v5113_v57  ;;  %v5115_v43 = vmul.f32 0.5, %v10473_v7  ;;  %v5212_v34 = vsel %vm5180_vm4, -1.0, %v10769_v35 }
 0xa18   : > { %v5880_v40 = vmul.f32 %v5848_v56, %v5208_v13  ;;  %v5818_v21 = vmul.f32 %v7608_v52, %v5658_v19  ;;  %v5629_v36 = vadd.f32 0.2548296, %v5597_v1  ;;  %v5596_v9 = vmul.f32 %v10552_v27, %v5564_v12 }
 0xa19   : > { %v5851_v55 = vsub.f32 1.0, %v5819_v20  ;;  %v5116_v7 = vmul.f32 0.5, %v10501_v31  ;;  %v5117_v13 = vmul.f32 0.5, %v10493_v60 }
 0xa1a   : > { %v5912_v5 = vadd.f32 1.0, %v5880_v40  ;;  %v5850_v42 = vsub.f32 1.0, %v5818_v21  ;;  %v5661_v23 = vmul.f32 %v10543_v47, %v5629_v36  ;;  %v5628_v30 = vadd.f32 0.2548296, %v5596_v9  ;;  %v10797_v9 = vld [vmem:[#allocation9_spill] sm:$0xff] }
 0xa1b   : > { %v5883_v32 = vmul.f32 %v5851_v55, %v5211_v17  ;;  %v5213_v47 = vsel %vm5181_vm3, -1.0, %v10769_v35  ;;  %v7658_v35 = vld [vmem:[%s10662_s16] ss:$0 sm:$0xff] }
 0xa1c   : > { %v5944_v14 = vmul.f32 %v5912_v5, %v5112_v10  ;;  %v7610_v53 = vpop.eup %7609  ;;  %v5882_v15 = vmul.f32 %v5850_v42, %v5210_v4  ;;  %v5660_v0 = vmul.f32 %v10552_v27, %v5628_v30 }
 0xa1d   : > { %v5915_v26 = vadd.f32 1.0, %v5883_v32  ;;  %v5821_v8 = vmul.f32 %v7610_v53, %v5661_v23  ;;  %v10798_v53 = vld [vmem:[#allocation8_spill] sm:$0xff] }
 0xa1e   : > { %7388 = vmatprep.mubr.msk.f32.mxu1 %vm661_vm0, %v5944_v14  ;;  %v5914_v33 = vadd.f32 1.0, %v5882_v15  ;;  %v7612_v50 = vpop.eup %7611 }
 0xa1f   : > { %7389 = vmatmul.mubr.msk.f32.gmra.mxu1 %vm661_vm0, %v5945_v25  ;;  %v5853_v38 = vsub.f32 1.0, %v5821_v8  ;;  %v5820_v29 = vmul.f32 %v7612_v50, %v5660_v0  ;;  %v5947_v6 = vmul.f32 %v5915_v26, %v5115_v43  ;;  %v10799_v26 = vld [vmem:[#allocation11_spill] sm:$0xff] }
 0xa20   : > { %v5946_v59 = vmul.f32 %v5914_v33, %v5114_v58  ;;  %v10800_v33 = vld [vmem:[#allocation10_spill] sm:$0xff] }
 0xa21   : > { %v5885_v56 = vmul.f32 %v5853_v38, %v5213_v47  ;;  %v5852_v48 = vsub.f32 1.0, %v5820_v29 }
 0xa22   : > { %7391 = vmatprep.mubr.msk.f32.mxu1 %vm661_vm0, %v5946_v59  ;;  %v10801_v59 = vld [vmem:[#allocation13_spill] sm:$0xff] }
 0xa23   : > { %7392 = vmatmul.mubr.msk.f32.gmra.mxu1 %vm661_vm0, %v5947_v6  ;;  %v5884_v2 = vmul.f32 %v5852_v48, %v5212_v34  ;;  %v5917_v27 = vadd.f32 1.0, %v5885_v56  ;;  %v10802_v6 = vld [vmem:[#allocation12_spill] sm:$0xff] }
 0xa25   : > { %v5916_v24 = vadd.f32 1.0, %v5884_v2  ;;  %v5949_v45 = vmul.f32 %v5917_v27, %v5117_v13 }
 0xa27   : > { %v5948_v28 = vmul.f32 %v5916_v24, %v5116_v7 }
 0xa29   : > { %7394 = vmatprep.mubr.msk.f32.mxu1 %vm661_vm0, %v5948_v28 }
 0xa2a   : > { %7395 = vmatmul.mubr.msk.f32.gmra.mxu1 %vm661_vm0, %v5949_v45 }
 0xaa2   : > { %v7375_v41 = vpop.f32.mrf.mxu1 }
 0xaa3   : > { %v6207_v40 = vadd.f32 %v7658_v35, %v7375_v41 }
 0xaa4   : > { %v6201_v62 = vpop.f32.mrf.mxu1 }
 0xaa5   : > { %v6297_v31 = vadd.f32 %v6207_v40, %v10152_v22  ;;  %v6202_v16 = vadd.f32 %v7658_v35, %v6201_v62 }
 0xaa7   : > { %6329 = vst.msk [vmem:[%s10236_s29 + $0x88] sm:$0xff] %vm661_vm0, %v6297_v31  ;;  %v6296_v60 = vadd.f32 %v6202_v16, %v10149_v63  ;;  %v7378_v49 = vpop.f32.mrf.mxu1 }
 0xaa8   : > { %v6217_v20 = vadd.f32 %v7658_v35, %v7378_v49 }
 0xaa9   : > { %6328 = vst.msk [vmem:[%s10236_s29 + $0x80] sm:$0xff] %vm661_vm0, %v6296_v60  ;;  %v6211_v3 = vpop.f32.mrf.mxu1 }
 0xaaa   : > { %v6299_v10 = vadd.f32 %v6217_v20, %v10162_v44  ;;  %v6212_v5 = vadd.f32 %v7658_v35, %v6211_v3 }
 0xaac   : > { %6331 = vst.msk [vmem:[%s10236_s29 + $0x98] sm:$0xff] %vm661_vm0, %v6299_v10  ;;  %v6298_v22 = vadd.f32 %v6212_v5, %v10159_v18 }
 0xaae   : > { %6330 = vst.msk [vmem:[%s10236_s29 + $0x90] sm:$0xff] %vm661_vm0, %v6298_v22  ;;  %v7381_v19 = vpop.f32.mrf.mxu1 }
 0xaaf   : > { %v6227_v37 = vadd.f32 %v7658_v35, %v7381_v19 }
 0xab0   : > { %v6221_v63 = vpop.f32.mrf.mxu1 }
 0xab1   : > { %v6301_v52 = vadd.f32 %v6227_v37, %v10172_v46  ;;  %v6222_v57 = vadd.f32 %v7658_v35, %v6221_v63 }
 0xab3   : > { %6333 = vst.msk [vmem:[%s10236_s29 + $0xa8] sm:$0xff] %vm661_vm0, %v6301_v52  ;;  %v6300_v44 = vadd.f32 %v6222_v57, %v10169_v61  ;;  %v7384_v17 = vpop.f32.mrf.mxu1 }
 0xab4   : > { %v6237_v55 = vadd.f32 %v7658_v35, %v7384_v17 }
 0xab5   : > { %6332 = vst.msk [vmem:[%s10236_s29 + $0xa0] sm:$0xff] %vm661_vm0, %v6300_v44  ;;  %v6231_v18 = vpop.f32.mrf.mxu1 }
 0xab6   : > { %v6303_v1 = vadd.f32 %v6237_v55, %v10182_v39  ;;  %v6232_v14 = vadd.f32 %v7658_v35, %v6231_v18 }
 0xab8   : > { %6335 = vst.msk [vmem:[%s10236_s29 + $0xb8] sm:$0xff] %vm661_vm0, %v6303_v1  ;;  %v6302_v46 = vadd.f32 %v6232_v14, %v10179_v54 }
 0xaba   : > { %6334 = vst.msk [vmem:[%s10236_s29 + $0xb0] sm:$0xff] %vm661_vm0, %v6302_v46 }
 0xace   : > { %v7387_v21 = vpop.f32.mrf.mxu1 }
 0xacf   : > { %v6247_v12 = vadd.f32 %v7658_v35, %v7387_v21 }
 0xad0   : > { %v6241_v61 = vpop.f32.mrf.mxu1 }
 0xad1   : > { %v6305_v25 = vadd.f32 %v6247_v12, %v10192_v51  ;;  %v6242_v32 = vadd.f32 %v7658_v35, %v6241_v61 }
 0xad3   : > { %6337 = vst.msk [vmem:[%s10236_s29 + $0xc8] sm:$0xff] %vm661_vm0, %v6305_v25  ;;  %v6304_v39 = vadd.f32 %v6242_v32, %v10189_v11 }
 0xad5   : > { %6336 = vst.msk [vmem:[%s10236_s29 + $0xc0] sm:$0xff] %vm661_vm0, %v6304_v39 }
 0xadf   : > { %v7390_v36 = vpop.f32.mrf.mxu1 }
 0xae0   : > { %v6257_v42 = vadd.f32 %v7658_v35, %v7390_v36 }
 0xae1   : > { %v6251_v54 = vpop.f32.mrf.mxu1 }
 0xae2   : > { %v6307_v4 = vadd.f32 %v6257_v42, %v10797_v9  ;;  %v6252_v23 = vadd.f32 %v7658_v35, %v6251_v54 }
 0xae3   : > { %v7393_v15 = vpop.f32.mrf.mxu1 }
 0xae4   : > { %6339 = vst.msk [vmem:[%s10236_s29 + $0xd8] sm:$0xff] %vm661_vm0, %v6307_v4  ;;  %v6306_v51 = vadd.f32 %v6252_v23, %v10798_v53  ;;  %v6267_v30 = vadd.f32 %v7658_v35, %v7393_v15 }
 0xae5   : > { %v6261_v11 = vpop.f32.mrf.mxu1 }
 0xae6   : > { %6338 = vst.msk [vmem:[%s10236_s29 + $0xd0] sm:$0xff] %vm661_vm0, %v6306_v51  ;;  %v6309_v8 = vadd.f32 %v6267_v30, %v10799_v26  ;;  %v6262_v58 = vadd.f32 %v7658_v35, %v6261_v11 }
 0xae8   : > { %6341 = vst.msk [vmem:[%s10236_s29 + $0xe8] sm:$0xff] %vm661_vm0, %v6309_v8  ;;  %v6308_v0 = vadd.f32 %v6262_v58, %v10800_v33 }
 0xaea   : > { %6340 = vst.msk [vmem:[%s10236_s29 + $0xe0] sm:$0xff] %vm661_vm0, %v6308_v0  ;;  %v7396_v50 = vpop.f32.mrf.mxu1 }
 0xaeb   : > { %v6277_v43 = vadd.f32 %v7658_v35, %v7396_v50 }
 0xaec   : > { %v6271_v38 = vpop.f32.mrf.mxu1 }
 0xaed   : > { %v6311_v47 = vadd.f32 %v6277_v43, %v10801_v59  ;;  %v6272_v29 = vadd.f32 %v7658_v35, %v6271_v38 }
 0xaef   : > { %6343 = vst.msk [vmem:[%s10236_s29 + $0xf8] sm:$0xff] %vm661_vm0, %v6311_v47  ;;  %v6310_v56 = vadd.f32 %v6272_v29, %v10802_v6 }
 0xaf1   : > { %6342 = vst.msk [vmem:[%s10236_s29 + $0xf0] sm:$0xff] %vm661_vm0, %v6310_v56 }
 0xaf2 PF: > { %s27_s24 = sadd.s32 1, %s7665_s24  }
 0xaf3   : > { %p24_p4 = scmp.ge.s32.totalorder %s27_s24, 4  }
 0xaf5   :  { %26 = sbr.rel (!%p24_p4) target bundleno = 3 (0x3), region = 121 }

</bundles_post_ra>
